<compile_context>
chip_gen: v7x
topology: tpu7x:2x2x1
jax: 0.10.0
libtpu: 0.0.40
codegen_flags: <defaults>
</compile_context>

<pallas_src>
import functools
import math

import jax
import jax.numpy as jnp
from jax.experimental import pallas as pl
from jax.experimental.pallas import tpu as pltpu  # noqa: F401  (TPU backend)

LANES = 128


# ---------------------------------------------------------------------------
# Pallas kernels
# ---------------------------------------------------------------------------

def _conv_relu_pool_kernel(x0_ref, x1_ref, x2_ref, x3_ref, w_ref, b_ref, o_ref):
    """Fused conv(as matmul) + bias + ReLU + 2x2 max-pool.

    x{g}_ref: (Mq, K) bf16 im2col patches for pool-window offset g = (di, dj).
    w_ref:    (K, 128) bf16 weight slab (lane-padded, prepared at init).
    b_ref:    (1, 128) f32 bias row.
    o_ref:    (Mq, 128) bf16 pooled+ReLU'd conv output, rows ordered (b, ph, pw).
    """
    w = w_ref[...]
    b = b_ref[...]

    def branch(x_ref):
        acc = jnp.dot(x_ref[...], w, preferred_element_type=jnp.float32)
        return jnp.maximum(acc + b, 0.0)

    pooled = jnp.maximum(jnp.maximum(branch(x0_ref), branch(x1_ref)),
                         jnp.maximum(branch(x2_ref), branch(x3_ref)))
    o_ref[...] = pooled.astype(o_ref.dtype)


def _fc_stack_kernel(x_ref, w1_ref, b1_ref, w2_ref, b2_ref, w3_ref, b3_ref,
                     o_ref):
    """Fused fc1(ReLU) -> fc2(ReLU) -> fc3; intermediates stay in VMEM/vregs."""
    h = jnp.dot(x_ref[...], w1_ref[...], preferred_element_type=jnp.float32)
    h = jnp.maximum(h + b1_ref[...], 0.0).astype(jnp.bfloat16)
    h = jnp.dot(h, w2_ref[...], preferred_element_type=jnp.float32)
    h = jnp.maximum(h + b2_ref[...], 0.0).astype(jnp.bfloat16)
    h = jnp.dot(h, w3_ref[...], preferred_element_type=jnp.float32)
    o_ref[...] = h + b3_ref[...]


# ---------------------------------------------------------------------------
# pallas_call wrappers (single full-array block; shapes are tiny at B=2)
# ---------------------------------------------------------------------------

def _full_spec(shape):
    return pl.BlockSpec(shape, lambda: (0,) * len(shape))


def conv_relu_pool_pallas(groups, w, b):
    mq, k = groups[0].shape
    np_ = w.shape[1]
    return pl.pallas_call(
        _conv_relu_pool_kernel,
        out_shape=jax.ShapeDtypeStruct((mq, np_), jnp.bfloat16),
        in_specs=[_full_spec((mq, k))] * 4
                 + [_full_spec(w.shape), _full_spec(b.shape)],
        out_specs=_full_spec((mq, np_)),
    )(*groups, w, b)


def fc_stack_pallas(x, w1, b1, w2, b2, w3, b3):
    bsz = x.shape[0]
    np_ = w3.shape[1]
    return pl.pallas_call(
        _fc_stack_kernel,
        out_shape=jax.ShapeDtypeStruct((bsz, np_), jnp.float32),
        in_specs=[_full_spec(x.shape),
                  _full_spec(w1.shape), _full_spec(b1.shape),
                  _full_spec(w2.shape), _full_spec(b2.shape),
                  _full_spec(w3.shape), _full_spec(b3.shape)],
        out_specs=_full_spec((bsz, np_)),
    )(x, w1, b1, w2, b2, w3, b3)


# ---------------------------------------------------------------------------
# XLA glue: NHWC im2col grouped by 2x2 pool-window offset
# ---------------------------------------------------------------------------

def _im2col_pool_groups(x, kh, kw):
    """x: (B, H, W, C) NHWC. Returns ([4 x (B*Hp*Wp, kh*kw*C)], Hp, Wp).

    Group (di, dj) holds patches for conv-output positions (2*ph+di, 2*pw+dj);
    the K axis is ordered (kh, kw, C), matching the prepared weight layout.
    """
    b, h, w, c = x.shape
    ho, wo = h - kh + 1, w - kw + 1
    hp, wp = ho // 2, wo // 2
    groups = []
    for di in range(2):
        for dj in range(2):
            cols = []
            for i in range(kh):
                for j in range(kw):
                    r0, c0 = di + i, dj + j
                    sl = jax.lax.slice(
                        x, (0, r0, c0, 0),
                        (b, r0 + 2 * hp - 1, c0 + 2 * wp - 1, c),
                        (1, 2, 2, 1))                       # (B, Hp, Wp, C)
                    cols.append(sl)
            patch = jnp.stack(cols, axis=3)                 # (B, Hp, Wp, kh*kw, C)
            groups.append(patch.reshape(b * hp * wp, kh * kw * c))
    return groups, hp, wp


# ---------------------------------------------------------------------------
# Parameters: PyTorch-layout init + one-time matmul-layout preparation
# ---------------------------------------------------------------------------

def init_params(key, num_classes=10):
    """PyTorch-layout params with nn.Conv2d/nn.Linear default U(-1/sqrt(fan_in))."""
    def uniform(k, shape, fan_in):
        bound = 1.0 / math.sqrt(fan_in)
        return jax.random.uniform(k, shape, jnp.float32, -bound, bound)

    ks = jax.random.split(key, 10)
    return {
        "conv1_w": uniform(ks[0], (6, 3, 5, 5), 3 * 5 * 5),
        "conv1_b": uniform(ks[1], (6,), 3 * 5 * 5),
        "conv2_w": uniform(ks[2], (16, 6, 5, 5), 6 * 5 * 5),
        "conv2_b": uniform(ks[3], (16,), 6 * 5 * 5),
        "fc1_w": uniform(ks[4], (120, 16 * 5 * 5), 16 * 5 * 5),
        "fc1_b": uniform(ks[5], (120,), 16 * 5 * 5),
        "fc2_w": uniform(ks[6], (84, 120), 120),
        "fc2_b": uniform(ks[7], (84,), 120),
        "fc3_w": uniform(ks[8], (num_classes, 84), 84),
        "fc3_b": uniform(ks[9], (num_classes,), 84),
    }


def _pad2d(a, rows, cols):
    r, c = a.shape
    return jnp.zeros((rows, cols), a.dtype).at[:r, :c].set(a)


def _bias_row(b):
    return jnp.zeros((1, LANES), jnp.float32).at[0, :b.shape[0]].set(b)


def prepare_params(p):
    """One-time: reshape/transpose to matmul layout, pad lanes to 128, cast bf16."""
    bf16 = jnp.bfloat16
    # conv weights: (Cout, Cin, kh, kw) -> (kh, kw, Cin, Cout) -> (K, Cout)
    c1 = jnp.transpose(p["conv1_w"], (2, 3, 1, 0)).reshape(75, 6)
    c2 = jnp.transpose(p["conv2_w"], (2, 3, 1, 0)).reshape(150, 16)
    # fc1: torch flattens (C,H,W); our NHWC flatten is (H,W,C) -> permute K axis.
    f1 = jnp.transpose(p["fc1_w"].reshape(120, 16, 5, 5), (2, 3, 1, 0)).reshape(400, 120)
    f2 = p["fc2_w"].T                                   # (120, 84)
    f3 = p["fc3_w"].T                                   # (84, num_classes)
    return {
        "c1_w": _pad2d(c1, 75, LANES).astype(bf16),  "c1_b": _bias_row(p["conv1_b"]),
        "c2_w": _pad2d(c2, 150, LANES).astype(bf16), "c2_b": _bias_row(p["conv2_b"]),
        "fc1_w": _pad2d(f1, 400, LANES).astype(bf16), "fc1_b": _bias_row(p["fc1_b"]),
        "fc2_w": _pad2d(f2, LANES, LANES).astype(bf16), "fc2_b": _bias_row(p["fc2_b"]),
        "fc3_w": _pad2d(f3, LANES, LANES).astype(bf16), "fc3_b": _bias_row(p["fc3_b"]),
    }


# ---------------------------------------------------------------------------
# Forward pass
# ---------------------------------------------------------------------------

@functools.partial(jax.jit, static_argnames=("num_classes",))
def simplenet_forward(prep, x_nchw, num_classes=10):
    b = x_nchw.shape[0]
    # Single layout change per forward: NCHW -> NHWC, bf16 for the MXU.
    x = jnp.transpose(x_nchw, (0, 2, 3, 1)).astype(jnp.bfloat16)   # (B,32,32,3)

    # conv1 + ReLU + maxpool(2,2) in one fused kernel
    groups, hp, wp = _im2col_pool_groups(x, 5, 5)
    y = conv_relu_pool_pallas(groups, prep["c1_w"], prep["c1_b"])  # (B*14*14,128)
    x = y[:, :6].reshape(b, hp, wp, 6)                             # (B,14,14,6)

    # conv2 + ReLU + maxpool(2,2) in one fused kernel
    groups, hp, wp = _im2col_pool_groups(x, 5, 5)
    y = conv_relu_pool_pallas(groups, prep["c2_w"], prep["c2_b"])  # (B*5*5,128)
    feat = y[:, :16].reshape(b, hp * wp * 16)                      # (B,400) NHWC-flat

    # fc1(ReLU) -> fc2(ReLU) -> fc3, fused in one kernel
    out = fc_stack_pallas(feat, prep["fc1_w"], prep["fc1_b"],
                          prep["fc2_w"], prep["fc2_b"],
                          prep["fc3_w"], prep["fc3_b"])            # (B,128) f32
    return out[:, :num_classes]


if __name__ == "__main__":
    key = jax.random.PRNGKey(0)
    pkey, xkey = jax.random.split(key)
    params = init_params(pkey, num_classes=10)
    prep = prepare_params(params)   # one-time weight prep, NOT per forward
    # SimpleNet's 16*5*5 flatten implies 32x32x3 inputs (CIFAR-10 shape).
    x = jax.random.normal(xkey, (2, 3, 32, 32), jnp.float32)

    out = simplenet_forward(prep, x)
    out = jax.block_until_ready(out)
    assert out.shape == (2, 10), out.shape
    assert bool(jnp.all(jnp.isfinite(out))), "non-finite output"
    print("KERNEL_OK")
</pallas_src>

<mosaic_0001>
module attributes {stable_mosaic.version = 11 : i64} {
  func.func @_conv_relu_pool_kernel(%arg0: memref<392x75xbf16, #tpu.memory_space<vmem>>, %arg1: memref<392x75xbf16, #tpu.memory_space<vmem>>, %arg2: memref<392x75xbf16, #tpu.memory_space<vmem>>, %arg3: memref<392x75xbf16, #tpu.memory_space<vmem>>, %arg4: memref<75x128xbf16, #tpu.memory_space<vmem>>, %arg5: memref<1x128xf32, #tpu.memory_space<vmem>>, %arg6: memref<392x128xbf16, #tpu.memory_space<vmem>>) attributes {dimension_semantics = [], scalar_prefetch = 0 : i64, scratch_operands = 0 : i64, tpu.core_type = #tpu.core_type<tc>} {
    %c0 = arith.constant 0 : index
    %c0_0 = arith.constant 0 : index
    %0 = vector.load %arg4[%c0, %c0_0] : memref<75x128xbf16, #tpu.memory_space<vmem>>, vector<75x128xbf16>
    %c0_1 = arith.constant 0 : index
    %c0_2 = arith.constant 0 : index
    %1 = vector.load %arg5[%c0_1, %c0_2] : memref<1x128xf32, #tpu.memory_space<vmem>>, vector<1x128xf32>
    %c0_3 = arith.constant 0 : index
    %c0_4 = arith.constant 0 : index
    %2 = vector.load %arg0[%c0_3, %c0_4] : memref<392x75xbf16, #tpu.memory_space<vmem>>, vector<392x75xbf16>
    %cst = arith.constant dense<0.000000e+00> : vector<392x128xf32>
    %3 = tpu.matmul %2, %0, %cst {dimension_numbers = #tpu.dot_dimension_numbers<[1], [0], [0], [1], [0, 0, 1, 1], [], []>} : vector<392x75xbf16>, vector<75x128xbf16>, vector<392x128xf32> -> vector<392x128xf32>
    %4 = vector.broadcast %1 : vector<1x128xf32> to vector<392x128xf32>
    %5 = arith.addf %3, %4 : vector<392x128xf32>
    %cst_5 = arith.constant 0.000000e+00 : f32
    %6 = vector.broadcast %cst_5 : f32 to vector<392x128xf32>
    %7 = arith.maximumf %5, %6 : vector<392x128xf32>
    %c0_6 = arith.constant 0 : index
    %c0_7 = arith.constant 0 : index
    %8 = vector.load %arg1[%c0_6, %c0_7] : memref<392x75xbf16, #tpu.memory_space<vmem>>, vector<392x75xbf16>
    %cst_8 = arith.constant dense<0.000000e+00> : vector<392x128xf32>
    %9 = tpu.matmul %8, %0, %cst_8 {dimension_numbers = #tpu.dot_dimension_numbers<[1], [0], [0], [1], [0, 0, 1, 1], [], []>} : vector<392x75xbf16>, vector<75x128xbf16>, vector<392x128xf32> -> vector<392x128xf32>
    %10 = vector.broadcast %1 : vector<1x128xf32> to vector<392x128xf32>
    %11 = arith.addf %9, %10 : vector<392x128xf32>
    %cst_9 = arith.constant 0.000000e+00 : f32
    %12 = vector.broadcast %cst_9 : f32 to vector<392x128xf32>
    %13 = arith.maximumf %11, %12 : vector<392x128xf32>
    %14 = arith.maximumf %7, %13 : vector<392x128xf32>
    %c0_10 = arith.constant 0 : index
    %c0_11 = arith.constant 0 : index
    %15 = vector.load %arg2[%c0_10, %c0_11] : memref<392x75xbf16, #tpu.memory_space<vmem>>, vector<392x75xbf16>
    %cst_12 = arith.constant dense<0.000000e+00> : vector<392x128xf32>
    %16 = tpu.matmul %15, %0, %cst_12 {dimension_numbers = #tpu.dot_dimension_numbers<[1], [0], [0], [1], [0, 0, 1, 1], [], []>} : vector<392x75xbf16>, vector<75x128xbf16>, vector<392x128xf32> -> vector<392x128xf32>
    %17 = vector.broadcast %1 : vector<1x128xf32> to vector<392x128xf32>
    %18 = arith.addf %16, %17 : vector<392x128xf32>
    %cst_13 = arith.constant 0.000000e+00 : f32
    %19 = vector.broadcast %cst_13 : f32 to vector<392x128xf32>
    %20 = arith.maximumf %18, %19 : vector<392x128xf32>
    %c0_14 = arith.constant 0 : index
    %c0_15 = arith.constant 0 : index
    %21 = vector.load %arg3[%c0_14, %c0_15] : memref<392x75xbf16, #tpu.memory_space<vmem>>, vector<392x75xbf16>
    %cst_16 = arith.constant dense<0.000000e+00> : vector<392x128xf32>
    %22 = tpu.matmul %21, %0, %cst_16 {dimension_numbers = #tpu.dot_dimension_numbers<[1], [0], [0], [1], [0, 0, 1, 1], [], []>} : vector<392x75xbf16>, vector<75x128xbf16>, vector<392x128xf32> -> vector<392x128xf32>
    %23 = vector.broadcast %1 : vector<1x128xf32> to vector<392x128xf32>
    %24 = arith.addf %22, %23 : vector<392x128xf32>
    %cst_17 = arith.constant 0.000000e+00 : f32
    %25 = vector.broadcast %cst_17 : f32 to vector<392x128xf32>
    %26 = arith.maximumf %24, %25 : vector<392x128xf32>
    %27 = arith.maximumf %20, %26 : vector<392x128xf32>
    %28 = arith.maximumf %14, %27 : vector<392x128xf32>
    %29 = arith.truncf %28 : vector<392x128xf32> to vector<392x128xbf16>
    %c0_18 = arith.constant 0 : index
    %c0_19 = arith.constant 0 : index
    %30 = vector.load %arg6[%c0_18, %c0_19] : memref<392x128xbf16, #tpu.memory_space<vmem>>, vector<392x128xbf16>
    tpu.vector_store %arg6[%c0_18, %c0_19], %29 {strides = array<i32>} : memref<392x128xbf16, #tpu.memory_space<vmem>>, vector<392x128xbf16>,
    return
  }
}

module attributes {stable_mosaic.version = 11 : i64} {
  func.func @_conv_relu_pool_kernel(%arg0: memref<50x150xbf16, #tpu.memory_space<vmem>>, %arg1: memref<50x150xbf16, #tpu.memory_space<vmem>>, %arg2: memref<50x150xbf16, #tpu.memory_space<vmem>>, %arg3: memref<50x150xbf16, #tpu.memory_space<vmem>>, %arg4: memref<150x128xbf16, #tpu.memory_space<vmem>>, %arg5: memref<1x128xf32, #tpu.memory_space<vmem>>, %arg6: memref<50x128xbf16, #tpu.memory_space<vmem>>) attributes {dimension_semantics = [], scalar_prefetch = 0 : i64, scratch_operands = 0 : i64, tpu.core_type = #tpu.core_type<tc>} {
    %c0 = arith.constant 0 : index
    %c0_0 = arith.constant 0 : index
    %0 = vector.load %arg4[%c0, %c0_0] : memref<150x128xbf16, #tpu.memory_space<vmem>>, vector<150x128xbf16>
    %c0_1 = arith.constant 0 : index
    %c0_2 = arith.constant 0 : index
    %1 = vector.load %arg5[%c0_1, %c0_2] : memref<1x128xf32, #tpu.memory_space<vmem>>, vector<1x128xf32>
    %c0_3 = arith.constant 0 : index
    %c0_4 = arith.constant 0 : index
    %2 = vector.load %arg0[%c0_3, %c0_4] : memref<50x150xbf16, #tpu.memory_space<vmem>>, vector<50x150xbf16>
    %cst = arith.constant dense<0.000000e+00> : vector<50x128xf32>
    %3 = tpu.matmul %2, %0, %cst {dimension_numbers = #tpu.dot_dimension_numbers<[1], [0], [0], [1], [0, 0, 1, 1], [], []>} : vector<50x150xbf16>, vector<150x128xbf16>, vector<50x128xf32> -> vector<50x128xf32>
    %4 = vector.broadcast %1 : vector<1x128xf32> to vector<50x128xf32>
    %5 = arith.addf %3, %4 : vector<50x128xf32>
    %cst_5 = arith.constant 0.000000e+00 : f32
    %6 = vector.broadcast %cst_5 : f32 to vector<50x128xf32>
    %7 = arith.maximumf %5, %6 : vector<50x128xf32>
    %c0_6 = arith.constant 0 : index
    %c0_7 = arith.constant 0 : index
    %8 = vector.load %arg1[%c0_6, %c0_7] : memref<50x150xbf16, #tpu.memory_space<vmem>>, vector<50x150xbf16>
    %cst_8 = arith.constant dense<0.000000e+00> : vector<50x128xf32>
    %9 = tpu.matmul %8, %0, %cst_8 {dimension_numbers = #tpu.dot_dimension_numbers<[1], [0], [0], [1], [0, 0, 1, 1], [], []>} : vector<50x150xbf16>, vector<150x128xbf16>, vector<50x128xf32> -> vector<50x128xf32>
    %10 = vector.broadcast %1 : vector<1x128xf32> to vector<50x128xf32>
    %11 = arith.addf %9, %10 : vector<50x128xf32>
    %cst_9 = arith.constant 0.000000e+00 : f32
    %12 = vector.broadcast %cst_9 : f32 to vector<50x128xf32>
    %13 = arith.maximumf %11, %12 : vector<50x128xf32>
    %14 = arith.maximumf %7, %13 : vector<50x128xf32>
    %c0_10 = arith.constant 0 : index
    %c0_11 = arith.constant 0 : index
    %15 = vector.load %arg2[%c0_10, %c0_11] : memref<50x150xbf16, #tpu.memory_space<vmem>>, vector<50x150xbf16>
    %cst_12 = arith.constant dense<0.000000e+00> : vector<50x128xf32>
    %16 = tpu.matmul %15, %0, %cst_12 {dimension_numbers = #tpu.dot_dimension_numbers<[1], [0], [0], [1], [0, 0, 1, 1], [], []>} : vector<50x150xbf16>, vector<150x128xbf16>, vector<50x128xf32> -> vector<50x128xf32>
    %17 = vector.broadcast %1 : vector<1x128xf32> to vector<50x128xf32>
    %18 = arith.addf %16, %17 : vector<50x128xf32>
    %cst_13 = arith.constant 0.000000e+00 : f32
    %19 = vector.broadcast %cst_13 : f32 to vector<50x128xf32>
    %20 = arith.maximumf %18, %19 : vector<50x128xf32>
    %c0_14 = arith.constant 0 : index
    %c0_15 = arith.constant 0 : index
    %21 = vector.load %arg3[%c0_14, %c0_15] : memref<50x150xbf16, #tpu.memory_space<vmem>>, vector<50x150xbf16>
    %cst_16 = arith.constant dense<0.000000e+00> : vector<50x128xf32>
    %22 = tpu.matmul %21, %0, %cst_16 {dimension_numbers = #tpu.dot_dimension_numbers<[1], [0], [0], [1], [0, 0, 1, 1], [], []>} : vector<50x150xbf16>, vector<150x128xbf16>, vector<50x128xf32> -> vector<50x128xf32>
    %23 = vector.broadcast %1 : vector<1x128xf32> to vector<50x128xf32>
    %24 = arith.addf %22, %23 : vector<50x128xf32>
    %cst_17 = arith.constant 0.000000e+00 : f32
    %25 = vector.broadcast %cst_17 : f32 to vector<50x128xf32>
    %26 = arith.maximumf %24, %25 : vector<50x128xf32>
    %27 = arith.maximumf %20, %26 : vector<50x128xf32>
    %28 = arith.maximumf %14, %27 : vector<50x128xf32>
    %29 = arith.truncf %28 : vector<50x128xf32> to vector<50x128xbf16>
    %c0_18 = arith.constant 0 : index
    %c0_19 = arith.constant 0 : index
    %30 = vector.load %arg6[%c0_18, %c0_19] : memref<50x128xbf16, #tpu.memory_space<vmem>>, vector<50x128xbf16>
    tpu.vector_store %arg6[%c0_18, %c0_19], %29 {strides = array<i32>} : memref<50x128xbf16, #tpu.memory_space<vmem>>, vector<50x128xbf16>,
    return
  }
}

module attributes {stable_mosaic.version = 11 : i64} {
  func.func @_fc_stack_kernel(%arg0: memref<2x400xbf16, #tpu.memory_space<vmem>>, %arg1: memref<400x128xbf16, #tpu.memory_space<vmem>>, %arg2: memref<1x128xf32, #tpu.memory_space<vmem>>, %arg3: memref<128x128xbf16, #tpu.memory_space<vmem>>, %arg4: memref<1x128xf32, #tpu.memory_space<vmem>>, %arg5: memref<128x128xbf16, #tpu.memory_space<vmem>>, %arg6: memref<1x128xf32, #tpu.memory_space<vmem>>, %arg7: memref<2x128xf32, #tpu.memory_space<vmem>>) attributes {dimension_semantics = [], scalar_prefetch = 0 : i64, scratch_operands = 0 : i64, tpu.core_type = #tpu.core_type<tc>} {
    %c0 = arith.constant 0 : index
    %c0_0 = arith.constant 0 : index
    %0 = vector.load %arg0[%c0, %c0_0] : memref<2x400xbf16, #tpu.memory_space<vmem>>, vector<2x400xbf16>
    %c0_1 = arith.constant 0 : index
    %c0_2 = arith.constant 0 : index
    %1 = vector.load %arg1[%c0_1, %c0_2] : memref<400x128xbf16, #tpu.memory_space<vmem>>, vector<400x128xbf16>
    %cst = arith.constant dense<0.000000e+00> : vector<2x128xf32>
    %2 = tpu.matmul %0, %1, %cst {dimension_numbers = #tpu.dot_dimension_numbers<[1], [0], [0], [1], [0, 0, 1, 1], [], []>} : vector<2x400xbf16>, vector<400x128xbf16>, vector<2x128xf32> -> vector<2x128xf32>
    %c0_3 = arith.constant 0 : index
    %c0_4 = arith.constant 0 : index
    %3 = vector.load %arg2[%c0_3, %c0_4] : memref<1x128xf32, #tpu.memory_space<vmem>>, vector<1x128xf32>
    %4 = vector.broadcast %3 : vector<1x128xf32> to vector<2x128xf32>
    %5 = arith.addf %2, %4 : vector<2x128xf32>
    %cst_5 = arith.constant 0.000000e+00 : f32
    %6 = vector.broadcast %cst_5 : f32 to vector<2x128xf32>
    %7 = arith.maximumf %5, %6 : vector<2x128xf32>
    %8 = arith.truncf %7 : vector<2x128xf32> to vector<2x128xbf16>
    %c0_6 = arith.constant 0 : index
    %c0_7 = arith.constant 0 : index
    %9 = vector.load %arg3[%c0_6, %c0_7] : memref<128x128xbf16, #tpu.memory_space<vmem>>, vector<128x128xbf16>
    %cst_8 = arith.constant dense<0.000000e+00> : vector<2x128xf32>
    %10 = tpu.matmul %8, %9, %cst_8 {dimension_numbers = #tpu.dot_dimension_numbers<[1], [0], [0], [1], [0, 0, 1, 1], [], []>} : vector<2x128xbf16>, vector<128x128xbf16>, vector<2x128xf32> -> vector<2x128xf32>
    %c0_9 = arith.constant 0 : index
    %c0_10 = arith.constant 0 : index
    %11 = vector.load %arg4[%c0_9, %c0_10] : memref<1x128xf32, #tpu.memory_space<vmem>>, vector<1x128xf32>
    %12 = vector.broadcast %11 : vector<1x128xf32> to vector<2x128xf32>
    %13 = arith.addf %10, %12 : vector<2x128xf32>
    %cst_11 = arith.constant 0.000000e+00 : f32
    %14 = vector.broadcast %cst_11 : f32 to vector<2x128xf32>
    %15 = arith.maximumf %13, %14 : vector<2x128xf32>
    %16 = arith.truncf %15 : vector<2x128xf32> to vector<2x128xbf16>
    %c0_12 = arith.constant 0 : index
    %c0_13 = arith.constant 0 : index
    %17 = vector.load %arg5[%c0_12, %c0_13] : memref<128x128xbf16, #tpu.memory_space<vmem>>, vector<128x128xbf16>
    %cst_14 = arith.constant dense<0.000000e+00> : vector<2x128xf32>
    %18 = tpu.matmul %16, %17, %cst_14 {dimension_numbers = #tpu.dot_dimension_numbers<[1], [0], [0], [1], [0, 0, 1, 1], [], []>} : vector<2x128xbf16>, vector<128x128xbf16>, vector<2x128xf32> -> vector<2x128xf32>
    %c0_15 = arith.constant 0 : index
    %c0_16 = arith.constant 0 : index
    %19 = vector.load %arg6[%c0_15, %c0_16] : memref<1x128xf32, #tpu.memory_space<vmem>>, vector<1x128xf32>
    %20 = vector.broadcast %19 : vector<1x128xf32> to vector<2x128xf32>
    %21 = arith.addf %18, %20 : vector<2x128xf32>
    %c0_17 = arith.constant 0 : index
    %c0_18 = arith.constant 0 : index
    %22 = vector.load %arg7[%c0_17, %c0_18] : memref<2x128xf32, #tpu.memory_space<vmem>>, vector<2x128xf32>
    tpu.vector_store %arg7[%c0_17, %c0_18], %21 {strides = array<i32>} : memref<2x128xf32, #tpu.memory_space<vmem>>, vector<2x128xf32>,
    return
  }
}

</mosaic_0001>

<bundles_post_ra>
// kernel: simplenet_forward.3
= control target key start
LH: loop header
LB: loop body
LE: loop exit
PB: predicated region body
PF: predicated region fallthrough
CT: control target
= control target key end

     0   :  { %v3704_v0 = vmov 0.0   ;;  %vm3705_vm0 = vmmov 0   ;;  %vm318_vm1 = vcmask 1044480   ;;  %vm319_vm2 = vcmask 1045504   ;;  %s4810_s4 = inlined_call_operand.vmem [shape: bf16[75,128], index: 4, kind: input, shape index: {}]   ;;  %s4811_s0 = inlined_call_operand.vmem [shape: bf16[392,75], index: 0, kind: input, shape index: {}]   ;;  %s4812_s1 = inlined_call_operand.vmem [shape: bf16[392,75], index: 1, kind: input, shape index: {}]   ;;  %s4813_s2 = inlined_call_operand.vmem [shape: bf16[392,75], index: 2, kind: input, shape index: {}]   ;;  %s4814_s3 = inlined_call_operand.vmem [shape: bf16[392,75], index: 3, kind: input, shape index: {}]   ;;  %s4815_s5 = inlined_call_operand.vmem [shape: f32[1,128], index: 5, kind: input, shape index: {}]   ;;  %s4816_s6 = inlined_call_operand.vmem [shape: bf16[392,128], index: 6, kind: output, shape index: {}]  }
   0x1   :  { %3154 = vmatprep.subr.bf16.mxu0 %v3704_v0  ;;  %3264 = vmatprep.subr.bf16.mxu1 %v3704_v0  ;;  %v3597_v1 = vld [vmem:[%s4810_s4] sm:$0xff]   ;;  %v3598_v2 = vld [vmem:[%s4810_s4 + $0x8] sm:$0xff]   ;;  %v3599_v3 = vld [vmem:[%s4810_s4 + $0x10] sm:$0xff]   ;;  %v3706_v4 = vmov 65535   ;;  %vm242_vm3 = vcmask 613376  }
   0x2   :  { %3155 = vmatpush3.bf16.msra.mxu0 %v3597_v1  ;;  %3265 = vmatpush3.bf16.msra.mxu1 %v3597_v1  ;;  %v320_v5 = vsel %vm318_vm1, 4294967295, %v3706_v4  ;;  %v3600_v6 = vld [vmem:[%s4810_s4 + $0x18] sm:$0xff]   ;;  %v3601_v7 = vld [vmem:[%s4810_s4 + $0x20] sm:$0x3f]   ;;  %v3604_v12 = vld [vmem:[%s4811_s0 + $0x8] sm:$0xff]  }
   0x3   :  { %3156 = vmatprep.subr.bf16.mxu0 %v3704_v0  ;;  %3266 = vmatprep.subr.bf16.mxu1 %v3704_v0  ;;  %v321_v8 = vsel %vm319_vm2, %v320_v5, 0  ;;  %v3602_v10 = vld [vmem:[%s4811_s0] sm:$0xff]   ;;  %v3605_v13 = vld [vmem:[%s4812_s1 + $0x8] sm:$0xff]   ;;  %v3606_v14 = vld [vmem:[%s4811_s0 + $0x10] sm:$0xff]  }
   0x4   :  { %3164 = vmatprep.mubr.msk.bf16.mxu0 %vm3705_vm0, %v3704_v0  ;;  %3274 = vmatprep.mubr.msk.bf16.mxu1 %vm3705_vm0, %v3704_v0  ;;  %v323_v9 = vand.u32 %v3601_v7, %v321_v8  ;;  %v3603_v11 = vld [vmem:[%s4812_s1] sm:$0xff]   ;;  %v3607_v15 = vld [vmem:[%s4812_s1 + $0x10] sm:$0xff]   ;;  %v3608_v16 = vld [vmem:[%s4811_s0 + $0x18] sm:$0xff]  }
   0x5   :  { %v3609_v17 = vld [vmem:[%s4812_s1 + $0x18] sm:$0xff]   ;;  %v3610_v18 = vld [vmem:[%s4811_s0 + $0x20] sm:$0xff]   ;;  %v3612_v20 = vld [vmem:[%s4811_s0 + $0x28] sm:$0xff]  }
   0x6   :  { %3157 = vmatpush3.bf16.msra.mxu0 %v3598_v2  ;;  %3267 = vmatpush3.bf16.msra.mxu1 %v3598_v2  ;;  %v3611_v19 = vld [vmem:[%s4812_s1 + $0x20] sm:$0xff]   ;;  %v3613_v21 = vld [vmem:[%s4812_s1 + $0x28] sm:$0xff]   ;;  %v3614_v22 = vld [vmem:[%s4811_s0 + $0x30] sm:$0xff]  }
   0x7   :  { %3158 = vmatprep.subr.bf16.mxu0 %v3704_v0  ;;  %3268 = vmatprep.subr.bf16.mxu1 %v3704_v0  ;;  %v3615_v23 = vld [vmem:[%s4812_s1 + $0x30] sm:$0xff]   ;;  %v3616_v24 = vld [vmem:[%s4811_s0 + $0x38] sm:$0xff]   ;;  %v3618_v26 = vld [vmem:[%s4811_s0 + $0x40] sm:$0xff]  }
   0x8   :  { %v3617_v25 = vld [vmem:[%s4812_s1 + $0x38] sm:$0xff]   ;;  %v3619_v27 = vld [vmem:[%s4812_s1 + $0x40] sm:$0xff]   ;;  %v3620_v28 = vld [vmem:[%s4811_s0 + $0x48] sm:$0xff]  }
   0x9   :  { %v3621_v29 = vld [vmem:[%s4812_s1 + $0x48] sm:$0xff]   ;;  %v3622_v30 = vld [vmem:[%s4811_s0 + $0x50] sm:$0xff]   ;;  %v3624_v32 = vld [vmem:[%s4811_s0 + $0x58] sm:$0xff]  }
   0xa   :  { %3159 = vmatpush3.bf16.msra.mxu0 %v3599_v3  ;;  %3269 = vmatpush3.bf16.msra.mxu1 %v3599_v3  ;;  %v3623_v31 = vld [vmem:[%s4812_s1 + $0x50] sm:$0xff]   ;;  %v3625_v33 = vld [vmem:[%s4812_s1 + $0x58] sm:$0xff]   ;;  %v3626_v34 = vld [vmem:[%s4811_s0 + $0x60] sm:$0xff]  }
   0xb   :  { %3160 = vmatprep.subr.bf16.mxu0 %v3704_v0  ;;  %3270 = vmatprep.subr.bf16.mxu1 %v3704_v0  ;;  %v3627_v35 = vld [vmem:[%s4812_s1 + $0x60] sm:$0xff]   ;;  %v3628_v36 = vld [vmem:[%s4811_s0 + $0x68] sm:$0xff]   ;;  %v3630_v38 = vld [vmem:[%s4811_s0 + $0x70] sm:$0xff]  }
   0xc   :  { %v3629_v37 = vld [vmem:[%s4812_s1 + $0x68] sm:$0xff]   ;;  %v3631_v39 = vld [vmem:[%s4812_s1 + $0x70] sm:$0xff]   ;;  %v3632_v40 = vld [vmem:[%s4811_s0 + $0x78] sm:$0xff]  }
   0xd   :  { %v3633_v41 = vld [vmem:[%s4812_s1 + $0x78] sm:$0xff]   ;;  %v3634_v42 = vld [vmem:[%s4811_s0 + $0x80] sm:$0xff]   ;;  %v3636_v44 = vld [vmem:[%s4811_s0 + $0x88] sm:$0xff]  }
   0xe   :  { %3161 = vmatpush3.bf16.msra.mxu0 %v3600_v6  ;;  %3271 = vmatpush3.bf16.msra.mxu1 %v3600_v6  ;;  %v3635_v43 = vld [vmem:[%s4812_s1 + $0x80] sm:$0xff]   ;;  %v3637_v45 = vld [vmem:[%s4812_s1 + $0x88] sm:$0xff]   ;;  %v3638_v46 = vld [vmem:[%s4811_s0 + $0x90] sm:$0xff]  }
   0xf   :  { %3162 = vmatprep.subr.bf16.mxu0 %v3704_v0  ;;  %3272 = vmatprep.subr.bf16.mxu1 %v3704_v0  ;;  %v3639_v47 = vld [vmem:[%s4812_s1 + $0x90] sm:$0xff]   ;;  %v3640_v48 = vld [vmem:[%s4811_s0 + $0x98] sm:$0xff]   ;;  %v3642_v50 = vld [vmem:[%s4811_s0 + $0xa0] sm:$0xff]  }
  0x10   :  { %v3641_v49 = vld [vmem:[%s4812_s1 + $0x98] sm:$0xff]   ;;  %v3643_v51 = vld [vmem:[%s4812_s1 + $0xa0] sm:$0xff]   ;;  %v3644_v52 = vld [vmem:[%s4811_s0 + $0xa8] sm:$0xff]  }
  0x11   :  { %v3645_v53 = vld [vmem:[%s4812_s1 + $0xa8] sm:$0xff]   ;;  %v3646_v54 = vld [vmem:[%s4811_s0 + $0xb0] sm:$0xff]   ;;  %v3648_v56 = vld [vmem:[%s4811_s0 + $0xb8] sm:$0xff]  }
  0x12   :  { %3163 = vmatpush3.bf16.msra.mxu0 %v323_v9  ;;  %3273 = vmatpush3.bf16.msra.mxu1 %v323_v9  ;;  %v3647_v55 = vld [vmem:[%s4812_s1 + $0xb0] sm:$0xff]   ;;  %v3649_v57 = vld [vmem:[%s4812_s1 + $0xb8] sm:$0xff]   ;;  %v3650_v58 = vld [vmem:[%s4811_s0 + $0xc0] ss:$0 sps:$4 sm:$0xff]  }
  0x13   :  { %3374 = vmatprep.subr.bf16.mxu0 %v3704_v0  ;;  %3484 = vmatprep.subr.bf16.mxu1 %v3704_v0  ;;  %v3651_v59 = vld [vmem:[%s4812_s1 + $0xc0] ss:$0 sps:$4 sm:$0xff]   ;;  %v3654_v62 = vld [vmem:[%s4813_s2 + $0x8] sm:$0xff]   ;;  %v3656_v8 = vld [vmem:[%s4813_s2 + $0x10] sm:$0xff]  }
  0x14   :  { %v3652_v60 = vld [vmem:[%s4813_s2] sm:$0xff]   ;;  %v3655_v63 = vld [vmem:[%s4814_s3 + $0x8] sm:$0xff]  }
  0x15   :  { %3165 = vmatmul.mubr.msk.bf16.vlgmr.msra.gmra.mrb[0].mxu0 %vm242_vm3, %v3602_v10  ;;  %3275 = vmatmul.mubr.msk.bf16.vlgmr.msra.gmra.mrb[0].mxu1 %vm242_vm3, %v3603_v11  ;;  %v3653_v61 = vld [vmem:[%s4814_s3] sm:$0xff]  }
  0x16   :  { %3375 = vmatpush3.bf16.msra.mxu0 %v3597_v1  ;;  %3485 = vmatpush3.bf16.msra.mxu1 %v3597_v1  ;;  %v4104_v1 = vld [vmem:[%s4815_s5] ss:$0 sm:$0xff] }
  0x17   :  { %3168 = vmatprep.mubr.msk.bf16.mxu0 %vm3705_vm0, %v3704_v0  ;;  %3278 = vmatprep.mubr.msk.bf16.mxu1 %vm3705_vm0, %v3704_v0 }
  0x18   :  { %3376 = vmatprep.subr.bf16.mxu0 %v3704_v0  ;;  %3486 = vmatprep.subr.bf16.mxu1 %v3704_v0 }
  0x1a   :  { %3377 = vmatpush3.bf16.msra.mxu0 %v3598_v2  ;;  %3487 = vmatpush3.bf16.msra.mxu1 %v3598_v2 }
  0x1b   :  { %3378 = vmatprep.subr.bf16.mxu0 %v3704_v0  ;;  %3488 = vmatprep.subr.bf16.mxu1 %v3704_v0 }
  0x1d   :  { %3169 = vmatmul.mubr.msk.bf16.gmra.mrb[4].mxu0 %vm242_vm3, %v3604_v12  ;;  %3279 = vmatmul.mubr.msk.bf16.gmra.mrb[4].mxu1 %vm242_vm3, %v3605_v13 }
  0x1e   :  { %3172 = vmatprep.mubr.msk.bf16.mxu0 %vm3705_vm0, %v3704_v0  ;;  %3282 = vmatprep.mubr.msk.bf16.mxu1 %vm3705_vm0, %v3704_v0 }
  0x1f   :  { %3379 = vmatpush3.bf16.msra.mxu0 %v3599_v3  ;;  %3489 = vmatpush3.bf16.msra.mxu1 %v3599_v3 }
  0x20   :  { %3380 = vmatprep.subr.bf16.mxu0 %v3704_v0  ;;  %3490 = vmatprep.subr.bf16.mxu1 %v3704_v0 }
  0x23   :  { %3381 = vmatpush3.bf16.msra.mxu0 %v3600_v6  ;;  %3491 = vmatpush3.bf16.msra.mxu1 %v3600_v6 }
  0x24   :  { %3382 = vmatprep.subr.bf16.mxu0 %v3704_v0  ;;  %3492 = vmatprep.subr.bf16.mxu1 %v3704_v0 }
  0x25   :  { %3173 = vmatmul.mubr.msk.bf16.gmra.mrb[8].mxu0 %vm242_vm3, %v3606_v14  ;;  %3283 = vmatmul.mubr.msk.bf16.gmra.mrb[8].mxu1 %vm242_vm3, %v3607_v15 }
  0x26   :  { %3176 = vmatprep.mubr.msk.bf16.mxu0 %vm3705_vm0, %v3704_v0  ;;  %3286 = vmatprep.mubr.msk.bf16.mxu1 %vm3705_vm0, %v3704_v0 }
  0x27   :  { %3383 = vmatpush3.bf16.msra.mxu0 %v323_v9  ;;  %3493 = vmatpush3.bf16.msra.mxu1 %v323_v9  ;;  %v3657_v9 = vld [vmem:[%s4814_s3 + $0x10] sm:$0xff]  }
  0x2d   :  { %3177 = vmatmul.mubr.msk.bf16.gmra.mrb[12].mxu0 %vm242_vm3, %v3608_v16  ;;  %3287 = vmatmul.mubr.msk.bf16.gmra.mrb[12].mxu1 %vm242_vm3, %v3609_v17 }
  0x2e   :  { %3180 = vmatprep.mubr.msk.bf16.mxu0 %vm3705_vm0, %v3704_v0  ;;  %3290 = vmatprep.mubr.msk.bf16.mxu1 %vm3705_vm0, %v3704_v0 }
  0x35   :  { %3181 = vmatmul.mubr.msk.bf16.gmra.mrb[16].mxu0 %vm242_vm3, %v3610_v18  ;;  %3291 = vmatmul.mubr.msk.bf16.gmra.mrb[16].mxu1 %vm242_vm3, %v3611_v19 }
  0x36   :  { %3184 = vmatprep.mubr.msk.bf16.mxu0 %vm3705_vm0, %v3704_v0  ;;  %3294 = vmatprep.mubr.msk.bf16.mxu1 %vm3705_vm0, %v3704_v0 }
  0x3d   :  { %3185 = vmatmul.mubr.msk.bf16.gmra.mrb[20].mxu0 %vm242_vm3, %v3612_v20  ;;  %3295 = vmatmul.mubr.msk.bf16.gmra.mrb[20].mxu1 %vm242_vm3, %v3613_v21 }
  0x3e   :  { %3188 = vmatprep.mubr.msk.bf16.mxu0 %vm3705_vm0, %v3704_v0  ;;  %3298 = vmatprep.mubr.msk.bf16.mxu1 %vm3705_vm0, %v3704_v0 }
  0x45   :  { %3189 = vmatmul.mubr.msk.bf16.gmra.mrb[24].mxu0 %vm242_vm3, %v3614_v22  ;;  %3299 = vmatmul.mubr.msk.bf16.gmra.mrb[24].mxu1 %vm242_vm3, %v3615_v23 }
  0x46   :  { %3192 = vmatprep.mubr.msk.bf16.mxu0 %vm3705_vm0, %v3704_v0  ;;  %3302 = vmatprep.mubr.msk.bf16.mxu1 %vm3705_vm0, %v3704_v0 }
  0x4d   :  { %3193 = vmatmul.mubr.msk.bf16.gmra.mrb[28].mxu0 %vm242_vm3, %v3616_v24  ;;  %3303 = vmatmul.mubr.msk.bf16.gmra.mrb[28].mxu1 %vm242_vm3, %v3617_v25 }
  0x4e   :  { %3196 = vmatprep.mubr.msk.bf16.mxu0 %vm3705_vm0, %v3704_v0  ;;  %3306 = vmatprep.mubr.msk.bf16.mxu1 %vm3705_vm0, %v3704_v0 }
  0x55   :  { %3197 = vmatmul.mubr.msk.bf16.gmra.mrb[32].mxu0 %vm242_vm3, %v3618_v26  ;;  %3307 = vmatmul.mubr.msk.bf16.gmra.mrb[32].mxu1 %vm242_vm3, %v3619_v27 }
  0x56   :  { %3200 = vmatprep.mubr.msk.bf16.mxu0 %vm3705_vm0, %v3704_v0  ;;  %3310 = vmatprep.mubr.msk.bf16.mxu1 %vm3705_vm0, %v3704_v0 }
  0x5d   :  { %3201 = vmatmul.mubr.msk.bf16.gmra.mrb[36].mxu0 %vm242_vm3, %v3620_v28  ;;  %3311 = vmatmul.mubr.msk.bf16.gmra.mrb[36].mxu1 %vm242_vm3, %v3621_v29  ;;  %v3658_v28 = vld [vmem:[%s4813_s2 + $0x18] sm:$0xff]  }
  0x5e   :  { %3204 = vmatprep.mubr.msk.bf16.mxu0 %vm3705_vm0, %v3704_v0  ;;  %3314 = vmatprep.mubr.msk.bf16.mxu1 %vm3705_vm0, %v3704_v0  ;;  %v3659_v29 = vld [vmem:[%s4814_s3 + $0x18] sm:$0xff]  }
  0x65   :  { %3205 = vmatmul.mubr.msk.bf16.gmra.mrb[40].mxu0 %vm242_vm3, %v3622_v30  ;;  %3315 = vmatmul.mubr.msk.bf16.gmra.mrb[40].mxu1 %vm242_vm3, %v3623_v31 }
  0x66   :  { %3208 = vmatprep.mubr.msk.bf16.mxu0 %vm3705_vm0, %v3704_v0  ;;  %3318 = vmatprep.mubr.msk.bf16.mxu1 %vm3705_vm0, %v3704_v0 }
  0x6d   :  { %3209 = vmatmul.mubr.msk.bf16.gmra.mrb[44].mxu0 %vm242_vm3, %v3624_v32  ;;  %3319 = vmatmul.mubr.msk.bf16.gmra.mrb[44].mxu1 %vm242_vm3, %v3625_v33 }
  0x6e   :  { %3212 = vmatprep.mubr.msk.bf16.mxu0 %vm3705_vm0, %v3704_v0  ;;  %3322 = vmatprep.mubr.msk.bf16.mxu1 %vm3705_vm0, %v3704_v0 }
  0x75   :  { %3213 = vmatmul.mubr.msk.bf16.gmra.mrb[48].mxu0 %vm242_vm3, %v3626_v34  ;;  %3323 = vmatmul.mubr.msk.bf16.gmra.mrb[48].mxu1 %vm242_vm3, %v3627_v35 }
  0x76   :  { %3216 = vmatprep.mubr.msk.bf16.mxu0 %vm3705_vm0, %v3704_v0  ;;  %3326 = vmatprep.mubr.msk.bf16.mxu1 %vm3705_vm0, %v3704_v0 }
  0x7d   :  { %3217 = vmatmul.mubr.msk.bf16.gmra.mrb[52].mxu0 %vm242_vm3, %v3628_v36  ;;  %3327 = vmatmul.mubr.msk.bf16.gmra.mrb[52].mxu1 %vm242_vm3, %v3629_v37 }
  0x7e   :  { %3220 = vmatprep.mubr.msk.bf16.mxu0 %vm3705_vm0, %v3704_v0  ;;  %3330 = vmatprep.mubr.msk.bf16.mxu1 %vm3705_vm0, %v3704_v0 }
  0x85   :  { %3221 = vmatmul.mubr.msk.bf16.gmra.mrb[56].mxu0 %vm242_vm3, %v3630_v38  ;;  %3331 = vmatmul.mubr.msk.bf16.gmra.mrb[56].mxu1 %vm242_vm3, %v3631_v39 }
  0x86   :  { %3224 = vmatprep.mubr.msk.bf16.mxu0 %vm3705_vm0, %v3704_v0  ;;  %3334 = vmatprep.mubr.msk.bf16.mxu1 %vm3705_vm0, %v3704_v0 }
  0x8d   :  { %3225 = vmatmul.mubr.msk.bf16.gmra.mrb[60].mxu0 %vm242_vm3, %v3632_v40  ;;  %3335 = vmatmul.mubr.msk.bf16.gmra.mrb[60].mxu1 %vm242_vm3, %v3633_v41 }
  0x8e   :  { %3228 = vmatprep.mubr.msk.bf16.mxu0 %vm3705_vm0, %v3704_v0  ;;  %3338 = vmatprep.mubr.msk.bf16.mxu1 %vm3705_vm0, %v3704_v0 }
  0x95   :  { %3229 = vmatmul.mubr.msk.bf16.gmra.mrb[64].mxu0 %vm242_vm3, %v3634_v42  ;;  %3339 = vmatmul.mubr.msk.bf16.gmra.mrb[64].mxu1 %vm242_vm3, %v3635_v43 }
  0x96   :  { %3232 = vmatprep.mubr.msk.bf16.mxu0 %vm3705_vm0, %v3704_v0  ;;  %3342 = vmatprep.mubr.msk.bf16.mxu1 %vm3705_vm0, %v3704_v0 }
  0x9d   :  { %3233 = vmatmul.mubr.msk.bf16.gmra.mrb[68].mxu0 %vm242_vm3, %v3636_v44  ;;  %3343 = vmatmul.mubr.msk.bf16.gmra.mrb[68].mxu1 %vm242_vm3, %v3637_v45 }
  0x9e   :  { %3236 = vmatprep.mubr.msk.bf16.mxu0 %vm3705_vm0, %v3704_v0  ;;  %3346 = vmatprep.mubr.msk.bf16.mxu1 %vm3705_vm0, %v3704_v0 }
  0xa5   :  { %3237 = vmatmul.mubr.msk.bf16.gmra.mrb[72].mxu0 %vm242_vm3, %v3638_v46  ;;  %3347 = vmatmul.mubr.msk.bf16.gmra.mrb[72].mxu1 %vm242_vm3, %v3639_v47 }
  0xa6   :  { %3240 = vmatprep.mubr.msk.bf16.mxu0 %vm3705_vm0, %v3704_v0  ;;  %3350 = vmatprep.mubr.msk.bf16.mxu1 %vm3705_vm0, %v3704_v0 }
  0xad   :  { %3241 = vmatmul.mubr.msk.bf16.gmra.mrb[76].mxu0 %vm242_vm3, %v3640_v48  ;;  %3351 = vmatmul.mubr.msk.bf16.gmra.mrb[76].mxu1 %vm242_vm3, %v3641_v49  ;;  %v3660_v48 = vld [vmem:[%s4813_s2 + $0x20] sm:$0xff]  }
  0xae   :  { %3244 = vmatprep.mubr.msk.bf16.mxu0 %vm3705_vm0, %v3704_v0  ;;  %3354 = vmatprep.mubr.msk.bf16.mxu1 %vm3705_vm0, %v3704_v0  ;;  %v3661_v49 = vld [vmem:[%s4814_s3 + $0x20] sm:$0xff]  }
  0xb5   :  { %3245 = vmatmul.mubr.msk.bf16.gmra.mrb[80].mxu0 %vm242_vm3, %v3642_v50  ;;  %3355 = vmatmul.mubr.msk.bf16.gmra.mrb[80].mxu1 %vm242_vm3, %v3643_v51 }
  0xb6   :  { %3248 = vmatprep.mubr.msk.bf16.mxu0 %vm3705_vm0, %v3704_v0  ;;  %3358 = vmatprep.mubr.msk.bf16.mxu1 %vm3705_vm0, %v3704_v0 }
  0xbd   :  { %3249 = vmatmul.mubr.msk.bf16.gmra.mrb[84].mxu0 %vm242_vm3, %v3644_v52  ;;  %3359 = vmatmul.mubr.msk.bf16.gmra.mrb[84].mxu1 %vm242_vm3, %v3645_v53 }
  0xbe   :  { %3252 = vmatprep.mubr.msk.bf16.mxu0 %vm3705_vm0, %v3704_v0  ;;  %3362 = vmatprep.mubr.msk.bf16.mxu1 %vm3705_vm0, %v3704_v0 }
  0xc5   :  { %3253 = vmatmul.mubr.msk.bf16.gmra.mrb[88].mxu0 %vm242_vm3, %v3646_v54  ;;  %3363 = vmatmul.mubr.msk.bf16.gmra.mrb[88].mxu1 %vm242_vm3, %v3647_v55 }
  0xc6   :  { %3256 = vmatprep.mubr.msk.bf16.mxu0 %vm3705_vm0, %v3704_v0  ;;  %3366 = vmatprep.mubr.msk.bf16.mxu1 %vm3705_vm0, %v3704_v0 }
  0xcd   :  { %3257 = vmatmul.mubr.msk.bf16.gmra.mrb[92].mxu0 %vm242_vm3, %v3648_v56  ;;  %3367 = vmatmul.mubr.msk.bf16.gmra.mrb[92].mxu1 %vm242_vm3, %v3649_v57 }
  0xce   :  { %3260 = vmatprep.mubr.msk.bf16.mxu0 %vm3705_vm0, %v3704_v0  ;;  %3370 = vmatprep.mubr.msk.bf16.mxu1 %vm3705_vm0, %v3704_v0 }
  0xd5   :  { %3261 = vmatmul.mubr.msk.bf16.gmra.mrb[96].mxu0 %vm242_vm3, %v3650_v58  ;;  %3371 = vmatmul.mubr.msk.bf16.gmra.mrb[96].mxu1 %vm242_vm3, %v3651_v59 }
  0xd6   :  { %3384 = vmatprep.mubr.msk.bf16.mxu0 %vm3705_vm0, %v3704_v0  ;;  %3494 = vmatprep.mubr.msk.bf16.mxu1 %vm3705_vm0, %v3704_v0 }
  0xdd   :  { %3385 = vmatmul.mubr.msk.bf16.vlgmr.msra.gmra.mrb[100].mxu0 %vm242_vm3, %v3652_v60  ;;  %3495 = vmatmul.mubr.msk.bf16.vlgmr.msra.gmra.mrb[100].mxu1 %vm242_vm3, %v3653_v61 }
  0xde   :  { %3388 = vmatprep.mubr.msk.bf16.mxu0 %vm3705_vm0, %v3704_v0  ;;  %3498 = vmatprep.mubr.msk.bf16.mxu1 %vm3705_vm0, %v3704_v0 }
  0xe5   :  { %3389 = vmatmul.mubr.msk.bf16.gmra.mrb[104].mxu0 %vm242_vm3, %v3654_v62  ;;  %3499 = vmatmul.mubr.msk.bf16.gmra.mrb[104].mxu1 %vm242_vm3, %v3655_v63 }
  0xe6   :  { %3392 = vmatprep.mubr.msk.bf16.mxu0 %vm3705_vm0, %v3704_v0  ;;  %3502 = vmatprep.mubr.msk.bf16.mxu1 %vm3705_vm0, %v3704_v0 }
  0xe8   :  { %v359_v2 = vpop.f32.mrb[0].mxu0  ;;  %v887_v3 = vpop.f32.mrb[0].mxu1 }
  0xe9   :  { %v360_v4 = vadd.f32 %v4104_v1, %v359_v2  ;;  %v888_v5 = vadd.f32 %v4104_v1, %v887_v3  ;;  %v3166_v6 = vpop.f32.mrb[1].mxu0  ;;  %v3276_v7 = vpop.f32.mrb[1].mxu1 }
  0xea   :  { %v362_v10 = vpop.f32.mrb[2].mxu0  ;;  %v890_v11 = vpop.f32.mrb[2].mxu1  ;;  %v3662_v6 = vld [vmem:[%s4813_s2 + $0x28] sm:$0xff]  }
  0xeb   :  { %v557_v12 = vmax.f32 %v360_v4, 0.0  ;;  %v1085_v13 = vmax.f32 %v888_v5, 0.0  ;;  %v363_v14 = vadd.f32 %v4104_v1, %v362_v10  ;;  %v891_v15 = vadd.f32 %v4104_v1, %v890_v11  ;;  %v3167_v16 = vpop.f32.mrb[3].mxu0  ;;  %v3277_v17 = vpop.f32.mrb[3].mxu1  ;;  %v3663_v7 = vld [vmem:[%s4814_s3 + $0x28] sm:$0xff]  }
  0xed   :  { %v4120_v18 = vmax.f32 %v557_v12, %v1085_v13  ;;  %v558_v19 = vmax.f32 %v363_v14, 0.0  ;;  %v1086_v20 = vmax.f32 %v891_v15, 0.0  ;;  %3393 = vmatmul.mubr.msk.bf16.gmra.mrb[108].mxu0 %vm242_vm3, %v3656_v8  ;;  %3503 = vmatmul.mubr.msk.bf16.gmra.mrb[108].mxu1 %vm242_vm3, %v3657_v9 }
  0xee   :  { %3396 = vmatprep.mubr.msk.bf16.mxu0 %vm3705_vm0, %v3704_v0  ;;  %3506 = vmatprep.mubr.msk.bf16.mxu1 %vm3705_vm0, %v3704_v0 }
  0xef   :  { %v4128_v21 = vmax.f32 %v558_v19, %v1086_v20 }
  0xf0   :  { %v367_v22 = vpop.f32.mrb[4].mxu0  ;;  %v895_v23 = vpop.f32.mrb[4].mxu1 }
  0xf1   :  { %v368_v24 = vadd.f32 %v4104_v1, %v367_v22  ;;  %v896_v25 = vadd.f32 %v4104_v1, %v895_v23  ;;  %v3170_v26 = vpop.f32.mrb[5].mxu0  ;;  %v3280_v27 = vpop.f32.mrb[5].mxu1 }
  0xf2   :  { %v370_v30 = vpop.f32.mrb[6].mxu0  ;;  %v898_v31 = vpop.f32.mrb[6].mxu1 }
  0xf3   :  { %v559_v32 = vmax.f32 %v368_v24, 0.0  ;;  %v1087_v33 = vmax.f32 %v896_v25, 0.0  ;;  %v371_v34 = vadd.f32 %v4104_v1, %v370_v30  ;;  %v899_v35 = vadd.f32 %v4104_v1, %v898_v31  ;;  %v3171_v36 = vpop.f32.mrb[7].mxu0  ;;  %v3281_v37 = vpop.f32.mrb[7].mxu1 }
  0xf5   :  { %v4140_v38 = vmax.f32 %v559_v32, %v1087_v33  ;;  %v560_v39 = vmax.f32 %v371_v34, 0.0  ;;  %v1088_v40 = vmax.f32 %v899_v35, 0.0  ;;  %3397 = vmatmul.mubr.msk.bf16.gmra.mrb[112].mxu0 %vm242_vm3, %v3658_v28  ;;  %3507 = vmatmul.mubr.msk.bf16.gmra.mrb[112].mxu1 %vm242_vm3, %v3659_v29  ;;  %v3664_v28 = vld [vmem:[%s4813_s2 + $0x30] sm:$0xff]  }
  0xf6   :  { %3400 = vmatprep.mubr.msk.bf16.mxu0 %vm3705_vm0, %v3704_v0  ;;  %3510 = vmatprep.mubr.msk.bf16.mxu1 %vm3705_vm0, %v3704_v0  ;;  %v3665_v29 = vld [vmem:[%s4814_s3 + $0x30] sm:$0xff]  }
  0xf7   :  { %v4148_v41 = vmax.f32 %v560_v39, %v1088_v40 }
  0xf8   :  { %v375_v42 = vpop.f32.mrb[8].mxu0  ;;  %v903_v43 = vpop.f32.mrb[8].mxu1 }
  0xf9   :  { %v376_v44 = vadd.f32 %v4104_v1, %v375_v42  ;;  %v904_v45 = vadd.f32 %v4104_v1, %v903_v43  ;;  %v3174_v46 = vpop.f32.mrb[9].mxu0  ;;  %v3284_v47 = vpop.f32.mrb[9].mxu1 }
  0xfa   :  { %v378_v50 = vpop.f32.mrb[10].mxu0  ;;  %v906_v51 = vpop.f32.mrb[10].mxu1 }
  0xfb   :  { %v561_v52 = vmax.f32 %v376_v44, 0.0  ;;  %v1089_v53 = vmax.f32 %v904_v45, 0.0  ;;  %v379_v54 = vadd.f32 %v4104_v1, %v378_v50  ;;  %v907_v55 = vadd.f32 %v4104_v1, %v906_v51  ;;  %v3175_v56 = vpop.f32.mrb[11].mxu0  ;;  %v3285_v57 = vpop.f32.mrb[11].mxu1  ;;  %v3666_v50 = vld [vmem:[%s4813_s2 + $0x38] sm:$0xff]  }
  0xfc   :  { %v3667_v51 = vld [vmem:[%s4814_s3 + $0x38] sm:$0xff]  }
  0xfd   :  { %v4160_v58 = vmax.f32 %v561_v52, %v1089_v53  ;;  %v562_v59 = vmax.f32 %v379_v54, 0.0  ;;  %v1090_v60 = vmax.f32 %v907_v55, 0.0  ;;  %3401 = vmatmul.mubr.msk.bf16.gmra.mrb[116].mxu0 %vm242_vm3, %v3660_v48  ;;  %3511 = vmatmul.mubr.msk.bf16.gmra.mrb[116].mxu1 %vm242_vm3, %v3661_v49 }
  0xfe   :  { %3404 = vmatprep.mubr.msk.bf16.mxu0 %vm3705_vm0, %v3704_v0  ;;  %3514 = vmatprep.mubr.msk.bf16.mxu1 %vm3705_vm0, %v3704_v0 }
  0xff   :  { %v4168_v61 = vmax.f32 %v562_v59, %v1090_v60 }
 0x100   :  { %v383_v62 = vpop.f32.mrb[12].mxu0  ;;  %v911_v63 = vpop.f32.mrb[12].mxu1 }
 0x101   :  { %v384_v2 = vadd.f32 %v4104_v1, %v383_v62  ;;  %v912_v3 = vadd.f32 %v4104_v1, %v911_v63  ;;  %v3178_v4 = vpop.f32.mrb[13].mxu0  ;;  %v3288_v5 = vpop.f32.mrb[13].mxu1 }
 0x102   :  { %v386_v8 = vpop.f32.mrb[14].mxu0  ;;  %v914_v9 = vpop.f32.mrb[14].mxu1 }
 0x103   :  { %v563_v10 = vmax.f32 %v384_v2, 0.0  ;;  %v1091_v11 = vmax.f32 %v912_v3, 0.0  ;;  %v387_v12 = vadd.f32 %v4104_v1, %v386_v8  ;;  %v915_v13 = vadd.f32 %v4104_v1, %v914_v9  ;;  %v3179_v14 = vpop.f32.mrb[15].mxu0  ;;  %v3289_v15 = vpop.f32.mrb[15].mxu1 }
 0x105   :  { %v4180_v16 = vmax.f32 %v563_v10, %v1091_v11  ;;  %v564_v17 = vmax.f32 %v387_v12, 0.0  ;;  %v1092_v19 = vmax.f32 %v915_v13, 0.0  ;;  %3405 = vmatmul.mubr.msk.bf16.gmra.mrb[120].mxu0 %vm242_vm3, %v3662_v6  ;;  %3515 = vmatmul.mubr.msk.bf16.gmra.mrb[120].mxu1 %vm242_vm3, %v3663_v7  ;;  %v3668_v10 = vld [vmem:[%s4813_s2 + $0x40] sm:$0xff]  }
 0x106   :  { %3408 = vmatprep.mubr.msk.bf16.mxu0 %vm3705_vm0, %v3704_v0  ;;  %3518 = vmatprep.mubr.msk.bf16.mxu1 %vm3705_vm0, %v3704_v0  ;;  %v3669_v11 = vld [vmem:[%s4814_s3 + $0x40] sm:$0xff]  }
 0x107   :  { %v4188_v20 = vmax.f32 %v564_v17, %v1092_v19 }
 0x108   :  { %v391_v22 = vpop.f32.mrb[16].mxu0  ;;  %v919_v23 = vpop.f32.mrb[16].mxu1 }
 0x109   :  { %v392_v24 = vadd.f32 %v4104_v1, %v391_v22  ;;  %v920_v25 = vadd.f32 %v4104_v1, %v919_v23  ;;  %v3182_v26 = vpop.f32.mrb[17].mxu0  ;;  %v3292_v27 = vpop.f32.mrb[17].mxu1 }
 0x10a   :  { %v394_v30 = vpop.f32.mrb[18].mxu0  ;;  %v922_v31 = vpop.f32.mrb[18].mxu1 }
 0x10b   :  { %v565_v32 = vmax.f32 %v392_v24, 0.0  ;;  %v1093_v33 = vmax.f32 %v920_v25, 0.0  ;;  %v395_v34 = vadd.f32 %v4104_v1, %v394_v30  ;;  %v923_v35 = vadd.f32 %v4104_v1, %v922_v31  ;;  %v3183_v36 = vpop.f32.mrb[19].mxu0  ;;  %v3293_v37 = vpop.f32.mrb[19].mxu1 }
 0x10d   :  { %v4200_v39 = vmax.f32 %v565_v32, %v1093_v33  ;;  %v566_v40 = vmax.f32 %v395_v34, 0.0  ;;  %v1094_v42 = vmax.f32 %v923_v35, 0.0  ;;  %3409 = vmatmul.mubr.msk.bf16.gmra.mrb[124].mxu0 %vm242_vm3, %v3664_v28  ;;  %3519 = vmatmul.mubr.msk.bf16.gmra.mrb[124].mxu1 %vm242_vm3, %v3665_v29  ;;  %v3670_v34 = vld [vmem:[%s4813_s2 + $0x48] sm:$0xff]  }
 0x10e   :  { %3412 = vmatprep.mubr.msk.bf16.mxu0 %vm3705_vm0, %v3704_v0  ;;  %3522 = vmatprep.mubr.msk.bf16.mxu1 %vm3705_vm0, %v3704_v0  ;;  %v3671_v35 = vld [vmem:[%s4814_s3 + $0x48] sm:$0xff]  }
 0x10f   :  { %v4208_v43 = vmax.f32 %v566_v40, %v1094_v42 }
 0x110   :  { %v399_v44 = vpop.f32.mrb[20].mxu0  ;;  %v927_v45 = vpop.f32.mrb[20].mxu1 }
 0x111   :  { %v400_v46 = vadd.f32 %v4104_v1, %v399_v44  ;;  %v928_v47 = vadd.f32 %v4104_v1, %v927_v45  ;;  %v3186_v48 = vpop.f32.mrb[21].mxu0  ;;  %v3296_v49 = vpop.f32.mrb[21].mxu1 }
 0x112   :  { %v402_v52 = vpop.f32.mrb[22].mxu0  ;;  %v930_v53 = vpop.f32.mrb[22].mxu1 }
 0x113   :  { %v567_v54 = vmax.f32 %v400_v46, 0.0  ;;  %v1095_v55 = vmax.f32 %v928_v47, 0.0  ;;  %v403_v56 = vadd.f32 %v4104_v1, %v402_v52  ;;  %v931_v57 = vadd.f32 %v4104_v1, %v930_v53  ;;  %v3187_v59 = vpop.f32.mrb[23].mxu0  ;;  %v3297_v60 = vpop.f32.mrb[23].mxu1 }
 0x114   :  { %v3672_v59 = vld [vmem:[%s4813_s2 + $0x50] sm:$0xff]  }
 0x115   :  { %v4220_v62 = vmax.f32 %v567_v54, %v1095_v55  ;;  %v568_v63 = vmax.f32 %v403_v56, 0.0  ;;  %v1096_v2 = vmax.f32 %v931_v57, 0.0  ;;  %3413 = vmatmul.mubr.msk.bf16.gmra.mrb[128].mxu0 %vm242_vm3, %v3666_v50  ;;  %3523 = vmatmul.mubr.msk.bf16.gmra.mrb[128].mxu1 %vm242_vm3, %v3667_v51  ;;  %v3673_v60 = vld [vmem:[%s4814_s3 + $0x50] sm:$0xff]  }
 0x116   :  { %3416 = vmatprep.mubr.msk.bf16.mxu0 %vm3705_vm0, %v3704_v0  ;;  %3526 = vmatprep.mubr.msk.bf16.mxu1 %vm3705_vm0, %v3704_v0 }
 0x117   :  { %v4228_v3 = vmax.f32 %v568_v63, %v1096_v2 }
 0x118   :  { %v407_v4 = vpop.f32.mrb[24].mxu0  ;;  %v935_v5 = vpop.f32.mrb[24].mxu1 }
 0x119   :  { %v408_v6 = vadd.f32 %v4104_v1, %v407_v4  ;;  %v936_v7 = vadd.f32 %v4104_v1, %v935_v5  ;;  %v3190_v8 = vpop.f32.mrb[25].mxu0  ;;  %v3300_v9 = vpop.f32.mrb[25].mxu1 }
 0x11a   :  { %v410_v12 = vpop.f32.mrb[26].mxu0  ;;  %v938_v13 = vpop.f32.mrb[26].mxu1 }
 0x11b   :  { %v569_v14 = vmax.f32 %v408_v6, 0.0  ;;  %v1097_v15 = vmax.f32 %v936_v7, 0.0  ;;  %v411_v17 = vadd.f32 %v4104_v1, %v410_v12  ;;  %v939_v19 = vadd.f32 %v4104_v1, %v938_v13  ;;  %v3191_v22 = vpop.f32.mrb[27].mxu0  ;;  %v3301_v23 = vpop.f32.mrb[27].mxu1 }
 0x11d   :  { %v4240_v24 = vmax.f32 %v569_v14, %v1097_v15  ;;  %v570_v25 = vmax.f32 %v411_v17, 0.0  ;;  %v1098_v26 = vmax.f32 %v939_v19, 0.0  ;;  %3417 = vmatmul.mubr.msk.bf16.gmra.mrb[132].mxu0 %vm242_vm3, %v3668_v10  ;;  %3527 = vmatmul.mubr.msk.bf16.gmra.mrb[132].mxu1 %vm242_vm3, %v3669_v11 }
 0x11e   :  { %3420 = vmatprep.mubr.msk.bf16.mxu0 %vm3705_vm0, %v3704_v0  ;;  %3530 = vmatprep.mubr.msk.bf16.mxu1 %vm3705_vm0, %v3704_v0 }
 0x11f   :  { %v4248_v27 = vmax.f32 %v570_v25, %v1098_v26  ;;  %v3674_v25 = vld [vmem:[%s4813_s2 + $0x58] sm:$0xff]  }
 0x120   :  { %v415_v28 = vpop.f32.mrb[28].mxu0  ;;  %v943_v29 = vpop.f32.mrb[28].mxu1  ;;  %v3675_v26 = vld [vmem:[%s4814_s3 + $0x58] sm:$0xff]  }
 0x121   :  { %v416_v30 = vadd.f32 %v4104_v1, %v415_v28  ;;  %v944_v31 = vadd.f32 %v4104_v1, %v943_v29  ;;  %v3194_v32 = vpop.f32.mrb[29].mxu0  ;;  %v3304_v33 = vpop.f32.mrb[29].mxu1 }
 0x122   :  { %v418_v36 = vpop.f32.mrb[30].mxu0  ;;  %v946_v37 = vpop.f32.mrb[30].mxu1 }
 0x123   :  { %v571_v40 = vmax.f32 %v416_v30, 0.0  ;;  %v1099_v42 = vmax.f32 %v944_v31, 0.0  ;;  %v419_v44 = vadd.f32 %v4104_v1, %v418_v36  ;;  %v947_v45 = vadd.f32 %v4104_v1, %v946_v37  ;;  %v3195_v46 = vpop.f32.mrb[31].mxu0  ;;  %v3305_v47 = vpop.f32.mrb[31].mxu1 }
 0x125   :  { %v4260_v48 = vmax.f32 %v571_v40, %v1099_v42  ;;  %v572_v49 = vmax.f32 %v419_v44, 0.0  ;;  %v1100_v50 = vmax.f32 %v947_v45, 0.0  ;;  %3421 = vmatmul.mubr.msk.bf16.gmra.mrb[136].mxu0 %vm242_vm3, %v3670_v34  ;;  %3531 = vmatmul.mubr.msk.bf16.gmra.mrb[136].mxu1 %vm242_vm3, %v3671_v35 }
 0x126   :  { %3424 = vmatprep.mubr.msk.bf16.mxu0 %vm3705_vm0, %v3704_v0  ;;  %3534 = vmatprep.mubr.msk.bf16.mxu1 %vm3705_vm0, %v3704_v0 }
 0x127   :  { %v4268_v51 = vmax.f32 %v572_v49, %v1100_v50 }
 0x128   :  { %v423_v52 = vpop.f32.mrb[32].mxu0  ;;  %v951_v53 = vpop.f32.mrb[32].mxu1 }
 0x129   :  { %v424_v54 = vadd.f32 %v4104_v1, %v423_v52  ;;  %v952_v55 = vadd.f32 %v4104_v1, %v951_v53  ;;  %v3198_v56 = vpop.f32.mrb[33].mxu0  ;;  %v3308_v57 = vpop.f32.mrb[33].mxu1  ;;  %v3676_v52 = vld [vmem:[%s4813_s2 + $0x60] sm:$0xff]  }
 0x12a   :  { %v426_v63 = vpop.f32.mrb[34].mxu0  ;;  %v954_v2 = vpop.f32.mrb[34].mxu1  ;;  %v3677_v53 = vld [vmem:[%s4814_s3 + $0x60] sm:$0xff]  }
 0x12b   :  { %v573_v4 = vmax.f32 %v424_v54, 0.0  ;;  %v1101_v5 = vmax.f32 %v952_v55, 0.0  ;;  %v427_v6 = vadd.f32 %v4104_v1, %v426_v63  ;;  %v955_v7 = vadd.f32 %v4104_v1, %v954_v2  ;;  %v3199_v8 = vpop.f32.mrb[35].mxu0  ;;  %v3309_v9 = vpop.f32.mrb[35].mxu1 }
 0x12d   :  { %v4280_v10 = vmax.f32 %v573_v4, %v1101_v5  ;;  %v574_v11 = vmax.f32 %v427_v6, 0.0  ;;  %v1102_v12 = vmax.f32 %v955_v7, 0.0  ;;  %3425 = vmatmul.mubr.msk.bf16.gmra.mrb[140].mxu0 %vm242_vm3, %v3672_v59  ;;  %3535 = vmatmul.mubr.msk.bf16.gmra.mrb[140].mxu1 %vm242_vm3, %v3673_v60 }
 0x12e   :  { %3428 = vmatprep.mubr.msk.bf16.mxu0 %vm3705_vm0, %v3704_v0  ;;  %3538 = vmatprep.mubr.msk.bf16.mxu1 %vm3705_vm0, %v3704_v0 }
 0x12f   :  { %v4288_v13 = vmax.f32 %v574_v11, %v1102_v12 }
 0x130   :  { %v431_v14 = vpop.f32.mrb[36].mxu0  ;;  %v959_v15 = vpop.f32.mrb[36].mxu1 }
 0x131   :  { %v432_v17 = vadd.f32 %v4104_v1, %v431_v14  ;;  %v960_v19 = vadd.f32 %v4104_v1, %v959_v15  ;;  %v3202_v22 = vpop.f32.mrb[37].mxu0  ;;  %v3312_v23 = vpop.f32.mrb[37].mxu1 }
 0x132   :  { %v434_v28 = vpop.f32.mrb[38].mxu0  ;;  %v962_v29 = vpop.f32.mrb[38].mxu1 }
 0x133   :  { %v575_v30 = vmax.f32 %v432_v17, 0.0  ;;  %v1103_v31 = vmax.f32 %v960_v19, 0.0  ;;  %v435_v32 = vadd.f32 %v4104_v1, %v434_v28  ;;  %v963_v33 = vadd.f32 %v4104_v1, %v962_v29  ;;  %v3203_v34 = vpop.f32.mrb[39].mxu0  ;;  %v3313_v35 = vpop.f32.mrb[39].mxu1  ;;  %v3678_v17 = vld [vmem:[%s4813_s2 + $0x68] sm:$0xff]  }
 0x134   :  { %v3679_v19 = vld [vmem:[%s4814_s3 + $0x68] sm:$0xff]  }
 0x135   :  { %v4300_v36 = vmax.f32 %v575_v30, %v1103_v31  ;;  %v576_v37 = vmax.f32 %v435_v32, 0.0  ;;  %v1104_v40 = vmax.f32 %v963_v33, 0.0  ;;  %3429 = vmatmul.mubr.msk.bf16.gmra.mrb[144].mxu0 %vm242_vm3, %v3674_v25  ;;  %3539 = vmatmul.mubr.msk.bf16.gmra.mrb[144].mxu1 %vm242_vm3, %v3675_v26 }
 0x136   :  { %3432 = vmatprep.mubr.msk.bf16.mxu0 %vm3705_vm0, %v3704_v0  ;;  %3542 = vmatprep.mubr.msk.bf16.mxu1 %vm3705_vm0, %v3704_v0 }
 0x137   :  { %v4308_v42 = vmax.f32 %v576_v37, %v1104_v40 }
 0x138   :  { %v439_v44 = vpop.f32.mrb[40].mxu0  ;;  %v967_v45 = vpop.f32.mrb[40].mxu1 }
 0x139   :  { %v440_v46 = vadd.f32 %v4104_v1, %v439_v44  ;;  %v968_v47 = vadd.f32 %v4104_v1, %v967_v45  ;;  %v3206_v49 = vpop.f32.mrb[41].mxu0  ;;  %v3316_v50 = vpop.f32.mrb[41].mxu1 }
 0x13a   :  { %v442_v54 = vpop.f32.mrb[42].mxu0  ;;  %v970_v55 = vpop.f32.mrb[42].mxu1  ;;  %v3680_v49 = vld [vmem:[%s4813_s2 + $0x70] sm:$0xff]  }
 0x13b   :  { %v577_v56 = vmax.f32 %v440_v46, 0.0  ;;  %v1105_v57 = vmax.f32 %v968_v47, 0.0  ;;  %v443_v59 = vadd.f32 %v4104_v1, %v442_v54  ;;  %v971_v60 = vadd.f32 %v4104_v1, %v970_v55  ;;  %v3207_v63 = vpop.f32.mrb[43].mxu0  ;;  %v3317_v2 = vpop.f32.mrb[43].mxu1  ;;  %v3681_v50 = vld [vmem:[%s4814_s3 + $0x70] sm:$0xff]  }
 0x13d   :  { %v4320_v4 = vmax.f32 %v577_v56, %v1105_v57  ;;  %v578_v5 = vmax.f32 %v443_v59, 0.0  ;;  %v1106_v6 = vmax.f32 %v971_v60, 0.0  ;;  %3433 = vmatmul.mubr.msk.bf16.gmra.mrb[148].mxu0 %vm242_vm3, %v3676_v52  ;;  %3543 = vmatmul.mubr.msk.bf16.gmra.mrb[148].mxu1 %vm242_vm3, %v3677_v53 }
 0x13e   :  { %3436 = vmatprep.mubr.msk.bf16.mxu0 %vm3705_vm0, %v3704_v0  ;;  %3546 = vmatprep.mubr.msk.bf16.mxu1 %vm3705_vm0, %v3704_v0 }
 0x13f   :  { %v4328_v7 = vmax.f32 %v578_v5, %v1106_v6 }
 0x140   :  { %v447_v8 = vpop.f32.mrb[44].mxu0  ;;  %v975_v9 = vpop.f32.mrb[44].mxu1 }
 0x141   :  { %v448_v11 = vadd.f32 %v4104_v1, %v447_v8  ;;  %v976_v12 = vadd.f32 %v4104_v1, %v975_v9  ;;  %v3210_v14 = vpop.f32.mrb[45].mxu0  ;;  %v3320_v15 = vpop.f32.mrb[45].mxu1 }
 0x142   :  { %v450_v22 = vpop.f32.mrb[46].mxu0  ;;  %v978_v23 = vpop.f32.mrb[46].mxu1 }
 0x143   :  { %v579_v25 = vmax.f32 %v448_v11, 0.0  ;;  %v1107_v26 = vmax.f32 %v976_v12, 0.0  ;;  %v451_v28 = vadd.f32 %v4104_v1, %v450_v22  ;;  %v979_v29 = vadd.f32 %v4104_v1, %v978_v23  ;;  %v3211_v30 = vpop.f32.mrb[47].mxu0  ;;  %v3321_v31 = vpop.f32.mrb[47].mxu1 }
 0x145   :  { %v4340_v32 = vmax.f32 %v579_v25, %v1107_v26  ;;  %v580_v33 = vmax.f32 %v451_v28, 0.0  ;;  %v1108_v34 = vmax.f32 %v979_v29, 0.0  ;;  %3437 = vmatmul.mubr.msk.bf16.gmra.mrb[152].mxu0 %vm242_vm3, %v3678_v17  ;;  %3547 = vmatmul.mubr.msk.bf16.gmra.mrb[152].mxu1 %vm242_vm3, %v3679_v19  ;;  %v3682_v17 = vld [vmem:[%s4813_s2 + $0x78] sm:$0xff]  }
 0x146   :  { %3440 = vmatprep.mubr.msk.bf16.mxu0 %vm3705_vm0, %v3704_v0  ;;  %3550 = vmatprep.mubr.msk.bf16.mxu1 %vm3705_vm0, %v3704_v0  ;;  %v3683_v19 = vld [vmem:[%s4814_s3 + $0x78] sm:$0xff]  }
 0x147   :  { %v4348_v35 = vmax.f32 %v580_v33, %v1108_v34 }
 0x148   :  { %v455_v37 = vpop.f32.mrb[48].mxu0  ;;  %v983_v40 = vpop.f32.mrb[48].mxu1 }
 0x149   :  { %v456_v44 = vadd.f32 %v4104_v1, %v455_v37  ;;  %v984_v45 = vadd.f32 %v4104_v1, %v983_v40  ;;  %v3214_v46 = vpop.f32.mrb[49].mxu0  ;;  %v3324_v47 = vpop.f32.mrb[49].mxu1 }
 0x14a   :  { %v458_v52 = vpop.f32.mrb[50].mxu0  ;;  %v986_v53 = vpop.f32.mrb[50].mxu1 }
 0x14b   :  { %v581_v54 = vmax.f32 %v456_v44, 0.0  ;;  %v1109_v55 = vmax.f32 %v984_v45, 0.0  ;;  %v459_v56 = vadd.f32 %v4104_v1, %v458_v52  ;;  %v987_v57 = vadd.f32 %v4104_v1, %v986_v53  ;;  %v3215_v59 = vpop.f32.mrb[51].mxu0  ;;  %v3325_v60 = vpop.f32.mrb[51].mxu1  ;;  %v3684_v52 = vld [vmem:[%s4813_s2 + $0x80] sm:$0xff]  }
 0x14c   :  { %v3685_v53 = vld [vmem:[%s4814_s3 + $0x80] sm:$0xff]  }
 0x14d   :  { %v4360_v63 = vmax.f32 %v581_v54, %v1109_v55  ;;  %v582_v2 = vmax.f32 %v459_v56, 0.0  ;;  %v1110_v5 = vmax.f32 %v987_v57, 0.0  ;;  %3441 = vmatmul.mubr.msk.bf16.gmra.mrb[156].mxu0 %vm242_vm3, %v3680_v49  ;;  %3551 = vmatmul.mubr.msk.bf16.gmra.mrb[156].mxu1 %vm242_vm3, %v3681_v50 }
 0x14e   :  { %3444 = vmatprep.mubr.msk.bf16.mxu0 %vm3705_vm0, %v3704_v0  ;;  %3554 = vmatprep.mubr.msk.bf16.mxu1 %vm3705_vm0, %v3704_v0 }
 0x14f   :  { %v4368_v6 = vmax.f32 %v582_v2, %v1110_v5 }
 0x150   :  { %v463_v8 = vpop.f32.mrb[52].mxu0  ;;  %v991_v9 = vpop.f32.mrb[52].mxu1 }
 0x151   :  { %v464_v11 = vadd.f32 %v4104_v1, %v463_v8  ;;  %v992_v12 = vadd.f32 %v4104_v1, %v991_v9  ;;  %v3218_v14 = vpop.f32.mrb[53].mxu0  ;;  %v3328_v15 = vpop.f32.mrb[53].mxu1 }
 0x152   :  { %v466_v22 = vpop.f32.mrb[54].mxu0  ;;  %v994_v23 = vpop.f32.mrb[54].mxu1 }
 0x153   :  { %v583_v25 = vmax.f32 %v464_v11, 0.0  ;;  %v1111_v26 = vmax.f32 %v992_v12, 0.0  ;;  %v467_v28 = vadd.f32 %v4104_v1, %v466_v22  ;;  %v995_v29 = vadd.f32 %v4104_v1, %v994_v23  ;;  %v3219_v30 = vpop.f32.mrb[55].mxu0  ;;  %v3329_v31 = vpop.f32.mrb[55].mxu1 }
 0x155   :  { %v4380_v33 = vmax.f32 %v583_v25, %v1111_v26  ;;  %v584_v34 = vmax.f32 %v467_v28, 0.0  ;;  %v1112_v37 = vmax.f32 %v995_v29, 0.0  ;;  %3445 = vmatmul.mubr.msk.bf16.gmra.mrb[160].mxu0 %vm242_vm3, %v3682_v17  ;;  %3555 = vmatmul.mubr.msk.bf16.gmra.mrb[160].mxu1 %vm242_vm3, %v3683_v19  ;;  %v3686_v25 = vld [vmem:[%s4813_s2 + $0x88] sm:$0xff]  }
 0x156   :  { %3448 = vmatprep.mubr.msk.bf16.mxu0 %vm3705_vm0, %v3704_v0  ;;  %3558 = vmatprep.mubr.msk.bf16.mxu1 %vm3705_vm0, %v3704_v0  ;;  %v3687_v26 = vld [vmem:[%s4814_s3 + $0x88] sm:$0xff]  }
 0x157   :  { %v4388_v40 = vmax.f32 %v584_v34, %v1112_v37 }
 0x158   :  { %v471_v44 = vpop.f32.mrb[56].mxu0  ;;  %v999_v45 = vpop.f32.mrb[56].mxu1 }
 0x159   :  { %v472_v46 = vadd.f32 %v4104_v1, %v471_v44  ;;  %v1000_v47 = vadd.f32 %v4104_v1, %v999_v45  ;;  %v3222_v49 = vpop.f32.mrb[57].mxu0  ;;  %v3332_v50 = vpop.f32.mrb[57].mxu1 }
 0x15a   :  { %v474_v54 = vpop.f32.mrb[58].mxu0  ;;  %v1002_v55 = vpop.f32.mrb[58].mxu1 }
 0x15b   :  { %v585_v56 = vmax.f32 %v472_v46, 0.0  ;;  %v1113_v57 = vmax.f32 %v1000_v47, 0.0  ;;  %v475_v59 = vadd.f32 %v4104_v1, %v474_v54  ;;  %v1003_v60 = vadd.f32 %v4104_v1, %v1002_v55  ;;  %v3223_v2 = vpop.f32.mrb[59].mxu0  ;;  %v3333_v5 = vpop.f32.mrb[59].mxu1 }
 0x15d   :  { %v4400_v8 = vmax.f32 %v585_v56, %v1113_v57  ;;  %v586_v9 = vmax.f32 %v475_v59, 0.0  ;;  %v1114_v11 = vmax.f32 %v1003_v60, 0.0  ;;  %3449 = vmatmul.mubr.msk.bf16.gmra.mrb[164].mxu0 %vm242_vm3, %v3684_v52  ;;  %3559 = vmatmul.mubr.msk.bf16.gmra.mrb[164].mxu1 %vm242_vm3, %v3685_v53  ;;  %v3688_v59 = vld [vmem:[%s4813_s2 + $0x90] sm:$0xff]  }
 0x15e   :  { %3452 = vmatprep.mubr.msk.bf16.mxu0 %vm3705_vm0, %v3704_v0  ;;  %3562 = vmatprep.mubr.msk.bf16.mxu1 %vm3705_vm0, %v3704_v0  ;;  %v3689_v60 = vld [vmem:[%s4814_s3 + $0x90] sm:$0xff]  }
 0x15f   :  { %v4408_v12 = vmax.f32 %v586_v9, %v1114_v11 }
 0x160   :  { %v479_v14 = vpop.f32.mrb[60].mxu0  ;;  %v1007_v15 = vpop.f32.mrb[60].mxu1 }
 0x161   :  { %v480_v17 = vadd.f32 %v4104_v1, %v479_v14  ;;  %v1008_v19 = vadd.f32 %v4104_v1, %v1007_v15  ;;  %v3226_v22 = vpop.f32.mrb[61].mxu0  ;;  %v3336_v23 = vpop.f32.mrb[61].mxu1 }
 0x162   :  { %v482_v28 = vpop.f32.mrb[62].mxu0  ;;  %v1010_v29 = vpop.f32.mrb[62].mxu1 }
 0x163   :  { %v587_v30 = vmax.f32 %v480_v17, 0.0  ;;  %v1115_v31 = vmax.f32 %v1008_v19, 0.0  ;;  %v483_v34 = vadd.f32 %v4104_v1, %v482_v28  ;;  %v1011_v37 = vadd.f32 %v4104_v1, %v1010_v29  ;;  %v3227_v44 = vpop.f32.mrb[63].mxu0  ;;  %v3337_v45 = vpop.f32.mrb[63].mxu1 }
 0x164   :  { %v3690_v44 = vld [vmem:[%s4813_s2 + $0x98] sm:$0xff]  }
 0x165   :  { %v4420_v46 = vmax.f32 %v587_v30, %v1115_v31  ;;  %v588_v47 = vmax.f32 %v483_v34, 0.0  ;;  %v1116_v49 = vmax.f32 %v1011_v37, 0.0  ;;  %3453 = vmatmul.mubr.msk.bf16.gmra.mrb[168].mxu0 %vm242_vm3, %v3686_v25  ;;  %3563 = vmatmul.mubr.msk.bf16.gmra.mrb[168].mxu1 %vm242_vm3, %v3687_v26  ;;  %v3691_v45 = vld [vmem:[%s4814_s3 + $0x98] sm:$0xff]  }
 0x166   :  { %3456 = vmatprep.mubr.msk.bf16.mxu0 %vm3705_vm0, %v3704_v0  ;;  %3566 = vmatprep.mubr.msk.bf16.mxu1 %vm3705_vm0, %v3704_v0 }
 0x167   :  { %v4428_v50 = vmax.f32 %v588_v47, %v1116_v49 }
 0x168   :  { %v487_v52 = vpop.f32.mrb[64].mxu0  ;;  %v1015_v53 = vpop.f32.mrb[64].mxu1 }
 0x169   :  { %v488_v54 = vadd.f32 %v4104_v1, %v487_v52  ;;  %v1016_v55 = vadd.f32 %v4104_v1, %v1015_v53  ;;  %v3230_v56 = vpop.f32.mrb[65].mxu0  ;;  %v3340_v57 = vpop.f32.mrb[65].mxu1 }
 0x16a   :  { %v490_v2 = vpop.f32.mrb[66].mxu0  ;;  %v1018_v5 = vpop.f32.mrb[66].mxu1 }
 0x16b   :  { %v589_v9 = vmax.f32 %v488_v54, 0.0  ;;  %v1117_v11 = vmax.f32 %v1016_v55, 0.0  ;;  %v491_v14 = vadd.f32 %v4104_v1, %v490_v2  ;;  %v1019_v15 = vadd.f32 %v4104_v1, %v1018_v5  ;;  %v3231_v17 = vpop.f32.mrb[67].mxu0  ;;  %v3341_v19 = vpop.f32.mrb[67].mxu1 }
 0x16d   :  { %v4440_v22 = vmax.f32 %v589_v9, %v1117_v11  ;;  %v590_v23 = vmax.f32 %v491_v14, 0.0  ;;  %v1118_v25 = vmax.f32 %v1019_v15, 0.0  ;;  %3457 = vmatmul.mubr.msk.bf16.gmra.mrb[172].mxu0 %vm242_vm3, %v3688_v59  ;;  %3567 = vmatmul.mubr.msk.bf16.gmra.mrb[172].mxu1 %vm242_vm3, %v3689_v60 }
 0x16e   :  { %3460 = vmatprep.mubr.msk.bf16.mxu0 %vm3705_vm0, %v3704_v0  ;;  %3570 = vmatprep.mubr.msk.bf16.mxu1 %vm3705_vm0, %v3704_v0 }
 0x16f   :  { %v4448_v26 = vmax.f32 %v590_v23, %v1118_v25  ;;  %v3692_v23 = vld [vmem:[%s4813_s2 + $0xa0] sm:$0xff]  }
 0x170   :  { %v495_v28 = vpop.f32.mrb[68].mxu0  ;;  %v1023_v29 = vpop.f32.mrb[68].mxu1  ;;  %v3693_v25 = vld [vmem:[%s4814_s3 + $0xa0] sm:$0xff]  }
 0x171   :  { %v496_v30 = vadd.f32 %v4104_v1, %v495_v28  ;;  %v1024_v31 = vadd.f32 %v4104_v1, %v1023_v29  ;;  %v3234_v34 = vpop.f32.mrb[69].mxu0  ;;  %v3344_v37 = vpop.f32.mrb[69].mxu1 }
 0x172   :  { %v498_v47 = vpop.f32.mrb[70].mxu0  ;;  %v1026_v49 = vpop.f32.mrb[70].mxu1 }
 0x173   :  { %v591_v52 = vmax.f32 %v496_v30, 0.0  ;;  %v1119_v53 = vmax.f32 %v1024_v31, 0.0  ;;  %v499_v54 = vadd.f32 %v4104_v1, %v498_v47  ;;  %v1027_v55 = vadd.f32 %v4104_v1, %v1026_v49  ;;  %v3235_v56 = vpop.f32.mrb[71].mxu0  ;;  %v3345_v57 = vpop.f32.mrb[71].mxu1 }
 0x175   :  { %v4460_v59 = vmax.f32 %v591_v52, %v1119_v53  ;;  %v592_v60 = vmax.f32 %v499_v54, 0.0  ;;  %v1120_v2 = vmax.f32 %v1027_v55, 0.0  ;;  %3461 = vmatmul.mubr.msk.bf16.gmra.mrb[176].mxu0 %vm242_vm3, %v3690_v44  ;;  %3571 = vmatmul.mubr.msk.bf16.gmra.mrb[176].mxu1 %vm242_vm3, %v3691_v45 }
 0x176   :  { %3464 = vmatprep.mubr.msk.bf16.mxu0 %vm3705_vm0, %v3704_v0  ;;  %3574 = vmatprep.mubr.msk.bf16.mxu1 %vm3705_vm0, %v3704_v0 }
 0x177   :  { %v4468_v5 = vmax.f32 %v592_v60, %v1120_v2 }
 0x178   :  { %v503_v9 = vpop.f32.mrb[72].mxu0  ;;  %v1031_v11 = vpop.f32.mrb[72].mxu1 }
 0x179   :  { %v504_v14 = vadd.f32 %v4104_v1, %v503_v9  ;;  %v1032_v15 = vadd.f32 %v4104_v1, %v1031_v11  ;;  %v3238_v17 = vpop.f32.mrb[73].mxu0  ;;  %v3348_v19 = vpop.f32.mrb[73].mxu1  ;;  %v3694_v9 = vld [vmem:[%s4813_s2 + $0xa8] sm:$0xff]  }
 0x17a   :  { %v506_v28 = vpop.f32.mrb[74].mxu0  ;;  %v1034_v29 = vpop.f32.mrb[74].mxu1  ;;  %v3695_v11 = vld [vmem:[%s4814_s3 + $0xa8] sm:$0xff]  }
 0x17b   :  { %v593_v30 = vmax.f32 %v504_v14, 0.0  ;;  %v1121_v31 = vmax.f32 %v1032_v15, 0.0  ;;  %v507_v34 = vadd.f32 %v4104_v1, %v506_v28  ;;  %v1035_v37 = vadd.f32 %v4104_v1, %v1034_v29  ;;  %v3239_v44 = vpop.f32.mrb[75].mxu0  ;;  %v3349_v45 = vpop.f32.mrb[75].mxu1 }
 0x17d   :  { %v4480_v47 = vmax.f32 %v593_v30, %v1121_v31  ;;  %v594_v49 = vmax.f32 %v507_v34, 0.0  ;;  %v1122_v52 = vmax.f32 %v1035_v37, 0.0  ;;  %3465 = vmatmul.mubr.msk.bf16.gmra.mrb[180].mxu0 %vm242_vm3, %v3692_v23  ;;  %3575 = vmatmul.mubr.msk.bf16.gmra.mrb[180].mxu1 %vm242_vm3, %v3693_v25 }
 0x17e   :  { %3468 = vmatprep.mubr.msk.bf16.mxu0 %vm3705_vm0, %v3704_v0  ;;  %3578 = vmatprep.mubr.msk.bf16.mxu1 %vm3705_vm0, %v3704_v0 }
 0x17f   :  { %v4488_v53 = vmax.f32 %v594_v49, %v1122_v52 }
 0x180   :  { %v511_v54 = vpop.f32.mrb[76].mxu0  ;;  %v1039_v55 = vpop.f32.mrb[76].mxu1 }
 0x181   :  { %v512_v56 = vadd.f32 %v4104_v1, %v511_v54  ;;  %v1040_v57 = vadd.f32 %v4104_v1, %v1039_v55  ;;  %v3242_v60 = vpop.f32.mrb[77].mxu0  ;;  %v3352_v2 = vpop.f32.mrb[77].mxu1 }
 0x182   :  { %v514_v14 = vpop.f32.mrb[78].mxu0  ;;  %v1042_v15 = vpop.f32.mrb[78].mxu1 }
 0x183   :  { %v595_v17 = vmax.f32 %v512_v56, 0.0  ;;  %v1123_v19 = vmax.f32 %v1040_v57, 0.0  ;;  %v515_v23 = vadd.f32 %v4104_v1, %v514_v14  ;;  %v1043_v25 = vadd.f32 %v4104_v1, %v1042_v15  ;;  %v3243_v28 = vpop.f32.mrb[79].mxu0  ;;  %v3353_v29 = vpop.f32.mrb[79].mxu1  ;;  %v3696_v56 = vld [vmem:[%s4813_s2 + $0xb0] sm:$0xff]  }
 0x184   :  { %v3697_v57 = vld [vmem:[%s4814_s3 + $0xb0] sm:$0xff]  }
 0x185   :  { %v4500_v30 = vmax.f32 %v595_v17, %v1123_v19  ;;  %v596_v31 = vmax.f32 %v515_v23, 0.0  ;;  %v1124_v34 = vmax.f32 %v1043_v25, 0.0  ;;  %3469 = vmatmul.mubr.msk.bf16.gmra.mrb[184].mxu0 %vm242_vm3, %v3694_v9  ;;  %3579 = vmatmul.mubr.msk.bf16.gmra.mrb[184].mxu1 %vm242_vm3, %v3695_v11 }
 0x186   :  { %3472 = vmatprep.mubr.msk.bf16.mxu0 %vm3705_vm0, %v3704_v0  ;;  %3582 = vmatprep.mubr.msk.bf16.mxu1 %vm3705_vm0, %v3704_v0 }
 0x187   :  { %v4508_v37 = vmax.f32 %v596_v31, %v1124_v34 }
 0x188   :  { %v519_v44 = vpop.f32.mrb[80].mxu0  ;;  %v1047_v45 = vpop.f32.mrb[80].mxu1 }
 0x189   :  { %v520_v49 = vadd.f32 %v4104_v1, %v519_v44  ;;  %v1048_v52 = vadd.f32 %v4104_v1, %v1047_v45  ;;  %v3246_v54 = vpop.f32.mrb[81].mxu0  ;;  %v3356_v55 = vpop.f32.mrb[81].mxu1 }
 0x18a   :  { %v522_v60 = vpop.f32.mrb[82].mxu0  ;;  %v1050_v2 = vpop.f32.mrb[82].mxu1  ;;  %v3698_v54 = vld [vmem:[%s4813_s2 + $0xb8] sm:$0xff]  }
 0x18b   :  { %v597_v9 = vmax.f32 %v520_v49, 0.0  ;;  %v1125_v11 = vmax.f32 %v1048_v52, 0.0  ;;  %v523_v14 = vadd.f32 %v4104_v1, %v522_v60  ;;  %v1051_v15 = vadd.f32 %v4104_v1, %v1050_v2  ;;  %v3247_v17 = vpop.f32.mrb[83].mxu0  ;;  %v3357_v19 = vpop.f32.mrb[83].mxu1  ;;  %v3699_v55 = vld [vmem:[%s4814_s3 + $0xb8] sm:$0xff]  }
 0x18d   :  { %v4520_v23 = vmax.f32 %v597_v9, %v1125_v11  ;;  %v598_v25 = vmax.f32 %v523_v14, 0.0  ;;  %v1126_v28 = vmax.f32 %v1051_v15, 0.0  ;;  %3473 = vmatmul.mubr.msk.bf16.gmra.mrb[188].mxu0 %vm242_vm3, %v3696_v56  ;;  %3583 = vmatmul.mubr.msk.bf16.gmra.mrb[188].mxu1 %vm242_vm3, %v3697_v57  ;;  %v4541_v9 = vld [vmem:[%s4815_s5] ss:$0 sm:$0xff] }
 0x18e   :  { %3476 = vmatprep.mubr.msk.bf16.mxu0 %vm3705_vm0, %v3704_v0  ;;  %3586 = vmatprep.mubr.msk.bf16.mxu1 %vm3705_vm0, %v3704_v0 }
 0x18f   :  { %v4528_v29 = vmax.f32 %v598_v25, %v1126_v28 }
 0x190   :  { %v527_v31 = vpop.f32.mrb[84].mxu0  ;;  %v1055_v34 = vpop.f32.mrb[84].mxu1 }
 0x191   :  { %v528_v44 = vadd.f32 %v4104_v1, %v527_v31  ;;  %v1056_v45 = vadd.f32 %v4104_v1, %v1055_v34  ;;  %v3250_v49 = vpop.f32.mrb[85].mxu0  ;;  %v3360_v52 = vpop.f32.mrb[85].mxu1 }
 0x192   :  { %v530_v56 = vpop.f32.mrb[86].mxu0  ;;  %v1058_v57 = vpop.f32.mrb[86].mxu1 }
 0x193   :  { %v599_v60 = vmax.f32 %v528_v44, 0.0  ;;  %v1127_v2 = vmax.f32 %v1056_v45, 0.0  ;;  %v531_v1 = vadd.f32 %v4541_v9, %v530_v56  ;;  %v1059_v11 = vadd.f32 %v4541_v9, %v1058_v57  ;;  %v3251_v14 = vpop.f32.mrb[87].mxu0  ;;  %v3361_v15 = vpop.f32.mrb[87].mxu1 }
 0x195   :  { %v4545_v17 = vmax.f32 %v599_v60, %v1127_v2  ;;  %v600_v19 = vmax.f32 %v531_v1, 0.0  ;;  %v1128_v25 = vmax.f32 %v1059_v11, 0.0  ;;  %3477 = vmatmul.mubr.msk.bf16.gmra.mrb[192].mxu0 %vm242_vm3, %v3698_v54  ;;  %3587 = vmatmul.mubr.msk.bf16.gmra.mrb[192].mxu1 %vm242_vm3, %v3699_v55  ;;  %v3700_v54 = vld [vmem:[%s4813_s2 + $0xc0] ss:$0 sps:$4 sm:$0xff]  }
 0x196   :  { %3480 = vmatprep.mubr.msk.bf16.mxu0 %vm3705_vm0, %v3704_v0  ;;  %3590 = vmatprep.mubr.msk.bf16.mxu1 %vm3705_vm0, %v3704_v0  ;;  %v3701_v55 = vld [vmem:[%s4814_s3 + $0xc0] ss:$0 sps:$4 sm:$0xff]  }
 0x197   :  { %v4553_v28 = vmax.f32 %v600_v19, %v1128_v25 }
 0x198   :  { %v535_v31 = vpop.f32.mrb[88].mxu0  ;;  %v1063_v34 = vpop.f32.mrb[88].mxu1 }
 0x199   :  { %4817 = vst [vmem:[#allocation2_spill] sm:$0xff] %v4553_v28  ;;  %v536_v44 = vadd.f32 %v4541_v9, %v535_v31  ;;  %v1064_v45 = vadd.f32 %v4541_v9, %v1063_v34  ;;  %v3254_v49 = vpop.f32.mrb[89].mxu0  ;;  %v3364_v52 = vpop.f32.mrb[89].mxu1 }
 0x19a   :  { %v538_v56 = vpop.f32.mrb[90].mxu0  ;;  %v1066_v0 = vpop.f32.mrb[90].mxu1 }
 0x19b   :  { %v601_v57 = vmax.f32 %v536_v44, 0.0  ;;  %v1129_v60 = vmax.f32 %v1064_v45, 0.0  ;;  %v539_v2 = vadd.f32 %v4541_v9, %v538_v56  ;;  %v1067_v1 = vadd.f32 %v4541_v9, %v1066_v0  ;;  %v3255_v11 = vpop.f32.mrb[91].mxu0  ;;  %v3365_v14 = vpop.f32.mrb[91].mxu1 }
 0x19d   :  { %v4565_v15 = vmax.f32 %v601_v57, %v1129_v60  ;;  %v602_v19 = vmax.f32 %v539_v2, 0.0  ;;  %v1130_v25 = vmax.f32 %v1067_v1, 0.0  ;;  %3481 = vmatmul.mubr.msk.bf16.gmra.mrb[196].mxu0 %vm242_vm3, %v3700_v54  ;;  %3591 = vmatmul.mubr.msk.bf16.gmra.mrb[196].mxu1 %vm242_vm3, %v3701_v55 }
 0x19f   :  { %4818 = vst [vmem:[#allocation3_spill] sm:$0xff] %v4565_v15  ;;  %v4569_v31 = vmax.f32 %v602_v19, %v1130_v25 }
 0x1a0   :  { %v543_v34 = vpop.f32.mrb[92].mxu0  ;;  %v1071_v49 = vpop.f32.mrb[92].mxu1 }
 0x1a1   :  { %4819 = vst [vmem:[#allocation4_spill] sm:$0xff] %v4569_v31  ;;  %v544_v44 = vadd.f32 %v4541_v9, %v543_v34  ;;  %v1072_v45 = vadd.f32 %v4541_v9, %v1071_v49  ;;  %v3258_v52 = vpop.f32.mrb[93].mxu0  ;;  %v3368_v56 = vpop.f32.mrb[93].mxu1 }
 0x1a2   :  { %v546_v0 = vpop.f32.mrb[94].mxu0  ;;  %v1074_v11 = vpop.f32.mrb[94].mxu1 }
 0x1a3   :  { %v603_v57 = vmax.f32 %v544_v44, 0.0  ;;  %v1131_v60 = vmax.f32 %v1072_v45, 0.0  ;;  %v547_v2 = vadd.f32 %v4541_v9, %v546_v0  ;;  %v1075_v54 = vadd.f32 %v4541_v9, %v1074_v11  ;;  %v3259_v1 = vpop.f32.mrb[95].mxu0  ;;  %v3369_v55 = vpop.f32.mrb[95].mxu1 }
 0x1a5   :  { %v4575_v14 = vmax.f32 %v603_v57, %v1131_v60  ;;  %v604_v19 = vmax.f32 %v547_v2, 0.0  ;;  %v1132_v25 = vmax.f32 %v1075_v54, 0.0 }
 0x1a7   :  { %4820 = vst [vmem:[#allocation5_spill] sm:$0xff] %v4575_v14  ;;  %v4577_v31 = vmax.f32 %v604_v19, %v1132_v25 }
 0x1a8   :  { %v551_v34 = vpop.f32.mrb[96].mxu0  ;;  %v1079_v49 = vpop.f32.mrb[96].mxu1 }
 0x1a9   :  { %4821 = vst [vmem:[#allocation6_spill] sm:$0xff] %v4577_v31  ;;  %v552_v52 = vadd.f32 %v4541_v9, %v551_v34  ;;  %v1080_v56 = vadd.f32 %v4541_v9, %v1079_v49  ;;  %v3262_v44 = vpop.f32.mrb[97].mxu0  ;;  %v3372_v45 = vpop.f32.mrb[97].mxu1 }
 0x1aa   :  { %v554_v15 = vpop.f32.mrb[98].mxu0  ;;  %v1082_v0 = vpop.f32.mrb[98].mxu1 }
 0x1ab   :  { %v605_v28 = vmax.f32 %v552_v52, 0.0  ;;  %v1133_v11 = vmax.f32 %v1080_v56, 0.0  ;;  %v3263_v1 = vpop.f32.mrb[99].mxu0  ;;  %v3373_v55 = vpop.f32.mrb[99].mxu1 }
 0x1ad   :  { %v4581_v57 = vmax.f32 %v605_v28, %v1133_v11 }
 0x1af   :  { %4822 = vst [vmem:[#allocation7_spill] sm:$0xff] %v4581_v57 }
 0x1b0   :  { %v1464_v60 = vpop.f32.mrb[100].mxu0  ;;  %v1992_v2 = vpop.f32.mrb[100].mxu1 }
 0x1b1   :  { %v1465_v54 = vadd.f32 %v4541_v9, %v1464_v60  ;;  %v1993_v19 = vadd.f32 %v4541_v9, %v1992_v2  ;;  %v3386_v25 = vpop.f32.mrb[101].mxu0  ;;  %v3496_v34 = vpop.f32.mrb[101].mxu1 }
 0x1b2   :  { %v1467_v31 = vpop.f32.mrb[102].mxu0  ;;  %v1995_v49 = vpop.f32.mrb[102].mxu1 }
 0x1b3   :  { %v1662_v44 = vmax.f32 %v1465_v54, 0.0  ;;  %v2190_v45 = vmax.f32 %v1993_v19, 0.0  ;;  %v1468_v15 = vadd.f32 %v4541_v9, %v1467_v31  ;;  %v1996_v52 = vadd.f32 %v4541_v9, %v1995_v49  ;;  %v3387_v56 = vpop.f32.mrb[103].mxu0  ;;  %v3497_v0 = vpop.f32.mrb[103].mxu1 }
 0x1b5   :  { %v2239_v28 = vmax.f32 %v1662_v44, %v2190_v45  ;;  %v1663_v11 = vmax.f32 %v1468_v15, 0.0  ;;  %v2191_v1 = vmax.f32 %v1996_v52, 0.0 }
 0x1b7   :  { %v2288_v55 = vmax.f32 %v4120_v18, %v2239_v28  ;;  %v2240_v60 = vmax.f32 %v1663_v11, %v2191_v1 }
 0x1b8   :  { %v1472_v57 = vpop.f32.mrb[104].mxu0  ;;  %v2000_v2 = vpop.f32.mrb[104].mxu1 }
 0x1b9   :  { %v2289_v25 = vmax.f32 %v4128_v21, %v2240_v60  ;;  %v1473_v34 = vadd.f32 %v4541_v9, %v1472_v57  ;;  %v2001_v54 = vadd.f32 %v4541_v9, %v2000_v2  ;;  %v3390_v19 = vpop.f32.mrb[105].mxu0  ;;  %v3500_v31 = vpop.f32.mrb[105].mxu1 }
 0x1ba   :  { %v1475_v14 = vpop.f32.mrb[106].mxu0  ;;  %v2003_v49 = vpop.f32.mrb[106].mxu1 }
 0x1bb   :  { %v2894_v56 = vpack.c.bf16 %v2289_v25, %v2288_v55  ;;  %v1664_v0 = vmax.f32 %v1473_v34, 0.0  ;;  %v2192_v44 = vmax.f32 %v2001_v54, 0.0  ;;  %v1476_v45 = vadd.f32 %v4541_v9, %v1475_v14  ;;  %v3391_v15 = vpop.f32.mrb[107].mxu0  ;;  %v3501_v18 = vpop.f32.mrb[107].mxu1 }
 0x1bc   :  { %v2004_v52 = vadd.f32 %v4541_v9, %v2003_v49 }
 0x1bd   :  { %2895 = vst [vmem:[%s4816_s6] sm:$0xff] %v2894_v56   ;;  %v2241_v21 = vmax.f32 %v1664_v0, %v2192_v44  ;;  %v1665_v57 = vmax.f32 %v1476_v45, 0.0 }
 0x1be   :  { %v2193_v28 = vmax.f32 %v2004_v52, 0.0 }
 0x1bf   :  { %v2290_v11 = vmax.f32 %v4140_v38, %v2241_v21 }
 0x1c0   :  { %v2242_v1 = vmax.f32 %v1665_v57, %v2193_v28  ;;  %v1480_v60 = vpop.f32.mrb[108].mxu0  ;;  %v2008_v55 = vpop.f32.mrb[108].mxu1 }
 0x1c1   :  { %v1481_v2 = vadd.f32 %v4541_v9, %v1480_v60  ;;  %v2009_v14 = vadd.f32 %v4541_v9, %v2008_v55  ;;  %v3394_v25 = vpop.f32.mrb[109].mxu0  ;;  %v3504_v34 = vpop.f32.mrb[109].mxu1 }
 0x1c2   :  { %v2291_v54 = vmax.f32 %v4148_v41, %v2242_v1  ;;  %v1483_v19 = vpop.f32.mrb[110].mxu0  ;;  %v2011_v31 = vpop.f32.mrb[110].mxu1 }
 0x1c3   :  { %v1666_v49 = vmax.f32 %v1481_v2, 0.0  ;;  %v2194_v56 = vmax.f32 %v2009_v14, 0.0  ;;  %v1484_v0 = vadd.f32 %v4541_v9, %v1483_v19  ;;  %v2012_v44 = vadd.f32 %v4541_v9, %v2011_v31  ;;  %v3395_v38 = vpop.f32.mrb[111].mxu0  ;;  %v3505_v45 = vpop.f32.mrb[111].mxu1 }
 0x1c4   :  { %v2899_v15 = vpack.c.bf16 %v2291_v54, %v2290_v11 }
 0x1c5   :  { %v2243_v18 = vmax.f32 %v1666_v49, %v2194_v56  ;;  %v1667_v52 = vmax.f32 %v1484_v0, 0.0  ;;  %v2195_v21 = vmax.f32 %v2012_v44, 0.0 }
 0x1c6   :  { %3011 = vst [vmem:[%s4816_s6 + $0x8] sm:$0xff] %v2899_v15  }
 0x1c7   :  { %v2292_v41 = vmax.f32 %v4160_v58, %v2243_v18  ;;  %v2244_v57 = vmax.f32 %v1667_v52, %v2195_v21 }
 0x1c8   :  { %v1488_v28 = vpop.f32.mrb[112].mxu0  ;;  %v2016_v1 = vpop.f32.mrb[112].mxu1 }
 0x1c9   :  { %v2293_v60 = vmax.f32 %v4168_v61, %v2244_v57  ;;  %v1489_v55 = vadd.f32 %v4541_v9, %v1488_v28  ;;  %v2017_v2 = vadd.f32 %v4541_v9, %v2016_v1  ;;  %v3398_v14 = vpop.f32.mrb[113].mxu0  ;;  %v3508_v11 = vpop.f32.mrb[113].mxu1 }
 0x1ca   :  { %v1491_v25 = vpop.f32.mrb[114].mxu0  ;;  %v2019_v34 = vpop.f32.mrb[114].mxu1 }
 0x1cb   :  { %v2904_v54 = vpack.c.bf16 %v2293_v60, %v2292_v41  ;;  %v1668_v19 = vmax.f32 %v1489_v55, 0.0  ;;  %v2196_v31 = vmax.f32 %v2017_v2, 0.0  ;;  %v1492_v49 = vadd.f32 %v4541_v9, %v1491_v25  ;;  %v3399_v56 = vpop.f32.mrb[115].mxu0  ;;  %v3509_v58 = vpop.f32.mrb[115].mxu1 }
 0x1cc   :  { %v2020_v0 = vadd.f32 %v4541_v9, %v2019_v34 }
 0x1cd   :  { %3012 = vst [vmem:[%s4816_s6 + $0x10] sm:$0xff] %v2904_v54   ;;  %v2245_v61 = vmax.f32 %v1668_v19, %v2196_v31  ;;  %v1669_v44 = vmax.f32 %v1492_v49, 0.0 }
 0x1ce   :  { %v2197_v38 = vmax.f32 %v2020_v0, 0.0 }
 0x1cf   :  { %v2294_v45 = vmax.f32 %v4180_v16, %v2245_v61 }
 0x1d0   :  { %v2246_v15 = vmax.f32 %v1669_v44, %v2197_v38  ;;  %v1496_v18 = vpop.f32.mrb[116].mxu0  ;;  %v2024_v52 = vpop.f32.mrb[116].mxu1 }
 0x1d1   :  { %v1497_v21 = vadd.f32 %v4541_v9, %v1496_v18  ;;  %v2025_v41 = vadd.f32 %v4541_v9, %v2024_v52  ;;  %v3402_v57 = vpop.f32.mrb[117].mxu0  ;;  %v3512_v28 = vpop.f32.mrb[117].mxu1 }
 0x1d2   :  { %v2295_v1 = vmax.f32 %v4188_v20, %v2246_v15  ;;  %v1499_v60 = vpop.f32.mrb[118].mxu0  ;;  %v2027_v55 = vpop.f32.mrb[118].mxu1 }
 0x1d3   :  { %v1670_v2 = vmax.f32 %v1497_v21, 0.0  ;;  %v2198_v14 = vmax.f32 %v2025_v41, 0.0  ;;  %v1500_v11 = vadd.f32 %v4541_v9, %v1499_v60  ;;  %v2028_v25 = vadd.f32 %v4541_v9, %v2027_v55  ;;  %v3403_v16 = vpop.f32.mrb[119].mxu0  ;;  %v3513_v34 = vpop.f32.mrb[119].mxu1 }
 0x1d4   :  { %v2909_v54 = vpack.c.bf16 %v2295_v1, %v2294_v45 }
 0x1d5   :  { %v2247_v19 = vmax.f32 %v1670_v2, %v2198_v14  ;;  %v1671_v31 = vmax.f32 %v1500_v11, 0.0  ;;  %v2199_v49 = vmax.f32 %v2028_v25, 0.0 }
 0x1d6   :  { %3013 = vst [vmem:[%s4816_s6 + $0x18] sm:$0xff] %v2909_v54  }
 0x1d7   :  { %v2296_v20 = vmax.f32 %v4200_v39, %v2247_v19  ;;  %v2248_v56 = vmax.f32 %v1671_v31, %v2199_v49 }
 0x1d8   :  { %v1504_v58 = vpop.f32.mrb[120].mxu0  ;;  %v2032_v0 = vpop.f32.mrb[120].mxu1 }
 0x1d9   :  { %v2297_v61 = vmax.f32 %v4208_v43, %v2248_v56  ;;  %v1505_v44 = vadd.f32 %v4541_v9, %v1504_v58  ;;  %v2033_v38 = vadd.f32 %v4541_v9, %v2032_v0  ;;  %v3406_v15 = vpop.f32.mrb[121].mxu0  ;;  %v3516_v45 = vpop.f32.mrb[121].mxu1 }
 0x1da   :  { %v1507_v18 = vpop.f32.mrb[122].mxu0  ;;  %v2035_v52 = vpop.f32.mrb[122].mxu1 }
 0x1db   :  { %v2914_v21 = vpack.c.bf16 %v2297_v61, %v2296_v20  ;;  %v1672_v41 = vmax.f32 %v1505_v44, 0.0  ;;  %v2200_v57 = vmax.f32 %v2033_v38, 0.0  ;;  %v1508_v28 = vadd.f32 %v4541_v9, %v1507_v18  ;;  %v3407_v1 = vpop.f32.mrb[123].mxu0  ;;  %v3517_v39 = vpop.f32.mrb[123].mxu1 }
 0x1dc   :  { %v2036_v60 = vadd.f32 %v4541_v9, %v2035_v52 }
 0x1dd   :  { %3014 = vst [vmem:[%s4816_s6 + $0x20] sm:$0xff] %v2914_v21   ;;  %v2249_v43 = vmax.f32 %v1672_v41, %v2200_v57  ;;  %v1673_v55 = vmax.f32 %v1508_v28, 0.0 }
 0x1de   :  { %v2201_v2 = vmax.f32 %v2036_v60, 0.0 }
 0x1df   :  { %v2298_v14 = vmax.f32 %v4220_v62, %v2249_v43 }
 0x1e0   :  { %v2250_v11 = vmax.f32 %v1673_v55, %v2201_v2  ;;  %v1512_v25 = vpop.f32.mrb[124].mxu0  ;;  %v2040_v16 = vpop.f32.mrb[124].mxu1 }
 0x1e1   :  { %v1513_v34 = vadd.f32 %v4541_v9, %v1512_v25  ;;  %v2041_v54 = vadd.f32 %v4541_v9, %v2040_v16  ;;  %v3410_v19 = vpop.f32.mrb[125].mxu0  ;;  %v3520_v31 = vpop.f32.mrb[125].mxu1 }
 0x1e2   :  { %v2299_v49 = vmax.f32 %v4228_v3, %v2250_v11  ;;  %v1515_v20 = vpop.f32.mrb[126].mxu0  ;;  %v2043_v56 = vpop.f32.mrb[126].mxu1 }
 0x1e3   :  { %v1674_v58 = vmax.f32 %v1513_v34, 0.0  ;;  %v2202_v0 = vmax.f32 %v2041_v54, 0.0  ;;  %v1516_v61 = vadd.f32 %v4541_v9, %v1515_v20  ;;  %v2044_v44 = vadd.f32 %v4541_v9, %v2043_v56  ;;  %v3411_v62 = vpop.f32.mrb[127].mxu0  ;;  %v3521_v38 = vpop.f32.mrb[127].mxu1 }
 0x1e4   :  { %v2919_v15 = vpack.c.bf16 %v2299_v49, %v2298_v14 }
 0x1e5   :  { %v2251_v45 = vmax.f32 %v1674_v58, %v2202_v0  ;;  %v1675_v18 = vmax.f32 %v1516_v61, 0.0  ;;  %v2203_v52 = vmax.f32 %v2044_v44, 0.0 }
 0x1e6   :  { %3015 = vst [vmem:[%s4816_s6 + $0x28] sm:$0xff] %v2919_v15  }
 0x1e7   :  { %v2300_v3 = vmax.f32 %v4240_v24, %v2251_v45  ;;  %v2252_v21 = vmax.f32 %v1675_v18, %v2203_v52 }
 0x1e8   :  { %v1520_v41 = vpop.f32.mrb[128].mxu0  ;;  %v2048_v57 = vpop.f32.mrb[128].mxu1 }
 0x1e9   :  { %v2301_v28 = vmax.f32 %v4248_v27, %v2252_v21  ;;  %v1521_v1 = vadd.f32 %v4541_v9, %v1520_v41  ;;  %v2049_v39 = vadd.f32 %v4541_v9, %v2048_v57  ;;  %v3414_v60 = vpop.f32.mrb[129].mxu0  ;;  %v3524_v43 = vpop.f32.mrb[129].mxu1 }
 0x1ea   :  { %v1523_v55 = vpop.f32.mrb[130].mxu0  ;;  %v2051_v2 = vpop.f32.mrb[130].mxu1 }
 0x1eb   :  { %v2924_v14 = vpack.c.bf16 %v2301_v28, %v2300_v3  ;;  %v1676_v11 = vmax.f32 %v1521_v1, 0.0  ;;  %v2204_v25 = vmax.f32 %v2049_v39, 0.0  ;;  %v1524_v16 = vadd.f32 %v4541_v9, %v1523_v55  ;;  %v3415_v34 = vpop.f32.mrb[131].mxu0  ;;  %v3525_v24 = vpop.f32.mrb[131].mxu1 }
 0x1ec   :  { %v2052_v54 = vadd.f32 %v4541_v9, %v2051_v2 }
 0x1ed   :  { %3016 = vst [vmem:[%s4816_s6 + $0x30] sm:$0xff] %v2924_v14   ;;  %v2253_v27 = vmax.f32 %v1676_v11, %v2204_v25  ;;  %v1677_v19 = vmax.f32 %v1524_v16, 0.0 }
 0x1ee   :  { %v2205_v31 = vmax.f32 %v2052_v54, 0.0 }
 0x1ef   :  { %v2302_v49 = vmax.f32 %v4260_v48, %v2253_v27 }
 0x1f0   :  { %v2254_v20 = vmax.f32 %v1677_v19, %v2205_v31  ;;  %v1528_v56 = vpop.f32.mrb[132].mxu0  ;;  %v2056_v58 = vpop.f32.mrb[132].mxu1 }
 0x1f1   :  { %v1529_v0 = vadd.f32 %v4541_v9, %v1528_v56  ;;  %v2057_v61 = vadd.f32 %v4541_v9, %v2056_v58  ;;  %v3418_v44 = vpop.f32.mrb[133].mxu0  ;;  %v3528_v62 = vpop.f32.mrb[133].mxu1 }
 0x1f2   :  { %v2303_v38 = vmax.f32 %v4268_v51, %v2254_v20  ;;  %v1531_v15 = vpop.f32.mrb[134].mxu0  ;;  %v2059_v45 = vpop.f32.mrb[134].mxu1 }
 0x1f3   :  { %v1678_v18 = vmax.f32 %v1529_v0, 0.0  ;;  %v2206_v52 = vmax.f32 %v2057_v61, 0.0  ;;  %v1532_v3 = vadd.f32 %v4541_v9, %v1531_v15  ;;  %v2060_v21 = vadd.f32 %v4541_v9, %v2059_v45  ;;  %v3419_v48 = vpop.f32.mrb[135].mxu0  ;;  %v3529_v41 = vpop.f32.mrb[135].mxu1 }
 0x1f4   :  { %v2929_v57 = vpack.c.bf16 %v2303_v38, %v2302_v49 }
 0x1f5   :  { %v2255_v28 = vmax.f32 %v1678_v18, %v2206_v52  ;;  %v1679_v1 = vmax.f32 %v1532_v3, 0.0  ;;  %v2207_v39 = vmax.f32 %v2060_v21, 0.0 }
 0x1f6   :  { %3017 = vst [vmem:[%s4816_s6 + $0x38] sm:$0xff] %v2929_v57  }
 0x1f7   :  { %v2304_v51 = vmax.f32 %v4280_v10, %v2255_v28  ;;  %v2256_v60 = vmax.f32 %v1679_v1, %v2207_v39 }
 0x1f8   :  { %v1536_v43 = vpop.f32.mrb[136].mxu0  ;;  %v2064_v55 = vpop.f32.mrb[136].mxu1 }
 0x1f9   :  { %v2305_v2 = vmax.f32 %v4288_v13, %v2256_v60  ;;  %v1537_v14 = vadd.f32 %v4541_v9, %v1536_v43  ;;  %v2065_v11 = vadd.f32 %v4541_v9, %v2064_v55  ;;  %v3422_v25 = vpop.f32.mrb[137].mxu0  ;;  %v3532_v16 = vpop.f32.mrb[137].mxu1 }
 0x1fa   :  { %v1539_v34 = vpop.f32.mrb[138].mxu0  ;;  %v2067_v24 = vpop.f32.mrb[138].mxu1 }
 0x1fb   :  { %v2934_v54 = vpack.c.bf16 %v2305_v2, %v2304_v51  ;;  %v1680_v27 = vmax.f32 %v1537_v14, 0.0  ;;  %v2208_v19 = vmax.f32 %v2065_v11, 0.0  ;;  %v1540_v31 = vadd.f32 %v4541_v9, %v1539_v34  ;;  %v3423_v49 = vpop.f32.mrb[139].mxu0  ;;  %v3533_v10 = vpop.f32.mrb[139].mxu1 }
 0x1fc   :  { %v2068_v20 = vadd.f32 %v4541_v9, %v2067_v24 }
 0x1fd   :  { %3018 = vst [vmem:[%s4816_s6 + $0x40] sm:$0xff] %v2934_v54   ;;  %v2257_v13 = vmax.f32 %v1680_v27, %v2208_v19  ;;  %v1681_v56 = vmax.f32 %v1540_v31, 0.0 }
 0x1fe   :  { %v2209_v58 = vmax.f32 %v2068_v20, 0.0 }
 0x1ff   :  { %v2306_v0 = vmax.f32 %v4300_v36, %v2257_v13 }
 0x200   :  { %v2258_v61 = vmax.f32 %v1681_v56, %v2209_v58  ;;  %v1544_v44 = vpop.f32.mrb[140].mxu0  ;;  %v2072_v62 = vpop.f32.mrb[140].mxu1 }
 0x201   :  { %v1545_v38 = vadd.f32 %v4541_v9, %v1544_v44  ;;  %v2073_v15 = vadd.f32 %v4541_v9, %v2072_v62  ;;  %v3426_v45 = vpop.f32.mrb[141].mxu0  ;;  %v3536_v18 = vpop.f32.mrb[141].mxu1 }
 0x202   :  { %v2307_v52 = vmax.f32 %v4308_v42, %v2258_v61  ;;  %v1547_v3 = vpop.f32.mrb[142].mxu0  ;;  %v2075_v21 = vpop.f32.mrb[142].mxu1 }
 0x203   :  { %v1682_v48 = vmax.f32 %v1545_v38, 0.0  ;;  %v2210_v41 = vmax.f32 %v2073_v15, 0.0  ;;  %v1548_v57 = vadd.f32 %v4541_v9, %v1547_v3  ;;  %v2076_v28 = vadd.f32 %v4541_v9, %v2075_v21  ;;  %v3427_v36 = vpop.f32.mrb[143].mxu0  ;;  %v3537_v1 = vpop.f32.mrb[143].mxu1 }
 0x204   :  { %v2939_v39 = vpack.c.bf16 %v2307_v52, %v2306_v0 }
 0x205   :  { %v2259_v51 = vmax.f32 %v1682_v48, %v2210_v41  ;;  %v1683_v60 = vmax.f32 %v1548_v57, 0.0  ;;  %v2211_v43 = vmax.f32 %v2076_v28, 0.0 }
 0x206   :  { %3019 = vst [vmem:[%s4816_s6 + $0x48] sm:$0xff] %v2939_v39  }
 0x207   :  { %v2308_v42 = vmax.f32 %v4320_v4, %v2259_v51  ;;  %v2260_v55 = vmax.f32 %v1683_v60, %v2211_v43 }
 0x208   :  { %v1552_v2 = vpop.f32.mrb[144].mxu0  ;;  %v2080_v14 = vpop.f32.mrb[144].mxu1 }
 0x209   :  { %v2309_v11 = vmax.f32 %v4328_v7, %v2260_v55  ;;  %v1553_v25 = vadd.f32 %v4541_v9, %v1552_v2  ;;  %v2081_v16 = vadd.f32 %v4541_v9, %v2080_v14  ;;  %v3430_v34 = vpop.f32.mrb[145].mxu0  ;;  %v3540_v24 = vpop.f32.mrb[145].mxu1 }
 0x20a   :  { %v1555_v54 = vpop.f32.mrb[146].mxu0  ;;  %v2083_v27 = vpop.f32.mrb[146].mxu1 }
 0x20b   :  { %v2944_v19 = vpack.c.bf16 %v2309_v11, %v2308_v42  ;;  %v1684_v31 = vmax.f32 %v1553_v25, 0.0  ;;  %v2212_v49 = vmax.f32 %v2081_v16, 0.0  ;;  %v1556_v10 = vadd.f32 %v4541_v9, %v1555_v54  ;;  %v3431_v20 = vpop.f32.mrb[147].mxu0  ;;  %v3541_v4 = vpop.f32.mrb[147].mxu1 }
 0x20c   :  { %v2084_v13 = vadd.f32 %v4541_v9, %v2083_v27 }
 0x20d   :  { %3020 = vst [vmem:[%s4816_s6 + $0x50] sm:$0xff] %v2944_v19   ;;  %v2261_v7 = vmax.f32 %v1684_v31, %v2212_v49  ;;  %v1685_v56 = vmax.f32 %v1556_v10, 0.0 }
 0x20e   :  { %v2213_v58 = vmax.f32 %v2084_v13, 0.0 }
 0x20f   :  { %v2310_v0 = vmax.f32 %v4340_v32, %v2261_v7 }
 0x210   :  { %v2262_v61 = vmax.f32 %v1685_v56, %v2213_v58  ;;  %v1560_v44 = vpop.f32.mrb[148].mxu0  ;;  %v2088_v62 = vpop.f32.mrb[148].mxu1 }
 0x211   :  { %v1561_v38 = vadd.f32 %v4541_v9, %v1560_v44  ;;  %v2089_v15 = vadd.f32 %v4541_v9, %v2088_v62  ;;  %v3434_v45 = vpop.f32.mrb[149].mxu0  ;;  %v3544_v18 = vpop.f32.mrb[149].mxu1 }
 0x212   :  { %v2311_v52 = vmax.f32 %v4348_v35, %v2262_v61  ;;  %v1563_v3 = vpop.f32.mrb[150].mxu0  ;;  %v2091_v21 = vpop.f32.mrb[150].mxu1 }
 0x213   :  { %v1686_v48 = vmax.f32 %v1561_v38, 0.0  ;;  %v2214_v41 = vmax.f32 %v2089_v15, 0.0  ;;  %v1564_v57 = vadd.f32 %v4541_v9, %v1563_v3  ;;  %v2092_v28 = vadd.f32 %v4541_v9, %v2091_v21  ;;  %v3435_v32 = vpop.f32.mrb[151].mxu0  ;;  %v3545_v36 = vpop.f32.mrb[151].mxu1 }
 0x214   :  { %v2949_v1 = vpack.c.bf16 %v2311_v52, %v2310_v0 }
 0x215   :  { %v2263_v39 = vmax.f32 %v1686_v48, %v2214_v41  ;;  %v1687_v51 = vmax.f32 %v1564_v57, 0.0  ;;  %v2215_v60 = vmax.f32 %v2092_v28, 0.0 }
 0x216   :  { %3021 = vst [vmem:[%s4816_s6 + $0x58] sm:$0xff] %v2949_v1  }
 0x217   :  { %v2312_v35 = vmax.f32 %v4360_v63, %v2263_v39  ;;  %v2264_v43 = vmax.f32 %v1687_v51, %v2215_v60 }
 0x218   :  { %v1568_v42 = vpop.f32.mrb[152].mxu0  ;;  %v2096_v55 = vpop.f32.mrb[152].mxu1 }
 0x219   :  { %v2313_v2 = vmax.f32 %v4368_v6, %v2264_v43  ;;  %v1569_v14 = vadd.f32 %v4541_v9, %v1568_v42  ;;  %v2097_v11 = vadd.f32 %v4541_v9, %v2096_v55  ;;  %v3438_v25 = vpop.f32.mrb[153].mxu0  ;;  %v3548_v16 = vpop.f32.mrb[153].mxu1 }
 0x21a   :  { %v1571_v34 = vpop.f32.mrb[154].mxu0  ;;  %v2099_v24 = vpop.f32.mrb[154].mxu1 }
 0x21b   :  { %v2954_v54 = vpack.c.bf16 %v2313_v2, %v2312_v35  ;;  %v1688_v27 = vmax.f32 %v1569_v14, 0.0  ;;  %v2216_v19 = vmax.f32 %v2097_v11, 0.0  ;;  %v1572_v31 = vadd.f32 %v4541_v9, %v1571_v34  ;;  %v3439_v49 = vpop.f32.mrb[155].mxu0  ;;  %v3549_v63 = vpop.f32.mrb[155].mxu1 }
 0x21c   :  { %v2100_v10 = vadd.f32 %v4541_v9, %v2099_v24 }
 0x21d   :  { %3022 = vst [vmem:[%s4816_s6 + $0x60] sm:$0xff] %v2954_v54   ;;  %v2265_v6 = vmax.f32 %v1688_v27, %v2216_v19  ;;  %v1689_v20 = vmax.f32 %v1572_v31, 0.0 }
 0x21e   :  { %v2217_v4 = vmax.f32 %v2100_v10, 0.0 }
 0x21f   :  { %v2314_v13 = vmax.f32 %v4380_v33, %v2265_v6 }
 0x220   :  { %v2266_v7 = vmax.f32 %v1689_v20, %v2217_v4  ;;  %v1576_v56 = vpop.f32.mrb[156].mxu0  ;;  %v2104_v58 = vpop.f32.mrb[156].mxu1 }
 0x221   :  { %v1577_v0 = vadd.f32 %v4541_v9, %v1576_v56  ;;  %v2105_v61 = vadd.f32 %v4541_v9, %v2104_v58  ;;  %v3442_v44 = vpop.f32.mrb[157].mxu0  ;;  %v3552_v62 = vpop.f32.mrb[157].mxu1 }
 0x222   :  { %v2315_v38 = vmax.f32 %v4388_v40, %v2266_v7  ;;  %v1579_v15 = vpop.f32.mrb[158].mxu0  ;;  %v2107_v45 = vpop.f32.mrb[158].mxu1 }
 0x223   :  { %v1690_v18 = vmax.f32 %v1577_v0, 0.0  ;;  %v2218_v52 = vmax.f32 %v2105_v61, 0.0  ;;  %v1580_v3 = vadd.f32 %v4541_v9, %v1579_v15  ;;  %v2108_v21 = vadd.f32 %v4541_v9, %v2107_v45  ;;  %v3443_v33 = vpop.f32.mrb[159].mxu0  ;;  %v3553_v48 = vpop.f32.mrb[159].mxu1 }
 0x224   :  { %v2959_v41 = vpack.c.bf16 %v2315_v38, %v2314_v13 }
 0x225   :  { %v2267_v57 = vmax.f32 %v1690_v18, %v2218_v52  ;;  %v1691_v28 = vmax.f32 %v1580_v3, 0.0  ;;  %v2219_v32 = vmax.f32 %v2108_v21, 0.0 }
 0x226   :  { %3023 = vst [vmem:[%s4816_s6 + $0x68] sm:$0xff] %v2959_v41  }
 0x227   :  { %v2316_v40 = vmax.f32 %v4400_v8, %v2267_v57  ;;  %v2268_v36 = vmax.f32 %v1691_v28, %v2219_v32 }
 0x228   :  { %v1584_v1 = vpop.f32.mrb[160].mxu0  ;;  %v2112_v39 = vpop.f32.mrb[160].mxu1 }
 0x229   :  { %v2317_v51 = vmax.f32 %v4408_v12, %v2268_v36  ;;  %v1585_v60 = vadd.f32 %v4541_v9, %v1584_v1  ;;  %v2113_v35 = vadd.f32 %v4541_v9, %v2112_v39  ;;  %v3446_v43 = vpop.f32.mrb[161].mxu0  ;;  %v3556_v42 = vpop.f32.mrb[161].mxu1 }
 0x22a   :  { %v1587_v55 = vpop.f32.mrb[162].mxu0  ;;  %v2115_v2 = vpop.f32.mrb[162].mxu1 }
 0x22b   :  { %v2964_v14 = vpack.c.bf16 %v2317_v51, %v2316_v40  ;;  %v1692_v11 = vmax.f32 %v1585_v60, 0.0  ;;  %v2220_v25 = vmax.f32 %v2113_v35, 0.0  ;;  %v1588_v16 = vadd.f32 %v4541_v9, %v1587_v55  ;;  %v3447_v34 = vpop.f32.mrb[163].mxu0  ;;  %v3557_v8 = vpop.f32.mrb[163].mxu1 }
 0x22c   :  { %v2116_v24 = vadd.f32 %v4541_v9, %v2115_v2 }
 0x22d   :  { %3024 = vst [vmem:[%s4816_s6 + $0x70] sm:$0xff] %v2964_v14   ;;  %v2269_v12 = vmax.f32 %v1692_v11, %v2220_v25  ;;  %v1693_v54 = vmax.f32 %v1588_v16, 0.0 }
 0x22e   :  { %v2221_v27 = vmax.f32 %v2116_v24, 0.0 }
 0x22f   :  { %v2318_v19 = vmax.f32 %v4420_v46, %v2269_v12 }
 0x230   :  { %v2270_v31 = vmax.f32 %v1693_v54, %v2221_v27  ;;  %v1592_v49 = vpop.f32.mrb[164].mxu0  ;;  %v2120_v63 = vpop.f32.mrb[164].mxu1 }
 0x231   :  { %v1593_v10 = vadd.f32 %v4541_v9, %v1592_v49  ;;  %v2121_v6 = vadd.f32 %v4541_v9, %v2120_v63  ;;  %v3450_v20 = vpop.f32.mrb[165].mxu0  ;;  %v3560_v4 = vpop.f32.mrb[165].mxu1 }
 0x232   :  { %v2319_v13 = vmax.f32 %v4428_v50, %v2270_v31  ;;  %v1595_v7 = vpop.f32.mrb[166].mxu0  ;;  %v2123_v56 = vpop.f32.mrb[166].mxu1 }
 0x233   :  { %v1694_v58 = vmax.f32 %v1593_v10, 0.0  ;;  %v2222_v0 = vmax.f32 %v2121_v6, 0.0  ;;  %v1596_v61 = vadd.f32 %v4541_v9, %v1595_v7  ;;  %v2124_v44 = vadd.f32 %v4541_v9, %v2123_v56  ;;  %v3451_v46 = vpop.f32.mrb[167].mxu0  ;;  %v3561_v62 = vpop.f32.mrb[167].mxu1 }
 0x234   :  { %v2969_v38 = vpack.c.bf16 %v2319_v13, %v2318_v19 }
 0x235   :  { %v2271_v15 = vmax.f32 %v1694_v58, %v2222_v0  ;;  %v1695_v45 = vmax.f32 %v1596_v61, 0.0  ;;  %v2223_v18 = vmax.f32 %v2124_v44, 0.0 }
 0x236   :  { %3025 = vst [vmem:[%s4816_s6 + $0x78] sm:$0xff] %v2969_v38  }
 0x237   :  { %v2320_v50 = vmax.f32 %v4440_v22, %v2271_v15  ;;  %v2272_v52 = vmax.f32 %v1695_v45, %v2223_v18 }
 0x238   :  { %v1600_v3 = vpop.f32.mrb[168].mxu0  ;;  %v2128_v21 = vpop.f32.mrb[168].mxu1 }
 0x239   :  { %v2321_v33 = vmax.f32 %v4448_v26, %v2272_v52  ;;  %v1601_v48 = vadd.f32 %v4541_v9, %v1600_v3  ;;  %v2129_v41 = vadd.f32 %v4541_v9, %v2128_v21  ;;  %v3454_v57 = vpop.f32.mrb[169].mxu0  ;;  %v3564_v28 = vpop.f32.mrb[169].mxu1 }
 0x23a   :  { %v1603_v32 = vpop.f32.mrb[170].mxu0  ;;  %v2131_v40 = vpop.f32.mrb[170].mxu1 }
 0x23b   :  { %v2974_v36 = vpack.c.bf16 %v2321_v33, %v2320_v50  ;;  %v1696_v1 = vmax.f32 %v1601_v48, 0.0  ;;  %v2224_v39 = vmax.f32 %v2129_v41, 0.0  ;;  %v1604_v51 = vadd.f32 %v4541_v9, %v1603_v32  ;;  %v3455_v60 = vpop.f32.mrb[171].mxu0  ;;  %v3565_v22 = vpop.f32.mrb[171].mxu1 }
 0x23c   :  { %v2132_v35 = vadd.f32 %v4541_v9, %v2131_v40 }
 0x23d   :  { %3026 = vst [vmem:[%s4816_s6 + $0x80] sm:$0xff] %v2974_v36   ;;  %v2273_v26 = vmax.f32 %v1696_v1, %v2224_v39  ;;  %v1697_v43 = vmax.f32 %v1604_v51, 0.0 }
 0x23e   :  { %v2225_v42 = vmax.f32 %v2132_v35, 0.0 }
 0x23f   :  { %v2322_v55 = vmax.f32 %v4460_v59, %v2273_v26  ;;  %v4765_v26 = vld [vmem:[%s4815_s5] ss:$0 sm:$0xff] }
 0x240   :  { %v2274_v2 = vmax.f32 %v1697_v43, %v2225_v42  ;;  %v1608_v14 = vpop.f32.mrb[172].mxu0  ;;  %v2136_v11 = vpop.f32.mrb[172].mxu1 }
 0x241   :  { %v1609_v25 = vadd.f32 %v4541_v9, %v1608_v14  ;;  %v2137_v16 = vadd.f32 %v4541_v9, %v2136_v11  ;;  %v3458_v34 = vpop.f32.mrb[173].mxu0  ;;  %v3568_v8 = vpop.f32.mrb[173].mxu1 }
 0x242   :  { %v2323_v24 = vmax.f32 %v4468_v5, %v2274_v2  ;;  %v1611_v12 = vpop.f32.mrb[174].mxu0  ;;  %v2139_v54 = vpop.f32.mrb[174].mxu1 }
 0x243   :  { %v1698_v27 = vmax.f32 %v1609_v25, 0.0  ;;  %v2226_v19 = vmax.f32 %v2137_v16, 0.0  ;;  %v1612_v31 = vadd.f32 %v4541_v9, %v1611_v12  ;;  %v2140_v49 = vadd.f32 %v4541_v9, %v2139_v54  ;;  %v3459_v59 = vpop.f32.mrb[175].mxu0  ;;  %v3569_v63 = vpop.f32.mrb[175].mxu1 }
 0x244   :  { %v2979_v10 = vpack.c.bf16 %v2323_v24, %v2322_v55 }
 0x245   :  { %v2275_v6 = vmax.f32 %v1698_v27, %v2226_v19  ;;  %v1699_v20 = vmax.f32 %v1612_v31, 0.0  ;;  %v2227_v4 = vmax.f32 %v2140_v49, 0.0 }
 0x246   :  { %3027 = vst [vmem:[%s4816_s6 + $0x88] sm:$0xff] %v2979_v10  }
 0x247   :  { %v2324_v5 = vmax.f32 %v4480_v47, %v2275_v6  ;;  %v2276_v13 = vmax.f32 %v1699_v20, %v2227_v4 }
 0x248   :  { %v1616_v7 = vpop.f32.mrb[176].mxu0  ;;  %v2144_v56 = vpop.f32.mrb[176].mxu1 }
 0x249   :  { %v2325_v58 = vmax.f32 %v4488_v53, %v2276_v13  ;;  %v1617_v0 = vadd.f32 %v4541_v9, %v1616_v7  ;;  %v2145_v61 = vadd.f32 %v4541_v9, %v2144_v56  ;;  %v3462_v44 = vpop.f32.mrb[177].mxu0  ;;  %v3572_v46 = vpop.f32.mrb[177].mxu1 }
 0x24a   :  { %v1619_v62 = vpop.f32.mrb[178].mxu0  ;;  %v2147_v38 = vpop.f32.mrb[178].mxu1 }
 0x24b   :  { %v2984_v15 = vpack.c.bf16 %v2325_v58, %v2324_v5  ;;  %v1700_v45 = vmax.f32 %v1617_v0, 0.0  ;;  %v2228_v18 = vmax.f32 %v2145_v61, 0.0  ;;  %v1620_v50 = vadd.f32 %v4541_v9, %v1619_v62  ;;  %v3463_v52 = vpop.f32.mrb[179].mxu0  ;;  %v3573_v47 = vpop.f32.mrb[179].mxu1  ;;  %v4823_v62 = vld [vmem:[#allocation2_spill] sm:$0xff] }
 0x24c   :  { %v2148_v3 = vadd.f32 %v4541_v9, %v2147_v38 }
 0x24d   :  { %3028 = vst [vmem:[%s4816_s6 + $0x90] sm:$0xff] %v2984_v15   ;;  %v2277_v53 = vmax.f32 %v1700_v45, %v2228_v18  ;;  %v1701_v21 = vmax.f32 %v1620_v50, 0.0 }
 0x24e   :  { %v2229_v33 = vmax.f32 %v2148_v3, 0.0 }
 0x24f   :  { %v2326_v48 = vmax.f32 %v4500_v30, %v2277_v53 }
 0x250   :  { %v2278_v41 = vmax.f32 %v1701_v21, %v2229_v33  ;;  %v1624_v57 = vpop.f32.mrb[180].mxu0  ;;  %v2152_v28 = vpop.f32.mrb[180].mxu1 }
 0x251   :  { %v1625_v32 = vadd.f32 %v4541_v9, %v1624_v57  ;;  %v2153_v40 = vadd.f32 %v4541_v9, %v2152_v28  ;;  %v3466_v36 = vpop.f32.mrb[181].mxu0  ;;  %v3576_v1 = vpop.f32.mrb[181].mxu1 }
 0x252   :  { %v2327_v39 = vmax.f32 %v4508_v37, %v2278_v41  ;;  %v1627_v51 = vpop.f32.mrb[182].mxu0  ;;  %v2155_v60 = vpop.f32.mrb[182].mxu1  ;;  %v4824_v41 = vld [vmem:[#allocation3_spill] sm:$0xff]  ;;  %v4825_v36 = vld [vmem:[#allocation4_spill] sm:$0xff] }
 0x253   :  { %v1702_v22 = vmax.f32 %v1625_v32, 0.0  ;;  %v2230_v35 = vmax.f32 %v2153_v40, 0.0  ;;  %v1628_v30 = vadd.f32 %v4765_v26, %v1627_v51  ;;  %v2156_v43 = vadd.f32 %v4765_v26, %v2155_v60  ;;  %v3467_v42 = vpop.f32.mrb[183].mxu0  ;;  %v3577_v55 = vpop.f32.mrb[183].mxu1 }
 0x254   :  { %v2989_v9 = vpack.c.bf16 %v2327_v39, %v2326_v48 }
 0x255   :  { %v2279_v2 = vmax.f32 %v1702_v22, %v2230_v35  ;;  %v1703_v14 = vmax.f32 %v1628_v30, 0.0  ;;  %v2231_v11 = vmax.f32 %v2156_v43, 0.0 }
 0x256   :  { %3029 = vst [vmem:[%s4816_s6 + $0x98] sm:$0xff] %v2989_v9  }
 0x257   :  { %v2328_v37 = vmax.f32 %v4520_v23, %v2279_v2  ;;  %v2280_v25 = vmax.f32 %v1703_v14, %v2231_v11 }
 0x258   :  { %v1632_v16 = vpop.f32.mrb[184].mxu0  ;;  %v2160_v34 = vpop.f32.mrb[184].mxu1 }
 0x259   :  { %v2329_v8 = vmax.f32 %v4528_v29, %v2280_v25  ;;  %v1633_v24 = vadd.f32 %v4765_v26, %v1632_v16  ;;  %v2161_v12 = vadd.f32 %v4765_v26, %v2160_v34  ;;  %v3470_v54 = vpop.f32.mrb[185].mxu0  ;;  %v3580_v27 = vpop.f32.mrb[185].mxu1  ;;  %v4826_v34 = vld [vmem:[#allocation5_spill] sm:$0xff] }
 0x25a   :  { %v1635_v19 = vpop.f32.mrb[186].mxu0  ;;  %v2163_v31 = vpop.f32.mrb[186].mxu1 }
 0x25b   :  { %v2994_v49 = vpack.c.bf16 %v2329_v8, %v2328_v37  ;;  %v1704_v59 = vmax.f32 %v1633_v24, 0.0  ;;  %v2232_v63 = vmax.f32 %v2161_v12, 0.0  ;;  %v1636_v10 = vadd.f32 %v4765_v26, %v1635_v19  ;;  %v3471_v6 = vpop.f32.mrb[187].mxu0  ;;  %v3581_v23 = vpop.f32.mrb[187].mxu1 }
 0x25c   :  { %v2164_v20 = vadd.f32 %v4765_v26, %v2163_v31 }
 0x25d   :  { %3030 = vst [vmem:[%s4816_s6 + $0xa0] sm:$0xff] %v2994_v49   ;;  %v2281_v29 = vmax.f32 %v1704_v59, %v2232_v63  ;;  %v1705_v4 = vmax.f32 %v1636_v10, 0.0  ;;  %v4827_v59 = vld [vmem:[#allocation6_spill] sm:$0xff] }
 0x25e   :  { %v2233_v5 = vmax.f32 %v2164_v20, 0.0 }
 0x25f   :  { %v2330_v13 = vmax.f32 %v4545_v17, %v2281_v29 }
 0x260   :  { %v2282_v7 = vmax.f32 %v1705_v4, %v2233_v5  ;;  %v1640_v56 = vpop.f32.mrb[188].mxu0  ;;  %v2168_v58 = vpop.f32.mrb[188].mxu1 }
 0x261   :  { %v1641_v0 = vadd.f32 %v4765_v26, %v1640_v56  ;;  %v2169_v61 = vadd.f32 %v4765_v26, %v2168_v58  ;;  %v3474_v44 = vpop.f32.mrb[189].mxu0  ;;  %v3584_v46 = vpop.f32.mrb[189].mxu1 }
 0x262   :  { %v2331_v38 = vmax.f32 %v4823_v62, %v2282_v7  ;;  %v1643_v15 = vpop.f32.mrb[190].mxu0  ;;  %v2171_v45 = vpop.f32.mrb[190].mxu1  ;;  %v4828_v7 = vld [vmem:[#allocation7_spill] sm:$0xff] }
 0x263   :  { %v1706_v18 = vmax.f32 %v1641_v0, 0.0  ;;  %v2234_v50 = vmax.f32 %v2169_v61, 0.0  ;;  %v1644_v52 = vadd.f32 %v4765_v26, %v1643_v15  ;;  %v2172_v47 = vadd.f32 %v4765_v26, %v2171_v45  ;;  %v3475_v17 = vpop.f32.mrb[191].mxu0  ;;  %v3585_v3 = vpop.f32.mrb[191].mxu1 }
 0x264   :  { %v2999_v53 = vpack.c.bf16 %v2331_v38, %v2330_v13 }
 0x265   :  { %v2283_v21 = vmax.f32 %v1706_v18, %v2234_v50  ;;  %v1707_v33 = vmax.f32 %v1644_v52, 0.0  ;;  %v2235_v48 = vmax.f32 %v2172_v47, 0.0 }
 0x266   :  { %3031 = vst [vmem:[%s4816_s6 + $0xa8] sm:$0xff] %v2999_v53  }
 0x267   :  { %v2332_v57 = vmax.f32 %v4824_v41, %v2283_v21  ;;  %v2284_v28 = vmax.f32 %v1707_v33, %v2235_v48 }
 0x268   :  { %v1648_v32 = vpop.f32.mrb[192].mxu0  ;;  %v2176_v40 = vpop.f32.mrb[192].mxu1 }
 0x269   :  { %v2333_v1 = vmax.f32 %v4825_v36, %v2284_v28  ;;  %v1649_v39 = vadd.f32 %v4765_v26, %v1648_v32  ;;  %v2177_v51 = vadd.f32 %v4765_v26, %v2176_v40  ;;  %v3478_v60 = vpop.f32.mrb[193].mxu0  ;;  %v3588_v22 = vpop.f32.mrb[193].mxu1 }
 0x26a   :  { %v1651_v35 = vpop.f32.mrb[194].mxu0  ;;  %v2179_v30 = vpop.f32.mrb[194].mxu1 }
 0x26b   :  { %v3004_v43 = vpack.c.bf16 %v2333_v1, %v2332_v57  ;;  %v1708_v42 = vmax.f32 %v1649_v39, 0.0  ;;  %v2236_v55 = vmax.f32 %v2177_v51, 0.0  ;;  %v1652_v9 = vadd.f32 %v4765_v26, %v1651_v35  ;;  %v3479_v2 = vpop.f32.mrb[195].mxu0  ;;  %v3589_v14 = vpop.f32.mrb[195].mxu1 }
 0x26c   :  { %v2180_v11 = vadd.f32 %v4765_v26, %v2179_v30 }
 0x26d   :  { %3032 = vst [vmem:[%s4816_s6 + $0xb0] sm:$0xff] %v3004_v43   ;;  %v2285_v37 = vmax.f32 %v1708_v42, %v2236_v55  ;;  %v1709_v25 = vmax.f32 %v1652_v9, 0.0 }
 0x26e   :  { %v2237_v16 = vmax.f32 %v2180_v11, 0.0 }
 0x26f   :  { %v2334_v8 = vmax.f32 %v4826_v34, %v2285_v37 }
 0x270   :  { %v2286_v24 = vmax.f32 %v1709_v25, %v2237_v16  ;;  %v1656_v12 = vpop.f32.mrb[196].mxu0  ;;  %v2184_v54 = vpop.f32.mrb[196].mxu1 }
 0x271   :  { %v1657_v27 = vadd.f32 %v4765_v26, %v1656_v12  ;;  %v2185_v19 = vadd.f32 %v4765_v26, %v2184_v54  ;;  %v3482_v31 = vpop.f32.mrb[197].mxu0  ;;  %v3592_v49 = vpop.f32.mrb[197].mxu1 }
 0x272   :  { %v2335_v63 = vmax.f32 %v4827_v59, %v2286_v24  ;;  %v1659_v10 = vpop.f32.mrb[198].mxu0  ;;  %v2187_v6 = vpop.f32.mrb[198].mxu1 }
 0x273   :  { %v1710_v23 = vmax.f32 %v1657_v27, 0.0  ;;  %v2238_v20 = vmax.f32 %v2185_v19, 0.0  ;;  %v3483_v29 = vpop.f32.mrb[199].mxu0  ;;  %v3593_v4 = vpop.f32.mrb[199].mxu1 }
 0x274   :  { %v3009_v5 = vpack.c.bf16 %v2335_v63, %v2334_v8 }
 0x275   :  { %v2287_v13 = vmax.f32 %v1710_v23, %v2238_v20 }
 0x276   :  { %3033 = vst [vmem:[%s4816_s6 + $0xb8] sm:$0xff] %v3009_v5  }
 0x277   :  { %v2336_v56 = vmax.f32 %v4828_v7, %v2287_v13 }
 0x279   :  { %v2890_v58 = vpack.c.bf16 %v2336_v56, %v2336_v56 }
 0x27b   :  { %2582 = vst [vmem:[%s4816_s6 + $0xc0] sm:$0xf] %v2890_v58 }

// kernel: simplenet_forward.4
= control target key start
LH: loop header
LB: loop body
LE: loop exit
PB: predicated region body
PF: predicated region fallthrough
CT: control target
= control target key end

     0   :  { %v810_v0 = vmov 0   ;;  %vm147_vm0 = vcmask 179200   ;;  %vm160_vm1 = vcmask 1042432   ;;  %s1142_s4 = inlined_call_operand.vmem [shape: bf16[150,128], index: 4, kind: input, shape index: {}]   ;;  %s1143_s0 = inlined_call_operand.vmem [shape: bf16[50,150], index: 0, kind: input, shape index: {}]   ;;  %s1144_s1 = inlined_call_operand.vmem [shape: bf16[50,150], index: 1, kind: input, shape index: {}]   ;;  %s1145_s2 = inlined_call_operand.vmem [shape: bf16[50,150], index: 2, kind: input, shape index: {}]   ;;  %s1146_s3 = inlined_call_operand.vmem [shape: bf16[50,150], index: 3, kind: input, shape index: {}]   ;;  %s1147_s5 = inlined_call_operand.vmem [shape: f32[1,128], index: 5, kind: input, shape index: {}]   ;;  %s1148_s6 = inlined_call_operand.vmem [shape: bf16[50,128], index: 6, kind: output, shape index: {}]  }
   0x1   :  { %164 = vmatprep.subr.bf16.mxu0 %v810_v0  ;;  %287 = vmatprep.subr.bf16.mxu1 %v810_v0  ;;  %v851_v1 = vld [vmem:[%s1142_s4] sm:$0xff]   ;;  %v858_v2 = vld [vmem:[%s1142_s4 + $0x8] sm:$0xff]   ;;  %v867_v3 = vld [vmem:[%s1142_s4 + $0x10] sm:$0xff]  }
   0x2   :  { %165 = vmatpush1.bf16.msra.mxu0 %v851_v1  ;;  %288 = vmatpush1.bf16.msra.mxu1 %v851_v1  ;;  %v876_v4 = vld [vmem:[%s1142_s4 + $0x18] sm:$0xff]   ;;  %v768_v5 = vld [vmem:[%s1143_s0 + $0x4] ss:$8 sps:$4 sm:$0xff]   ;;  %v911_v9 = vld [vmem:[%s1142_s4 + $0x30] sm:$0xff]  }
   0x3   :  { %166 = vmatprep.subr.bf16.mxu0 %v810_v0  ;;  %289 = vmatprep.subr.bf16.mxu1 %v810_v0  ;;  %v771_v6 = vld [vmem:[%s1144_s1 + $0x4] ss:$8 sps:$4 sm:$0xff]   ;;  %v920_v10 = vld [vmem:[%s1142_s4 + $0x38] sm:$0xff]   ;;  %v765_v12 = vld [vmem:[%s1142_s4 + $0x48] ss:$0 sps:$4 sm:$0x77]  }
   0x4   :  { %684 = vmatprep.mubr.msk.bf16.mxu0 %vm147_vm0, %v768_v5  ;;  %v892_v7 = vld [vmem:[%s1142_s4 + $0x20] sm:$0xff]   ;;  %696 = vmatprep.mubr.msk.bf16.mxu1 %vm147_vm0, %v771_v6  ;;  %v902_v8 = vld [vmem:[%s1142_s4 + $0x28] sm:$0xff]   ;;  %v940_v13 = vsel %vm160_vm1, %v765_v12, 0  ;;  %v772_v16 = vld [vmem:[%s1143_s0 + $0x14] ss:$8 sps:$4 sm:$0xff]  }
   0x5   :  { %v929_v11 = vld [vmem:[%s1142_s4 + $0x40] sm:$0xff]   ;;  %v774_v17 = vld [vmem:[%s1144_s1 + $0x14] ss:$8 sps:$4 sm:$0xff]   ;;  %v776_v18 = vld [vmem:[%s1143_s0 + $0x10] ss:$8 sps:$4 sm:$0xff]  }
   0x6   :  { %167 = vmatpush1.bf16.msra.mxu0 %v858_v2  ;;  %290 = vmatpush1.bf16.msra.mxu1 %v858_v2  ;;  %v766_v14 = vld [vmem:[%s1143_s0] ss:$8 sps:$4 sm:$0xff]   ;;  %v777_v19 = vld [vmem:[%s1144_s1 + $0x10] ss:$8 sps:$4 sm:$0xff]   ;;  %v778_v20 = vld [vmem:[%s1143_s0 + $0x24] ss:$8 sps:$4 sm:$0xff]  }
   0x7   :  { %168 = vmatprep.subr.bf16.mxu0 %v810_v0  ;;  %291 = vmatprep.subr.bf16.mxu1 %v810_v0  ;;  %v769_v15 = vld [vmem:[%s1144_s1] ss:$8 sps:$4 sm:$0xff]   ;;  %v780_v21 = vld [vmem:[%s1144_s1 + $0x24] ss:$8 sps:$4 sm:$0xff]   ;;  %v50_v24 = vld [vmem:[%s1143_s0 + $0x30] sm:$0x11] }
   0x8   :  { %v782_v22 = vld [vmem:[%s1143_s0 + $0x20] ss:$8 sps:$4 sm:$0xff]   ;;  %v241_v25 = vld [vmem:[%s1144_s1 + $0x30] sm:$0x11]  ;;  %v673_v26 = vcombine.high %v50_v24, %v50_v24  ;;  %v672_v28 = vcombine.low %v50_v24, %v50_v24  ;;  %v790_v30 = vld [vmem:[%s1145_s2 + $0x4] ss:$8 sps:$4 sm:$0xff]  }
   0x9   :  { %v783_v23 = vld [vmem:[%s1144_s1 + $0x20] ss:$8 sps:$4 sm:$0xff]   ;;  %v695_v27 = vcombine.high %v241_v25, %v241_v25  ;;  %v694_v29 = vcombine.low %v241_v25, %v241_v25  ;;  %v793_v31 = vld [vmem:[%s1146_s3 + $0x4] ss:$8 sps:$4 sm:$0xff]   ;;  %v794_v34 = vld [vmem:[%s1145_s2 + $0x14] ss:$8 sps:$4 sm:$0xff]  }
   0xa   :  { %169 = vmatpush1.bf16.msra.mxu0 %v867_v3  ;;  %292 = vmatpush1.bf16.msra.mxu1 %v867_v3  ;;  %v788_v32 = vld [vmem:[%s1145_s2] ss:$8 sps:$4 sm:$0xff]   ;;  %v796_v35 = vld [vmem:[%s1146_s3 + $0x14] ss:$8 sps:$4 sm:$0xff]   ;;  %v798_v36 = vld [vmem:[%s1145_s2 + $0x10] ss:$8 sps:$4 sm:$0xff]  }
   0xb   :  { %170 = vmatprep.subr.bf16.mxu0 %v810_v0  ;;  %293 = vmatprep.subr.bf16.mxu1 %v810_v0  ;;  %v791_v33 = vld [vmem:[%s1146_s3] ss:$8 sps:$4 sm:$0xff]   ;;  %v799_v37 = vld [vmem:[%s1146_s3 + $0x10] ss:$8 sps:$4 sm:$0xff]   ;;  %v800_v38 = vld [vmem:[%s1145_s2 + $0x24] ss:$8 sps:$4 sm:$0xff]  }
   0xc   :  { %v802_v39 = vld [vmem:[%s1146_s3 + $0x24] ss:$8 sps:$4 sm:$0xff]   ;;  %v371_v40 = vld [vmem:[%s1145_s2 + $0x30] sm:$0x11]  ;;  %v804_v42 = vld [vmem:[%s1145_s2 + $0x20] ss:$8 sps:$4 sm:$0xff]  }
   0xd   :  { %v494_v41 = vld [vmem:[%s1146_s3 + $0x30] sm:$0x11]  ;;  %v805_v43 = vld [vmem:[%s1146_s3 + $0x20] ss:$8 sps:$4 sm:$0xff]   ;;  %v707_v44 = vcombine.high %v371_v40, %v371_v40  ;;  %v706_v46 = vcombine.low %v371_v40, %v371_v40 }
   0xe   :  { %171 = vmatpush1.bf16.msra.mxu0 %v876_v4  ;;  %294 = vmatpush1.bf16.msra.mxu1 %v876_v4  ;;  %v719_v45 = vcombine.high %v494_v41, %v494_v41  ;;  %v718_v47 = vcombine.low %v494_v41, %v494_v41  ;;  %v1079_v48 = vld [vmem:[%s1147_s5] ss:$0 sm:$0xff] }
   0xf   :  { %172 = vmatprep.subr.bf16.mxu0 %v810_v0  ;;  %295 = vmatprep.subr.bf16.mxu1 %v810_v0 }
  0x12   :  { %173 = vmatpush1.bf16.msra.mxu0 %v892_v7  ;;  %296 = vmatpush1.bf16.msra.mxu1 %v892_v7 }
  0x13   :  { %174 = vmatprep.subr.bf16.mxu0 %v810_v0  ;;  %297 = vmatprep.subr.bf16.mxu1 %v810_v0 }
  0x16   :  { %175 = vmatpush1.bf16.msra.mxu0 %v902_v8  ;;  %298 = vmatpush1.bf16.msra.mxu1 %v902_v8 }
  0x17   :  { %176 = vmatprep.subr.bf16.mxu0 %v810_v0  ;;  %299 = vmatprep.subr.bf16.mxu1 %v810_v0 }
  0x1a   :  { %177 = vmatpush1.bf16.msra.mxu0 %v911_v9  ;;  %300 = vmatpush1.bf16.msra.mxu1 %v911_v9 }
  0x1b   :  { %178 = vmatprep.subr.bf16.mxu0 %v810_v0  ;;  %301 = vmatprep.subr.bf16.mxu1 %v810_v0 }
  0x1e   :  { %179 = vmatpush1.bf16.msra.mxu0 %v920_v10  ;;  %302 = vmatpush1.bf16.msra.mxu1 %v920_v10 }
  0x1f   :  { %180 = vmatprep.subr.bf16.mxu0 %v810_v0  ;;  %303 = vmatprep.subr.bf16.mxu1 %v810_v0 }
  0x22   :  { %181 = vmatpush1.bf16.msra.mxu0 %v929_v11  ;;  %304 = vmatpush1.bf16.msra.mxu1 %v929_v11 }
  0x23   :  { %182 = vmatprep.subr.bf16.mxu0 %v810_v0  ;;  %305 = vmatprep.subr.bf16.mxu1 %v810_v0 }
  0x26   :  { %183 = vmatpush1.bf16.msra.mxu0 %v940_v13  ;;  %306 = vmatpush1.bf16.msra.mxu1 %v940_v13 }
  0x27   :  { %417 = vmatprep.subr.bf16.mxu0 %v810_v0  ;;  %540 = vmatprep.subr.bf16.mxu1 %v810_v0 }
  0x29   :  { %197 = vmatmul.mubr.bf16.vlgmr.msra.gmra.mrb[0].mxu0 %v766_v14  ;;  %320 = vmatmul.mubr.bf16.vlgmr.msra.gmra.mrb[0].mxu1 %v769_v15 }
  0x2a   :  { %418 = vmatpush1.bf16.msra.mxu0 %v851_v1  ;;  %541 = vmatpush1.bf16.msra.mxu1 %v851_v1 }
  0x2b   :  { %419 = vmatprep.subr.bf16.mxu0 %v810_v0  ;;  %542 = vmatprep.subr.bf16.mxu1 %v810_v0 }
  0x2c   :  { %685 = vmatprep.mubr.msk.bf16.mxu0 %vm147_vm0, %v772_v16  ;;  %697 = vmatprep.mubr.msk.bf16.mxu1 %vm147_vm0, %v774_v17 }
  0x2e   :  { %420 = vmatpush1.bf16.msra.mxu0 %v858_v2  ;;  %543 = vmatpush1.bf16.msra.mxu1 %v858_v2 }
  0x2f   :  { %421 = vmatprep.subr.bf16.mxu0 %v810_v0  ;;  %544 = vmatprep.subr.bf16.mxu1 %v810_v0 }
  0x31   :  { %205 = vmatmul.mubr.bf16.gmra.mrb[4].mxu0 %v776_v18  ;;  %328 = vmatmul.mubr.bf16.gmra.mrb[4].mxu1 %v777_v19 }
  0x32   :  { %422 = vmatpush1.bf16.msra.mxu0 %v867_v3  ;;  %545 = vmatpush1.bf16.msra.mxu1 %v867_v3 }
  0x33   :  { %423 = vmatprep.subr.bf16.mxu0 %v810_v0  ;;  %546 = vmatprep.subr.bf16.mxu1 %v810_v0 }
  0x34   :  { %686 = vmatprep.mubr.msk.bf16.mxu0 %vm147_vm0, %v778_v20  ;;  %698 = vmatprep.mubr.msk.bf16.mxu1 %vm147_vm0, %v780_v21 }
  0x36   :  { %424 = vmatpush1.bf16.msra.mxu0 %v876_v4  ;;  %547 = vmatpush1.bf16.msra.mxu1 %v876_v4 }
  0x37   :  { %425 = vmatprep.subr.bf16.mxu0 %v810_v0  ;;  %548 = vmatprep.subr.bf16.mxu1 %v810_v0 }
  0x39   :  { %213 = vmatmul.mubr.bf16.gmra.mrb[8].mxu0 %v782_v22  ;;  %336 = vmatmul.mubr.bf16.gmra.mrb[8].mxu1 %v783_v23 }
  0x3a   :  { %426 = vmatpush1.bf16.msra.mxu0 %v892_v7  ;;  %549 = vmatpush1.bf16.msra.mxu1 %v892_v7 }
  0x3b   :  { %427 = vmatprep.subr.bf16.mxu0 %v810_v0  ;;  %550 = vmatprep.subr.bf16.mxu1 %v810_v0 }
  0x3c   :  { %687 = vmatprep.mubr.msk.bf16.mxu0 %vm147_vm0, %v673_v26  ;;  %699 = vmatprep.mubr.msk.bf16.mxu1 %vm147_vm0, %v695_v27 }
  0x3e   :  { %428 = vmatpush1.bf16.msra.mxu0 %v902_v8  ;;  %551 = vmatpush1.bf16.msra.mxu1 %v902_v8 }
  0x3f   :  { %429 = vmatprep.subr.bf16.mxu0 %v810_v0  ;;  %552 = vmatprep.subr.bf16.mxu1 %v810_v0 }
  0x41   :  { %221 = vmatmul.mubr.bf16.gmra.mrb[12].mxu0 %v672_v28  ;;  %344 = vmatmul.mubr.bf16.gmra.mrb[12].mxu1 %v694_v29 }
  0x42   :  { %430 = vmatpush1.bf16.msra.mxu0 %v911_v9  ;;  %553 = vmatpush1.bf16.msra.mxu1 %v911_v9 }
  0x43   :  { %431 = vmatprep.subr.bf16.mxu0 %v810_v0  ;;  %554 = vmatprep.subr.bf16.mxu1 %v810_v0 }
  0x44   :  { %708 = vmatprep.mubr.msk.bf16.mxu0 %vm147_vm0, %v790_v30  ;;  %720 = vmatprep.mubr.msk.bf16.mxu1 %vm147_vm0, %v793_v31 }
  0x46   :  { %432 = vmatpush1.bf16.msra.mxu0 %v920_v10  ;;  %555 = vmatpush1.bf16.msra.mxu1 %v920_v10 }
  0x47   :  { %433 = vmatprep.subr.bf16.mxu0 %v810_v0  ;;  %556 = vmatprep.subr.bf16.mxu1 %v810_v0 }
  0x4a   :  { %434 = vmatpush1.bf16.msra.mxu0 %v929_v11  ;;  %557 = vmatpush1.bf16.msra.mxu1 %v929_v11 }
  0x4b   :  { %435 = vmatprep.subr.bf16.mxu0 %v810_v0  ;;  %558 = vmatprep.subr.bf16.mxu1 %v810_v0 }
  0x4e   :  { %436 = vmatpush1.bf16.msra.mxu0 %v940_v13  ;;  %559 = vmatpush1.bf16.msra.mxu1 %v940_v13 }
  0x51   :  { %450 = vmatmul.mubr.bf16.vlgmr.msra.gmra.mrb[16].mxu0 %v788_v32  ;;  %573 = vmatmul.mubr.bf16.vlgmr.msra.gmra.mrb[16].mxu1 %v791_v33 }
  0x52   :  { %709 = vmatprep.mubr.msk.bf16.mxu0 %vm147_vm0, %v794_v34  ;;  %721 = vmatprep.mubr.msk.bf16.mxu1 %vm147_vm0, %v796_v35 }
  0x59   :  { %458 = vmatmul.mubr.bf16.gmra.mrb[20].mxu0 %v798_v36  ;;  %581 = vmatmul.mubr.bf16.gmra.mrb[20].mxu1 %v799_v37 }
  0x5a   :  { %710 = vmatprep.mubr.msk.bf16.mxu0 %vm147_vm0, %v800_v38  ;;  %722 = vmatprep.mubr.msk.bf16.mxu1 %vm147_vm0, %v802_v39 }
  0x61   :  { %466 = vmatmul.mubr.bf16.gmra.mrb[24].mxu0 %v804_v42  ;;  %589 = vmatmul.mubr.bf16.gmra.mrb[24].mxu1 %v805_v43 }
  0x62   :  { %711 = vmatprep.mubr.msk.bf16.mxu0 %vm147_vm0, %v707_v44  ;;  %723 = vmatprep.mubr.msk.bf16.mxu1 %vm147_vm0, %v719_v45 }
  0x69   :  { %474 = vmatmul.mubr.bf16.gmra.mrb[28].mxu0 %v706_v46  ;;  %597 = vmatmul.mubr.bf16.gmra.mrb[28].mxu1 %v718_v47 }
  0xfc   :  { %v198_v49 = vpop.f32.mrb[0].mxu0  ;;  %v321_v50 = vpop.f32.mrb[0].mxu1 }
  0xfd   :  { %v199_v51 = vadd.f32 %v1079_v48, %v198_v49  ;;  %v322_v52 = vadd.f32 %v1079_v48, %v321_v50  ;;  %v200_v53 = vpop.f32.mrb[1].mxu0  ;;  %v323_v54 = vpop.f32.mrb[1].mxu1 }
  0xfe   :  { %v201_v55 = vpop.f32.mrb[2].mxu0  ;;  %v324_v56 = vpop.f32.mrb[2].mxu1 }
  0xff   :  { %v228_v57 = vmax.f32 %v199_v51, 0.0  ;;  %v351_v58 = vmax.f32 %v322_v52, 0.0  ;;  %v202_v59 = vadd.f32 %v1079_v48, %v201_v55  ;;  %v325_v60 = vadd.f32 %v1079_v48, %v324_v56  ;;  %v203_v61 = vpop.f32.mrb[3].mxu0  ;;  %v326_v62 = vpop.f32.mrb[3].mxu1 }
 0x101   :  { %v1085_v63 = vmax.f32 %v228_v57, %v351_v58  ;;  %v229_v0 = vmax.f32 %v202_v59, 0.0  ;;  %v352_v1 = vmax.f32 %v325_v60, 0.0 }
 0x103   :  { %v1087_v2 = vmax.f32 %v229_v0, %v352_v1 }
 0x104   :  { %v206_v3 = vpop.f32.mrb[4].mxu0  ;;  %v329_v4 = vpop.f32.mrb[4].mxu1 }
 0x105   :  { %v207_v5 = vadd.f32 %v1079_v48, %v206_v3  ;;  %v330_v6 = vadd.f32 %v1079_v48, %v329_v4  ;;  %v208_v7 = vpop.f32.mrb[5].mxu0  ;;  %v331_v8 = vpop.f32.mrb[5].mxu1 }
 0x106   :  { %v209_v9 = vpop.f32.mrb[6].mxu0  ;;  %v332_v10 = vpop.f32.mrb[6].mxu1 }
 0x107   :  { %v230_v11 = vmax.f32 %v207_v5, 0.0  ;;  %v353_v12 = vmax.f32 %v330_v6, 0.0  ;;  %v210_v13 = vadd.f32 %v1079_v48, %v209_v9  ;;  %v333_v14 = vadd.f32 %v1079_v48, %v332_v10  ;;  %v211_v15 = vpop.f32.mrb[7].mxu0  ;;  %v334_v16 = vpop.f32.mrb[7].mxu1 }
 0x109   :  { %v1093_v17 = vmax.f32 %v230_v11, %v353_v12  ;;  %v231_v18 = vmax.f32 %v210_v13, 0.0  ;;  %v354_v19 = vmax.f32 %v333_v14, 0.0 }
 0x10b   :  { %v1095_v20 = vmax.f32 %v231_v18, %v354_v19 }
 0x10c   :  { %v214_v21 = vpop.f32.mrb[8].mxu0  ;;  %v337_v22 = vpop.f32.mrb[8].mxu1 }
 0x10d   :  { %v215_v23 = vadd.f32 %v1079_v48, %v214_v21  ;;  %v338_v24 = vadd.f32 %v1079_v48, %v337_v22  ;;  %v216_v25 = vpop.f32.mrb[9].mxu0  ;;  %v339_v26 = vpop.f32.mrb[9].mxu1 }
 0x10e   :  { %v217_v27 = vpop.f32.mrb[10].mxu0  ;;  %v340_v28 = vpop.f32.mrb[10].mxu1 }
 0x10f   :  { %v232_v29 = vmax.f32 %v215_v23, 0.0  ;;  %v355_v30 = vmax.f32 %v338_v24, 0.0  ;;  %v218_v31 = vadd.f32 %v1079_v48, %v217_v27  ;;  %v341_v32 = vadd.f32 %v1079_v48, %v340_v28  ;;  %v219_v33 = vpop.f32.mrb[11].mxu0  ;;  %v342_v34 = vpop.f32.mrb[11].mxu1 }
 0x111   :  { %v1101_v35 = vmax.f32 %v232_v29, %v355_v30  ;;  %v233_v36 = vmax.f32 %v218_v31, 0.0  ;;  %v356_v37 = vmax.f32 %v341_v32, 0.0 }
 0x113   :  { %v1103_v38 = vmax.f32 %v233_v36, %v356_v37 }
 0x114   :  { %v222_v39 = vpop.f32.mrb[12].mxu0  ;;  %v345_v40 = vpop.f32.mrb[12].mxu1 }
 0x115   :  { %v223_v41 = vadd.f32 %v1079_v48, %v222_v39  ;;  %v346_v42 = vadd.f32 %v1079_v48, %v345_v40  ;;  %v224_v43 = vpop.f32.mrb[13].mxu0  ;;  %v347_v44 = vpop.f32.mrb[13].mxu1 }
 0x116   :  { %v225_v45 = vpop.f32.mrb[14].mxu0  ;;  %v348_v46 = vpop.f32.mrb[14].mxu1 }
 0x117   :  { %v234_v47 = vmax.f32 %v223_v41, 0.0  ;;  %v357_v49 = vmax.f32 %v346_v42, 0.0  ;;  %v226_v50 = vpop.f32.mrb[15].mxu0  ;;  %v349_v51 = vpop.f32.mrb[15].mxu1 }
 0x119   :  { %v1107_v52 = vmax.f32 %v234_v47, %v357_v49 }
 0x124   :  { %v451_v53 = vpop.f32.mrb[16].mxu0  ;;  %v574_v54 = vpop.f32.mrb[16].mxu1 }
 0x125   :  { %v452_v55 = vadd.f32 %v1079_v48, %v451_v53  ;;  %v575_v56 = vadd.f32 %v1079_v48, %v574_v54  ;;  %v453_v57 = vpop.f32.mrb[17].mxu0  ;;  %v576_v58 = vpop.f32.mrb[17].mxu1 }
 0x126   :  { %v454_v59 = vpop.f32.mrb[18].mxu0  ;;  %v577_v60 = vpop.f32.mrb[18].mxu1 }
 0x127   :  { %v481_v61 = vmax.f32 %v452_v55, 0.0  ;;  %v604_v62 = vmax.f32 %v575_v56, 0.0  ;;  %v455_v0 = vadd.f32 %v1079_v48, %v454_v59  ;;  %v578_v1 = vadd.f32 %v1079_v48, %v577_v60  ;;  %v456_v3 = vpop.f32.mrb[19].mxu0  ;;  %v579_v4 = vpop.f32.mrb[19].mxu1 }
 0x129   :  { %v611_v5 = vmax.f32 %v481_v61, %v604_v62  ;;  %v482_v6 = vmax.f32 %v455_v0, 0.0  ;;  %v605_v7 = vmax.f32 %v578_v1, 0.0 }
 0x12b   :  { %v618_v8 = vmax.f32 %v1085_v63, %v611_v5  ;;  %v612_v9 = vmax.f32 %v482_v6, %v605_v7 }
 0x12c   :  { %v459_v10 = vpop.f32.mrb[20].mxu0  ;;  %v582_v11 = vpop.f32.mrb[20].mxu1 }
 0x12d   :  { %v619_v12 = vmax.f32 %v1087_v2, %v612_v9  ;;  %v460_v13 = vadd.f32 %v1079_v48, %v459_v10  ;;  %v583_v14 = vadd.f32 %v1079_v48, %v582_v11  ;;  %v461_v15 = vpop.f32.mrb[21].mxu0  ;;  %v584_v16 = vpop.f32.mrb[21].mxu1 }
 0x12e   :  { %v462_v18 = vpop.f32.mrb[22].mxu0  ;;  %v585_v19 = vpop.f32.mrb[22].mxu1 }
 0x12f   :  { %v741_v21 = vpack.c.bf16 %v619_v12, %v618_v8  ;;  %v483_v22 = vmax.f32 %v460_v13, 0.0  ;;  %v606_v23 = vmax.f32 %v583_v14, 0.0  ;;  %v463_v24 = vadd.f32 %v1079_v48, %v462_v18  ;;  %v464_v25 = vpop.f32.mrb[23].mxu0  ;;  %v587_v63 = vpop.f32.mrb[23].mxu1 }
 0x130   :  { %v586_v26 = vadd.f32 %v1079_v48, %v585_v19 }
 0x131   :  { %742 = vst [vmem:[%s1148_s6] sm:$0xff] %v741_v21   ;;  %v613_v2 = vmax.f32 %v483_v22, %v606_v23  ;;  %v484_v27 = vmax.f32 %v463_v24, 0.0 }
 0x132   :  { %v607_v28 = vmax.f32 %v586_v26, 0.0 }
 0x133   :  { %v620_v29 = vmax.f32 %v1093_v17, %v613_v2 }
 0x134   :  { %v614_v30 = vmax.f32 %v484_v27, %v607_v28  ;;  %v467_v31 = vpop.f32.mrb[24].mxu0  ;;  %v590_v32 = vpop.f32.mrb[24].mxu1 }
 0x135   :  { %v468_v33 = vadd.f32 %v1079_v48, %v467_v31  ;;  %v591_v34 = vadd.f32 %v1079_v48, %v590_v32  ;;  %v469_v36 = vpop.f32.mrb[25].mxu0  ;;  %v592_v37 = vpop.f32.mrb[25].mxu1 }
 0x136   :  { %v621_v39 = vmax.f32 %v1095_v20, %v614_v30  ;;  %v470_v40 = vpop.f32.mrb[26].mxu0  ;;  %v593_v41 = vpop.f32.mrb[26].mxu1 }
 0x137   :  { %v485_v42 = vmax.f32 %v468_v33, 0.0  ;;  %v608_v43 = vmax.f32 %v591_v34, 0.0  ;;  %v471_v44 = vadd.f32 %v1079_v48, %v470_v40  ;;  %v594_v45 = vadd.f32 %v1079_v48, %v593_v41  ;;  %v472_v17 = vpop.f32.mrb[27].mxu0  ;;  %v595_v46 = vpop.f32.mrb[27].mxu1 }
 0x138   :  { %v746_v47 = vpack.c.bf16 %v621_v39, %v620_v29 }
 0x139   :  { %v615_v49 = vmax.f32 %v485_v42, %v608_v43  ;;  %v486_v50 = vmax.f32 %v471_v44, 0.0  ;;  %v609_v51 = vmax.f32 %v594_v45, 0.0 }
 0x13a   :  { %753 = vst [vmem:[%s1148_s6 + $0x8] sm:$0xff] %v746_v47  }
 0x13b   :  { %v622_v20 = vmax.f32 %v1101_v35, %v615_v49  ;;  %v616_v53 = vmax.f32 %v486_v50, %v609_v51 }
 0x13c   :  { %v475_v54 = vpop.f32.mrb[28].mxu0  ;;  %v598_v55 = vpop.f32.mrb[28].mxu1 }
 0x13d   :  { %v623_v56 = vmax.f32 %v1103_v38, %v616_v53  ;;  %v476_v57 = vadd.f32 %v1079_v48, %v475_v54  ;;  %v599_v58 = vadd.f32 %v1079_v48, %v598_v55  ;;  %v477_v59 = vpop.f32.mrb[29].mxu0  ;;  %v600_v60 = vpop.f32.mrb[29].mxu1 }
 0x13e   :  { %v478_v61 = vpop.f32.mrb[30].mxu0  ;;  %v601_v62 = vpop.f32.mrb[30].mxu1 }
 0x13f   :  { %v751_v0 = vpack.c.bf16 %v623_v56, %v622_v20  ;;  %v487_v1 = vmax.f32 %v476_v57, 0.0  ;;  %v610_v3 = vmax.f32 %v599_v58, 0.0  ;;  %v479_v4 = vpop.f32.mrb[31].mxu0  ;;  %v602_v5 = vpop.f32.mrb[31].mxu1 }
 0x141   :  { %754 = vst [vmem:[%s1148_s6 + $0x10] sm:$0xff] %v751_v0   ;;  %v617_v35 = vmax.f32 %v487_v1, %v610_v3 }
 0x143   :  { %v624_v38 = vmax.f32 %v1107_v52, %v617_v35 }
 0x145   :  { %v737_v6 = vpack.c.bf16 %v624_v38, %v624_v38 }
 0x147   :  { %660 = vst [vmem:[%s1148_s6 + $0x18] sm:$0x1] %v737_v6 }

// kernel: simplenet_forward.5
= control target key start
LH: loop header
LB: loop body
LE: loop exit
PB: predicated region body
PF: predicated region fallthrough
CT: control target
= control target key end

     0   :  { %v785_v1 = vmov 0   ;;  %v98_v20 = vlaneseq  ;;  %v786_v25 = vmov 1966171168   ;;  %vm264_vm0 = vcmask 130048   ;;  %s1004_s0 = inlined_call_operand.vmem [shape: bf16[2,400], index: 0, kind: input, shape index: {}]   ;;  %s1005_s1 = inlined_call_operand.vmem [shape: bf16[400,128], index: 1, kind: input, shape index: {}]   ;;  %s1006_s2 = inlined_call_operand.vmem [shape: f32[1,128], index: 2, kind: input, shape index: {}]   ;;  %s1007_s3 = inlined_call_operand.vmem [shape: bf16[128,128], index: 3, kind: input, shape index: {}]   ;;  %s1008_s4 = inlined_call_operand.vmem [shape: f32[1,128], index: 4, kind: input, shape index: {}]   ;;  %s1009_s5 = inlined_call_operand.vmem [shape: bf16[128,128], index: 5, kind: input, shape index: {}]   ;;  %s1010_s6 = inlined_call_operand.vmem [shape: f32[1,128], index: 6, kind: input, shape index: {}]   ;;  %s1011_s7 = inlined_call_operand.hbm [shape: f32[2,128], index: 7, kind: output, shape index: {}]  }
   0x1   :  { %v720_v0 = vld [vmem:[%s1005_s1 + $0x40] sm:$0xff]   ;;  %308 = vmatprep.subr.bf16.mxu1 %v785_v1  ;;  %v723_v4 = vld [vmem:[%s1005_s1 + $0x48] sm:$0xff]   ;;  %v726_v7 = vld [vmem:[%s1005_s1 + $0x50] sm:$0xff]   ;;  %v96_v26 = vunpack.c.l.s4 %v786_v25  ;;  %v787_v38 = vmov 0.0  }
   0x2   :  { %v721_v2 = vld [vmem:[%s1005_s1 + $0x80] sm:$0xff]   ;;  %635 = vmatprep.subr.bf16.mxu0 %v720_v0  ;;  %v724_v5 = vld [vmem:[%s1005_s1 + $0x88] sm:$0xff]   ;;  %v727_v8 = vld [vmem:[%s1005_s1 + $0x90] sm:$0xff]   ;;  %v99_v27 = vshrl.u32 %v98_v20, 7 }
   0x3   :  { %v722_v3 = vld [vmem:[%s1005_s1] sm:$0xff]   ;;  %309 = vmatpush1.bf16.msra.mxu1 %v721_v2  ;;  %v725_v6 = vld [vmem:[%s1005_s1 + $0x8] sm:$0xff]   ;;  %v728_v9 = vld [vmem:[%s1005_s1 + $0x10] sm:$0xff]   ;;  %v97_v30 = vunpack.c.0.s8 %v96_v26 }
   0x4   :  { %636 = vmatpush3.bf16.msra.mxu0 %v722_v3  ;;  %310 = vmatprep.subr.bf16.mxu1 %v785_v1  ;;  %v729_v10 = vld [vmem:[%s1005_s1 + $0x58] sm:$0xff]   ;;  %v732_v13 = vld [vmem:[%s1005_s1 + $0x60] sm:$0xff]   ;;  %v735_v16 = vld [vmem:[%s1005_s1 + $0x68] sm:$0xff]  }
   0x5   :  { %637 = vmatprep.subr.bf16.mxu0 %v723_v4  ;;  %v730_v11 = vld [vmem:[%s1005_s1 + $0x98] sm:$0xff]   ;;  %v733_v14 = vld [vmem:[%s1005_s1 + $0xa0] sm:$0xff]   ;;  %v736_v17 = vld [vmem:[%s1005_s1 + $0xa8] sm:$0xff]   ;;  %v100_v32 = vsub.s32 %v97_v30, %v99_v27 }
   0x6   :  { %v731_v12 = vld [vmem:[%s1005_s1 + $0x18] sm:$0xff]   ;;  %v734_v15 = vld [vmem:[%s1005_s1 + $0x20] sm:$0xff]   ;;  %v737_v18 = vld [vmem:[%s1005_s1 + $0x28] sm:$0xff]  }
   0x7   :  { %311 = vmatpush1.bf16.msra.mxu1 %v724_v5  ;;  %v738_v19 = vld [vmem:[%s1005_s1 + $0x70] sm:$0xff]   ;;  %v590_v23 = vld.sshfl [vmem:[%s1004_s0] sm:$0x33 pattern:$0x75316420]  ;;  %v741_v24 = vld [vmem:[%s1005_s1 + $0x78] sm:$0xff]  }
   0x8   :  { %638 = vmatpush3.bf16.msra.mxu0 %v725_v6  ;;  %312 = vmatprep.subr.bf16.mxu1 %v785_v1  ;;  %v739_v21 = vld [vmem:[%s1005_s1 + $0xb0] sm:$0xff]   ;;  %v742_v28 = vld [vmem:[%s1005_s1 + $0xb8] sm:$0xff]   ;;  %v94_v29 = vcombine.high %v590_v23, %v590_v23  ;;  %v744_v33 = vld [vmem:[%s1005_s1 + $0xc0] sm:$0xff]   ;;  %v101_v36 = vrot.slane %v590_v23, %v100_v32 }
   0x9   :  { %639 = vmatprep.subr.bf16.mxu0 %v726_v7  ;;  %v740_v22 = vld [vmem:[%s1005_s1 + $0x30] sm:$0xff]   ;;  %v743_v31 = vld [vmem:[%s1005_s1 + $0x38] sm:$0xff]   ;;  %v745_v34 = vld [vmem:[%s1007_s3] sm:$0xff]  }
   0xa   :  { %v108_v35 = vrot.slane %v94_v29, %v100_v32  ;;  %v109_v39 = vcombine.high %v101_v36, %v101_v36  ;;  %v746_v40 = vld [vmem:[%s1007_s3 + $0x8] sm:$0xff]  }
   0xb   :  { %313 = vmatpush1.bf16.msra.mxu1 %v727_v8 }
   0xc   :  { %640 = vmatpush3.bf16.msra.mxu0 %v728_v9  ;;  %314 = vmatprep.subr.bf16.mxu1 %v785_v1  ;;  %v110_v37 = vcombine.high %v108_v35, %v108_v35 }
   0xd   :  { %641 = vmatprep.subr.bf16.mxu0 %v729_v10  ;;  %300 = vmatprep.mubr.bf16.mxu0 %v108_v35 }
   0xe   :  { %616 = vmatprep.mubr.msk.bf16.mxu1 %vm264_vm0, %v110_v37 }
   0xf   :  { %315 = vmatpush1.bf16.msra.mxu1 %v730_v11 }
  0x10   :  { %642 = vmatpush3.bf16.msra.mxu0 %v731_v12  ;;  %316 = vmatprep.subr.bf16.mxu1 %v785_v1 }
  0x11   :  { %643 = vmatprep.subr.bf16.mxu0 %v732_v13 }
  0x13   :  { %317 = vmatpush1.bf16.msra.mxu1 %v733_v14 }
  0x14   :  { %644 = vmatpush3.bf16.msra.mxu0 %v734_v15  ;;  %318 = vmatprep.subr.bf16.mxu1 %v785_v1 }
  0x15   :  { %645 = vmatprep.subr.bf16.mxu0 %v735_v16 }
  0x17   :  { %319 = vmatpush1.bf16.msra.mxu1 %v736_v17 }
  0x18   :  { %646 = vmatpush3.bf16.msra.mxu0 %v737_v18  ;;  %320 = vmatprep.subr.bf16.mxu1 %v785_v1 }
  0x19   :  { %647 = vmatprep.subr.bf16.mxu0 %v738_v19 }
  0x1b   :  { %321 = vmatpush1.bf16.msra.mxu1 %v739_v21 }
  0x1c   :  { %648 = vmatpush3.bf16.msra.mxu0 %v740_v22  ;;  %322 = vmatprep.subr.bf16.mxu1 %v785_v1 }
  0x1d   :  { %649 = vmatprep.subr.bf16.mxu0 %v741_v24 }
  0x1f   :  { %323 = vmatpush1.bf16.msra.mxu1 %v742_v28 }
  0x20   :  { %650 = vmatpush3.bf16.msra.mxu0 %v743_v31  ;;  %324 = vmatprep.subr.bf16.mxu1 %v785_v1 }
  0x21   :  { %675 = vmatprep.subr.bf16.mxu0 %v787_v38 }
  0x23   :  { %301 = vmatmul.mubr.bf16.vlgmr.msra.gmra.mrb[0].mxu0 %v101_v36  ;;  %325 = vmatpush1.bf16.msra.mxu1 %v744_v33 }
  0x24   :  { %676 = vmatpush3.bf16.msra.mxu0 %v745_v34  ;;  %695 = vmatprep.subr.bf16.mxu1 %v787_v38 }
  0x25   :  { %677 = vmatprep.subr.bf16.mxu0 %v787_v38 }
  0x26   :  { %341 = vmatmul.mubr.bf16.vlgmr.msra.gmra.mrb[0].mxu1 %v109_v39 }
  0x27   :  { %12 = vsyncpa [#allocation3], 0  ;;  %v747_v41 = vld [vmem:[%s1007_s3 + $0x10] sm:$0xff]   ;;  %v748_v42 = vld [vmem:[%s1007_s3 + $0x18] sm:$0xff]   ;;  %vm788_vm1 = vmmov 0   ;;  %s789_s16 = smov [#allocation2]  }
  0x28   :  { %678 = vmatpush3.bf16.msra.mxu0 %v746_v40  ;;  %v749_v43 = vld [vmem:[%s1007_s3 + $0x20] sm:$0xff]   ;;  %v750_v44 = vld [vmem:[%s1007_s3 + $0x28] sm:$0xff]   ;;  %v751_v45 = vld [vmem:[%s1007_s3 + $0x30] sm:$0xff]   ;;  %691 = vmatprep.mubr.msk.bf16.mxu0 %vm788_vm1, %v787_v38  ;;  %s581_s17 = sshll.u32 %s789_s16, 4  ;;  %s582_s17 = int_to_ptr.vmem [resolvable:$true] %s581_s17 }
  0x29   :  { %679 = vmatprep.subr.bf16.mxu0 %v787_v38  ;;  %v752_v46 = vld [vmem:[%s1007_s3 + $0x38] sm:$0xff]   ;;  %711 = vmatprep.mubr.msk.bf16.mxu1 %vm788_vm1, %v787_v38  ;;  %v753_v47 = vld [vmem:[%s1009_s5] sm:$0xff]   ;;  %v754_v48 = vld [vmem:[%s1009_s5 + $0x8] sm:$0xff]   ;;  %p766_p1 = scmp.lt.s32.totalorder %s582_s17, %s582_s17 }
  0x2a   :  { %696 = vmatpush3.bf16.msra.mxu1 %v753_v47  ;;  %v755_v49 = vld [vmem:[%s1009_s5 + $0x10] sm:$0xff]   ;;  %v756_v50 = vld [vmem:[%s1009_s5 + $0x18] sm:$0xff]   ;;  %v757_v51 = vld [vmem:[%s1009_s5 + $0x20] sm:$0xff]  }
  0x2b   :  { %697 = vmatprep.subr.bf16.mxu1 %v787_v38  ;;  %v758_v52 = vld [vmem:[%s1009_s5 + $0x28] sm:$0xff]   ;;  %v589_v55 = vld [vmem:[%s1006_s2] ss:$0 sm:$0xff]  ;;  %v759_v3 = vld [vmem:[%s1009_s5 + $0x30] sm:$0xff]  }
  0x2c   :  { %680 = vmatpush3.bf16.msra.mxu0 %v747_v41  ;;  %v760_v4 = vld [vmem:[%s1009_s5 + $0x38] sm:$0xff]   ;;  %v617_v5 = vld [vmem:[%s1008_s4] ss:$0 sm:$0xff]  ;;  %s761_s4 = scalar_lea.vmem %s582_s17, 32 }
  0x2d   :  { %681 = vmatprep.subr.bf16.mxu0 %v787_v38  ;;  %v626_v13 = vld [vmem:[%s1010_s6] ss:$0 sm:$0xff]  ;;  %p762_p0 = scmp.ne.s32.totalorder %s582_s17, %s761_s4  ;;  %p767_p2 = scmp.lt.s32.totalorder %s761_s4, %s761_s4 }
  0x2e   :  { %698 = vmatpush3.bf16.msra.mxu1 %v754_v48 }
  0x2f   :  { %699 = vmatprep.subr.bf16.mxu1 %v787_v38  ;;  %p768_p3 = por %p767_p2, %p766_p1 }
  0x30   :  { %682 = vmatpush3.bf16.msra.mxu0 %v748_v42 }
  0x31   :  { %683 = vmatprep.subr.bf16.mxu0 %v787_v38  ;;  %p769_p4 = pnand %p768_p3, %p762_p0 }
  0x32   :  { %700 = vmatpush3.bf16.msra.mxu1 %v755_v49 }
  0x33   :  { %701 = vmatprep.subr.bf16.mxu1 %v787_v38 }
  0x34   :  { %684 = vmatpush3.bf16.msra.mxu0 %v749_v43 }
  0x35   :  { %685 = vmatprep.subr.bf16.mxu0 %v787_v38 }
  0x36   :  { %702 = vmatpush3.bf16.msra.mxu1 %v756_v50 }
  0x37   :  { %703 = vmatprep.subr.bf16.mxu1 %v787_v38 }
  0x38   :  { %686 = vmatpush3.bf16.msra.mxu0 %v750_v44 }
  0x39   :  { %687 = vmatprep.subr.bf16.mxu0 %v787_v38 }
  0x3a   :  { %704 = vmatpush3.bf16.msra.mxu1 %v757_v51 }
  0x3b   :  { %705 = vmatprep.subr.bf16.mxu1 %v787_v38 }
  0x3c   :  { %688 = vmatpush3.bf16.msra.mxu0 %v751_v45 }
  0x3d   :  { %689 = vmatprep.subr.bf16.mxu0 %v787_v38 }
  0x3e   :  { %706 = vmatpush3.bf16.msra.mxu1 %v758_v52 }
  0x3f   :  { %707 = vmatprep.subr.bf16.mxu1 %v787_v38 }
  0x40   :  { %690 = vmatpush3.bf16.msra.mxu0 %v752_v46 }
  0x42   :  { %708 = vmatpush3.bf16.msra.mxu1 %v759_v3 }
  0x43   :  { %709 = vmatprep.subr.bf16.mxu1 %v787_v38 }
  0x46   :  { %710 = vmatpush3.bf16.msra.mxu1 %v760_v4 }
  0xf6   :  { %v651_v53 = vpop.f32.mrb[0].mxu0 }
  0xf7   :  { %v652_v54 = vpop.f32.mrb[1].mxu0 }
  0xf8   :  { %v653_v56 = vadd.f32 %v652_v54, %v651_v53  ;;  %v654_v57 = vpop.f32.mrb[2].mxu0 }
  0xf9   :  { %v655_v58 = vpop.f32.mrb[3].mxu0  ;;  %v342_v59 = vpop.f32.mrb[0].mxu1 }
  0xfa   :  { %v303_v60 = vadd.f32 %v653_v56, %v589_v55  ;;  %v344_v61 = vpop.f32.mrb[1].mxu1 }
  0xfb   :  { %v345_v62 = vpop.f32.mrb[2].mxu1 }
  0xfc   :  { %v343_v63 = vadd.f32 %v342_v59, %v303_v60  ;;  %v346_v0 = vpop.f32.mrb[3].mxu1 }
  0xfe   :  { %v348_v1 = vmax.f32 %v343_v63, 0.0 }
 0x100   :  { %v349_v2 = vpack.c.bf16 %v348_v1, %v348_v1 }
 0x102   :  { %692 = vmatmul.mubr.bf16.vlgmr.msra.gmra.mrb[4].mxu0 %v349_v2 }
 0x1d5   :  { %v455_v6 = vpop.f32.mrb[4].mxu0 }
 0x1d6   :  { %v456_v7 = vadd.f32 %v617_v5, %v455_v6  ;;  %v693_v8 = vpop.f32.mrb[5].mxu0 }
 0x1d7   :  { %v458_v9 = vpop.f32.mrb[6].mxu0 }
 0x1d8   :  { %v461_v10 = vmax.f32 %v456_v7, 0.0  ;;  %v694_v11 = vpop.f32.mrb[7].mxu0 }
 0x1da   :  { %v462_v12 = vpack.c.bf16 %v461_v10, %v461_v10 }
 0x1dc   :  { %712 = vmatmul.mubr.bf16.vlgmr.msra.gmra.mrb[4].mxu1 %v462_v12 }
 0x2af   :  { %v568_v14 = vpop.f32.mrb[4].mxu1 }
 0x2b0   :  { %v569_v15 = vadd.f32 %v626_v13, %v568_v14  ;;  %v713_v16 = vpop.f32.mrb[5].mxu1 }
 0x2b1   :  { %v571_v17 = vpop.f32.mrb[6].mxu1 }
 0x2b2   :  { %574 = vst [vmem:[#allocation2] sm:$0x3] %v569_v15  ;;  %v714_v18 = vpop.f32.mrb[7].mxu1 }
 0x2b3   :  { %772 = shalt.err (!%p769_p4)
}
 0x2b4   :  { %s773_s6 = scalar_lea.hbm %s1011_s7, 32 }
 0x2b5   :  { %p774_p5 = scmp.ne.s32.totalorder %s1011_s7, %s773_s6  ;;  %p777_p6 = scmp.lt.u32.totalorder %s773_s6, %s1011_s7 }
 0x2b7   :  { %p779_p7 = pnand %p777_p6, %p774_p5 }
 0x2b9   :  { %782 = shalt.err (!%p779_p7)
}
 0x2ba   :  { %584 = dma.vmem_to_hbm [thread:$0]  %s582_s17, 32, %s1011_s7, [#allocation3]  }
 0x2bb   :  { %783 = dma.done.wait [#allocation3], 32  }
 0x2bc   :  { %784 = vsyncadd [#allocation3], 4294967264 }
 0x2bd   :  { %588 = vsyncpa [#allocation3], 1 }

</bundles_post_ra>
